<compile_context>
chip_gen: v6e
topology: v6e:2x2x1
jax: 0.10.0
libtpu: 0.0.40
codegen_flags: <defaults>
</compile_context>

<pallas_src>
import functools

import numpy as np

import jax
import jax.numpy as jnp
from jax.experimental import pallas as pl
from jax.experimental.pallas import tpu as pltpu


WEIGHT_DTYPE = jnp.bfloat16   # MXU operand dtype (f32 accumulation everywhere)
UNITS = 400                   # torch module hidden width
UNITS_PAD = 512               # lane-aligned padded hidden width (zero-padded weights)


# ----------------------------------------------------------------------------
# Fused Pallas kernel: whole CVAE forward in one launch
# ----------------------------------------------------------------------------
def _cvae_kernel(
    # inputs
    x_ref, c_ref, eps_ref,
    # recognition network params
    r0_wx, r0_wc, r0_b, r1_w, r1_b, r2_w, r2_b, r3_w, r3_b,
    r4_wmu, r4_bmu, r4_wlv, r4_blv,
    # generation network params
    g0_wz, g0_wc, g0_b, g1_w, g1_b, g2_w, g2_b, g3_w, g3_b, g4_w, g4_b,
    # outputs
    xhat_ref, mu_ref, logvar_ref,
):
    f32 = jnp.float32
    x = x_ref[...]
    c = c_ref[...]
    cw = c.astype(r0_wc.dtype)  # class one-hot, reused by both networks

    # ---------------- recognition network ----------------
    # layer 0: concat([x, c]) @ W  ==  x @ W_x + c @ W_c   (concat folded away)
    h = (jnp.dot(x.astype(r0_wx.dtype), r0_wx[...], preferred_element_type=f32)
         + jnp.dot(cw, r0_wc[...], preferred_element_type=f32)
         + r0_b[...])
    h = jnp.maximum(h, 0.0)
    for w_ref, b_ref in ((r1_w, r1_b), (r2_w, r2_b), (r3_w, r3_b)):
        h = jnp.dot(h.astype(w_ref.dtype), w_ref[...], preferred_element_type=f32) + b_ref[...]
        h = jnp.maximum(h, 0.0)
    # final recognition layer split into mu / logvar heads (no JAX-side slicing)
    hb = h.astype(r4_wmu.dtype)
    mu = jnp.dot(hb, r4_wmu[...], preferred_element_type=f32) + r4_bmu[...]
    logvar = jnp.dot(hb, r4_wlv[...], preferred_element_type=f32) + r4_blv[...]
    mu_ref[...] = mu
    logvar_ref[...] = logvar

    # ---------------- reparametrization (fused epilogue) ----------------
    # z = eps * exp(0.5 * logvar) + mu    (exp on the EUP, f32 elementwise)
    z = eps_ref[...] * jnp.exp(0.5 * logvar) + mu

    # ---------------- generation network ----------------
    h = (jnp.dot(z.astype(g0_wz.dtype), g0_wz[...], preferred_element_type=f32)
         + jnp.dot(cw, g0_wc[...], preferred_element_type=f32)
         + g0_b[...])
    h = jnp.maximum(h, 0.0)
    for w_ref, b_ref in ((g1_w, g1_b), (g2_w, g2_b), (g3_w, g3_b)):
        h = jnp.dot(h.astype(w_ref.dtype), w_ref[...], preferred_element_type=f32) + b_ref[...]
        h = jnp.maximum(h, 0.0)
    y = jnp.dot(h.astype(g4_w.dtype), g4_w[...], preferred_element_type=f32) + g4_b[...]
    # sigmoid via EUP exp + reciprocal (exact)
    xhat_ref[...] = pl.reciprocal(1.0 + jnp.exp(-y), approx=False)


def cvae_forward(params, x, c, eps):
    """x: (B, input_size) f32, c: (B, class_size) f32, eps: (B, latent_size) f32."""
    B, input_size = x.shape
    latent_size = eps.shape[1]
    n_in = 3 + len(params)
    return pl.pallas_call(
        _cvae_kernel,
        out_shape=(
            jax.ShapeDtypeStruct((B, input_size), jnp.float32),   # x_hat
            jax.ShapeDtypeStruct((B, latent_size), jnp.float32),  # mu
            jax.ShapeDtypeStruct((B, latent_size), jnp.float32),  # logvar
        ),
        in_specs=[pl.BlockSpec(memory_space=pltpu.VMEM)] * n_in,
        out_specs=(pl.BlockSpec(memory_space=pltpu.VMEM),) * 3,
        # ~3.3 MiB of bf16 weights: fits comfortably in every generation's VMEM
        # (incl. v7x's 64 MiB physical / 32 MiB default scoped limit).
        compiler_params=pltpu.CompilerParams(vmem_limit_bytes=32 * 1024 * 1024),
    )(x, c, eps, *params)


# ----------------------------------------------------------------------------
# Parameter init (PyTorch nn.Linear semantics), zero-padded + split for the kernel
# ----------------------------------------------------------------------------
def _torch_linear_init(key, fan_in, fan_out):
    # PyTorch nn.Linear default: U(-1/sqrt(fan_in), 1/sqrt(fan_in)) for W and b.
    kw, kb = jax.random.split(key)
    bound = 1.0 / (fan_in ** 0.5)
    w = jax.random.uniform(kw, (fan_in, fan_out), jnp.float32, -bound, bound)
    b = jax.random.uniform(kb, (fan_out,), jnp.float32, -bound, bound)
    return w, b


def _pad_w(w, rows, cols, dtype):
    out = jnp.zeros((rows, cols), jnp.float32).at[: w.shape[0], : w.shape[1]].set(w)
    return out.astype(dtype)


def _pad_b(b, cols):
    return jnp.zeros((1, cols), jnp.float32).at[0, : b.shape[0]].set(b)


def init_cvae_params(key, input_size, latent_size, class_size,
                     units=UNITS, units_pad=UNITS_PAD, wdtype=WEIGHT_DTYPE):
    keys = jax.random.split(key, 10)
    # recognition network (true fan-ins for init, then zero-pad -> identical numerics)
    w0, b0 = _torch_linear_init(keys[0], input_size + class_size, units)
    w1, b1 = _torch_linear_init(keys[1], units, units)
    w2, b2 = _torch_linear_init(keys[2], units, units)
    w3, b3 = _torch_linear_init(keys[3], units, units)
    w4, b4 = _torch_linear_init(keys[4], units, latent_size * 2)
    # generation network
    v0, c0 = _torch_linear_init(keys[5], latent_size + class_size, units)
    v1, c1 = _torch_linear_init(keys[6], units, units)
    v2, c2 = _torch_linear_init(keys[7], units, units)
    v3, c3 = _torch_linear_init(keys[8], units, units)
    v4, c4 = _torch_linear_init(keys[9], units, input_size)

    U = units_pad
    params = [
        # recon layer 0: split concat -> W_x, W_c
        _pad_w(w0[:input_size], input_size, U, wdtype),
        _pad_w(w0[input_size:], class_size, U, wdtype),
        _pad_b(b0, U),
        _pad_w(w1, U, U, wdtype), _pad_b(b1, U),
        _pad_w(w2, U, U, wdtype), _pad_b(b2, U),
        _pad_w(w3, U, U, wdtype), _pad_b(b3, U),
        # recon layer 4: split into mu / logvar heads
        _pad_w(w4[:, :latent_size], U, latent_size, wdtype), _pad_b(b4[:latent_size], latent_size),
        _pad_w(w4[:, latent_size:], U, latent_size, wdtype), _pad_b(b4[latent_size:], latent_size),
        # gen layer 0: split concat -> W_z, W_c
        _pad_w(v0[:latent_size], latent_size, U, wdtype),
        _pad_w(v0[latent_size:], class_size, U, wdtype),
        _pad_b(c0, U),
        _pad_w(v1, U, U, wdtype), _pad_b(c1, U),
        _pad_w(v2, U, U, wdtype), _pad_b(c2, U),
        _pad_w(v3, U, U, wdtype), _pad_b(c3, U),
        _pad_w(v4, U, input_size, wdtype), _pad_b(c4, input_size),
    ]
    return params


# ----------------------------------------------------------------------------
# Pure-JAX reference (same math / same padded params) for correctness checking
# ----------------------------------------------------------------------------
def cvae_reference(params, x, c, eps):
    (r0_wx, r0_wc, r0_b, r1_w, r1_b, r2_w, r2_b, r3_w, r3_b,
     r4_wmu, r4_bmu, r4_wlv, r4_blv,
     g0_wz, g0_wc, g0_b, g1_w, g1_b, g2_w, g2_b, g3_w, g3_b, g4_w, g4_b) = params
    f32 = jnp.float32
    cw = c.astype(r0_wc.dtype)
    h = (jnp.dot(x.astype(r0_wx.dtype), r0_wx, preferred_element_type=f32)
         + jnp.dot(cw, r0_wc, preferred_element_type=f32) + r0_b)
    h = jnp.maximum(h, 0.0)
    for w, b in ((r1_w, r1_b), (r2_w, r2_b), (r3_w, r3_b)):
        h = jnp.maximum(jnp.dot(h.astype(w.dtype), w, preferred_element_type=f32) + b, 0.0)
    hb = h.astype(r4_wmu.dtype)
    mu = jnp.dot(hb, r4_wmu, preferred_element_type=f32) + r4_bmu
    logvar = jnp.dot(hb, r4_wlv, preferred_element_type=f32) + r4_blv
    z = eps * jnp.exp(0.5 * logvar) + mu
    h = (jnp.dot(z.astype(g0_wz.dtype), g0_wz, preferred_element_type=f32)
         + jnp.dot(cw, g0_wc, preferred_element_type=f32) + g0_b)
    h = jnp.maximum(h, 0.0)
    for w, b in ((g1_w, g1_b), (g2_w, g2_b), (g3_w, g3_b)):
        h = jnp.maximum(jnp.dot(h.astype(w.dtype), w, preferred_element_type=f32) + b, 0.0)
    y = jnp.dot(h.astype(g4_w.dtype), g4_w, preferred_element_type=f32) + g4_b
    return jax.nn.sigmoid(y), mu, logvar


# ----------------------------------------------------------------------------
# Main
# ----------------------------------------------------------------------------
if __name__ == "__main__":
    INPUT_SIZE = 64
    LATENT_SIZE = 16
    CLASS_SIZE = 8
    BATCH = 8

    root = jax.random.PRNGKey(0)
    k_params, k_x, k_c, k_eps = jax.random.split(root, 4)

    params = init_cvae_params(k_params, INPUT_SIZE, LATENT_SIZE, CLASS_SIZE)

    x = jax.random.uniform(k_x, (BATCH, INPUT_SIZE), jnp.float32)
    labels = jax.random.randint(k_c, (BATCH,), 0, CLASS_SIZE)
    c = jax.nn.one_hot(labels, CLASS_SIZE, dtype=jnp.float32)
    # eps ~ N(0, 1): torch draws fresh noise inside forward; passed explicitly here
    # for determinism.
    # TODO(synk): could draw eps in-kernel via pltpu.prng_seed/prng_random_bits instead.
    eps = jax.random.normal(k_eps, (BATCH, LATENT_SIZE), jnp.float32)

    fwd = jax.jit(cvae_forward)
    x_hat, mu, logvar = fwd(params, x, c, eps)
    jax.block_until_ready((x_hat, mu, logvar))

    # shape / sanity checks
    assert x_hat.shape == (BATCH, INPUT_SIZE)
    assert mu.shape == (BATCH, LATENT_SIZE)
    assert logvar.shape == (BATCH, LATENT_SIZE)
    assert bool(jnp.all(jnp.isfinite(x_hat)))
    assert bool(jnp.all((x_hat >= 0.0) & (x_hat <= 1.0)))

    # numerical check against pure-JAX reference using the same (padded, bf16) params
    x_hat_ref, mu_ref, logvar_ref = cvae_reference(params, x, c, eps)
    assert np.allclose(np.asarray(x_hat), np.asarray(x_hat_ref), rtol=2e-2, atol=2e-2)
    assert np.allclose(np.asarray(mu), np.asarray(mu_ref), rtol=2e-2, atol=2e-2)
    assert np.allclose(np.asarray(logvar), np.asarray(logvar_ref), rtol=2e-2, atol=2e-2)

    print("KERNEL_OK")
</pallas_src>

<mosaic_0001>
module attributes {stable_mosaic.version = 11 : i64} {
  func.func @_cvae_kernel(%arg0: memref<8x64xf32, #tpu.memory_space<vmem>>, %arg1: memref<8x8xf32, #tpu.memory_space<vmem>>, %arg2: memref<8x16xf32, #tpu.memory_space<vmem>>, %arg3: memref<64x512xbf16, #tpu.memory_space<vmem>>, %arg4: memref<8x512xbf16, #tpu.memory_space<vmem>>, %arg5: memref<1x512xf32, #tpu.memory_space<vmem>>, %arg6: memref<512x512xbf16, #tpu.memory_space<vmem>>, %arg7: memref<1x512xf32, #tpu.memory_space<vmem>>, %arg8: memref<512x512xbf16, #tpu.memory_space<vmem>>, %arg9: memref<1x512xf32, #tpu.memory_space<vmem>>, %arg10: memref<512x512xbf16, #tpu.memory_space<vmem>>, %arg11: memref<1x512xf32, #tpu.memory_space<vmem>>, %arg12: memref<512x16xbf16, #tpu.memory_space<vmem>>, %arg13: memref<1x16xf32, #tpu.memory_space<vmem>>, %arg14: memref<512x16xbf16, #tpu.memory_space<vmem>>, %arg15: memref<1x16xf32, #tpu.memory_space<vmem>>, %arg16: memref<16x512xbf16, #tpu.memory_space<vmem>>, %arg17: memref<8x512xbf16, #tpu.memory_space<vmem>>, %arg18: memref<1x512xf32, #tpu.memory_space<vmem>>, %arg19: memref<512x512xbf16, #tpu.memory_space<vmem>>, %arg20: memref<1x512xf32, #tpu.memory_space<vmem>>, %arg21: memref<512x512xbf16, #tpu.memory_space<vmem>>, %arg22: memref<1x512xf32, #tpu.memory_space<vmem>>, %arg23: memref<512x512xbf16, #tpu.memory_space<vmem>>, %arg24: memref<1x512xf32, #tpu.memory_space<vmem>>, %arg25: memref<512x64xbf16, #tpu.memory_space<vmem>>, %arg26: memref<1x64xf32, #tpu.memory_space<vmem>>, %arg27: memref<8x64xf32, #tpu.memory_space<vmem>>, %arg28: memref<8x16xf32, #tpu.memory_space<vmem>>, %arg29: memref<8x16xf32, #tpu.memory_space<vmem>>) attributes {dimension_semantics = [], scalar_prefetch = 0 : i64, scratch_operands = 0 : i64, tpu.core_type = #tpu.core_type<tc>} {
    %c0 = arith.constant 0 : index
    %c0_0 = arith.constant 0 : index
    %0 = vector.load %arg0[%c0, %c0_0] : memref<8x64xf32, #tpu.memory_space<vmem>>, vector<8x64xf32>
    %c0_1 = arith.constant 0 : index
    %c0_2 = arith.constant 0 : index
    %1 = vector.load %arg1[%c0_1, %c0_2] : memref<8x8xf32, #tpu.memory_space<vmem>>, vector<8x8xf32>
    %2 = arith.truncf %1 : vector<8x8xf32> to vector<8x8xbf16>
    %3 = arith.truncf %0 : vector<8x64xf32> to vector<8x64xbf16>
    %c0_3 = arith.constant 0 : index
    %c0_4 = arith.constant 0 : index
    %4 = vector.load %arg3[%c0_3, %c0_4] : memref<64x512xbf16, #tpu.memory_space<vmem>>, vector<64x512xbf16>
    %cst = arith.constant dense<0.000000e+00> : vector<8x512xf32>
    %5 = tpu.matmul %3, %4, %cst {dimension_numbers = #tpu.dot_dimension_numbers<[1], [0], [0], [1], [0, 0, 1, 1], [], []>} : vector<8x64xbf16>, vector<64x512xbf16>, vector<8x512xf32> -> vector<8x512xf32>
    %c0_5 = arith.constant 0 : index
    %c0_6 = arith.constant 0 : index
    %6 = vector.load %arg4[%c0_5, %c0_6] : memref<8x512xbf16, #tpu.memory_space<vmem>>, vector<8x512xbf16>
    %cst_7 = arith.constant dense<0.000000e+00> : vector<8x512xf32>
    %7 = tpu.matmul %2, %6, %cst_7 {dimension_numbers = #tpu.dot_dimension_numbers<[1], [0], [0], [1], [0, 0, 1, 1], [], []>} : vector<8x8xbf16>, vector<8x512xbf16>, vector<8x512xf32> -> vector<8x512xf32>
    %8 = arith.addf %5, %7 : vector<8x512xf32>
    %c0_8 = arith.constant 0 : index
    %c0_9 = arith.constant 0 : index
    %9 = vector.load %arg5[%c0_8, %c0_9] : memref<1x512xf32, #tpu.memory_space<vmem>>, vector<1x512xf32>
    %10 = vector.broadcast %9 : vector<1x512xf32> to vector<8x512xf32>
    %11 = arith.addf %8, %10 : vector<8x512xf32>
    %cst_10 = arith.constant 0.000000e+00 : f32
    %12 = vector.broadcast %cst_10 : f32 to vector<8x512xf32>
    %13 = arith.maximumf %11, %12 : vector<8x512xf32>
    %14 = arith.truncf %13 : vector<8x512xf32> to vector<8x512xbf16>
    %c0_11 = arith.constant 0 : index
    %c0_12 = arith.constant 0 : index
    %15 = vector.load %arg6[%c0_11, %c0_12] : memref<512x512xbf16, #tpu.memory_space<vmem>>, vector<512x512xbf16>
    %cst_13 = arith.constant dense<0.000000e+00> : vector<8x512xf32>
    %16 = tpu.matmul %14, %15, %cst_13 {dimension_numbers = #tpu.dot_dimension_numbers<[1], [0], [0], [1], [0, 0, 1, 1], [], []>} : vector<8x512xbf16>, vector<512x512xbf16>, vector<8x512xf32> -> vector<8x512xf32>
    %c0_14 = arith.constant 0 : index
    %c0_15 = arith.constant 0 : index
    %17 = vector.load %arg7[%c0_14, %c0_15] : memref<1x512xf32, #tpu.memory_space<vmem>>, vector<1x512xf32>
    %18 = vector.broadcast %17 : vector<1x512xf32> to vector<8x512xf32>
    %19 = arith.addf %16, %18 : vector<8x512xf32>
    %cst_16 = arith.constant 0.000000e+00 : f32
    %20 = vector.broadcast %cst_16 : f32 to vector<8x512xf32>
    %21 = arith.maximumf %19, %20 : vector<8x512xf32>
    %22 = arith.truncf %21 : vector<8x512xf32> to vector<8x512xbf16>
    %c0_17 = arith.constant 0 : index
    %c0_18 = arith.constant 0 : index
    %23 = vector.load %arg8[%c0_17, %c0_18] : memref<512x512xbf16, #tpu.memory_space<vmem>>, vector<512x512xbf16>
    %cst_19 = arith.constant dense<0.000000e+00> : vector<8x512xf32>
    %24 = tpu.matmul %22, %23, %cst_19 {dimension_numbers = #tpu.dot_dimension_numbers<[1], [0], [0], [1], [0, 0, 1, 1], [], []>} : vector<8x512xbf16>, vector<512x512xbf16>, vector<8x512xf32> -> vector<8x512xf32>
    %c0_20 = arith.constant 0 : index
    %c0_21 = arith.constant 0 : index
    %25 = vector.load %arg9[%c0_20, %c0_21] : memref<1x512xf32, #tpu.memory_space<vmem>>, vector<1x512xf32>
    %26 = vector.broadcast %25 : vector<1x512xf32> to vector<8x512xf32>
    %27 = arith.addf %24, %26 : vector<8x512xf32>
    %cst_22 = arith.constant 0.000000e+00 : f32
    %28 = vector.broadcast %cst_22 : f32 to vector<8x512xf32>
    %29 = arith.maximumf %27, %28 : vector<8x512xf32>
    %30 = arith.truncf %29 : vector<8x512xf32> to vector<8x512xbf16>
    %c0_23 = arith.constant 0 : index
    %c0_24 = arith.constant 0 : index
    %31 = vector.load %arg10[%c0_23, %c0_24] : memref<512x512xbf16, #tpu.memory_space<vmem>>, vector<512x512xbf16>
    %cst_25 = arith.constant dense<0.000000e+00> : vector<8x512xf32>
    %32 = tpu.matmul %30, %31, %cst_25 {dimension_numbers = #tpu.dot_dimension_numbers<[1], [0], [0], [1], [0, 0, 1, 1], [], []>} : vector<8x512xbf16>, vector<512x512xbf16>, vector<8x512xf32> -> vector<8x512xf32>
    %c0_26 = arith.constant 0 : index
    %c0_27 = arith.constant 0 : index
    %33 = vector.load %arg11[%c0_26, %c0_27] : memref<1x512xf32, #tpu.memory_space<vmem>>, vector<1x512xf32>
    %34 = vector.broadcast %33 : vector<1x512xf32> to vector<8x512xf32>
    %35 = arith.addf %32, %34 : vector<8x512xf32>
    %cst_28 = arith.constant 0.000000e+00 : f32
    %36 = vector.broadcast %cst_28 : f32 to vector<8x512xf32>
    %37 = arith.maximumf %35, %36 : vector<8x512xf32>
    %38 = arith.truncf %37 : vector<8x512xf32> to vector<8x512xbf16>
    %c0_29 = arith.constant 0 : index
    %c0_30 = arith.constant 0 : index
    %39 = vector.load %arg12[%c0_29, %c0_30] : memref<512x16xbf16, #tpu.memory_space<vmem>>, vector<512x16xbf16>
    %cst_31 = arith.constant dense<0.000000e+00> : vector<8x16xf32>
    %40 = tpu.matmul %38, %39, %cst_31 {dimension_numbers = #tpu.dot_dimension_numbers<[1], [0], [0], [1], [0, 0, 1, 1], [], []>} : vector<8x512xbf16>, vector<512x16xbf16>, vector<8x16xf32> -> vector<8x16xf32>
    %c0_32 = arith.constant 0 : index
    %c0_33 = arith.constant 0 : index
    %41 = vector.load %arg13[%c0_32, %c0_33] : memref<1x16xf32, #tpu.memory_space<vmem>>, vector<1x16xf32>
    %42 = vector.broadcast %41 : vector<1x16xf32> to vector<8x16xf32>
    %43 = arith.addf %40, %42 : vector<8x16xf32>
    %c0_34 = arith.constant 0 : index
    %c0_35 = arith.constant 0 : index
    %44 = vector.load %arg14[%c0_34, %c0_35] : memref<512x16xbf16, #tpu.memory_space<vmem>>, vector<512x16xbf16>
    %cst_36 = arith.constant dense<0.000000e+00> : vector<8x16xf32>
    %45 = tpu.matmul %38, %44, %cst_36 {dimension_numbers = #tpu.dot_dimension_numbers<[1], [0], [0], [1], [0, 0, 1, 1], [], []>} : vector<8x512xbf16>, vector<512x16xbf16>, vector<8x16xf32> -> vector<8x16xf32>
    %c0_37 = arith.constant 0 : index
    %c0_38 = arith.constant 0 : index
    %46 = vector.load %arg15[%c0_37, %c0_38] : memref<1x16xf32, #tpu.memory_space<vmem>>, vector<1x16xf32>
    %47 = vector.broadcast %46 : vector<1x16xf32> to vector<8x16xf32>
    %48 = arith.addf %45, %47 : vector<8x16xf32>
    %c0_39 = arith.constant 0 : index
    %c0_40 = arith.constant 0 : index
    %49 = vector.load %arg28[%c0_39, %c0_40] : memref<8x16xf32, #tpu.memory_space<vmem>>, vector<8x16xf32>
    tpu.vector_store %arg28[%c0_39, %c0_40], %43 {strides = array<i32>} : memref<8x16xf32, #tpu.memory_space<vmem>>, vector<8x16xf32>,
    %c0_41 = arith.constant 0 : index
    %c0_42 = arith.constant 0 : index
    %50 = vector.load %arg29[%c0_41, %c0_42] : memref<8x16xf32, #tpu.memory_space<vmem>>, vector<8x16xf32>
    tpu.vector_store %arg29[%c0_41, %c0_42], %48 {strides = array<i32>} : memref<8x16xf32, #tpu.memory_space<vmem>>, vector<8x16xf32>,
    %c0_43 = arith.constant 0 : index
    %c0_44 = arith.constant 0 : index
    %51 = vector.load %arg2[%c0_43, %c0_44] : memref<8x16xf32, #tpu.memory_space<vmem>>, vector<8x16xf32>
    %cst_45 = arith.constant 5.000000e-01 : f32
    %52 = vector.broadcast %cst_45 : f32 to vector<8x16xf32>
    %53 = arith.mulf %52, %48 : vector<8x16xf32>
    %54 = math.exp %53 : vector<8x16xf32>
    %55 = arith.mulf %51, %54 : vector<8x16xf32>
    %56 = arith.addf %55, %43 : vector<8x16xf32>
    %57 = arith.truncf %56 : vector<8x16xf32> to vector<8x16xbf16>
    %c0_46 = arith.constant 0 : index
    %c0_47 = arith.constant 0 : index
    %58 = vector.load %arg16[%c0_46, %c0_47] : memref<16x512xbf16, #tpu.memory_space<vmem>>, vector<16x512xbf16>
    %cst_48 = arith.constant dense<0.000000e+00> : vector<8x512xf32>
    %59 = tpu.matmul %57, %58, %cst_48 {dimension_numbers = #tpu.dot_dimension_numbers<[1], [0], [0], [1], [0, 0, 1, 1], [], []>} : vector<8x16xbf16>, vector<16x512xbf16>, vector<8x512xf32> -> vector<8x512xf32>
    %c0_49 = arith.constant 0 : index
    %c0_50 = arith.constant 0 : index
    %60 = vector.load %arg17[%c0_49, %c0_50] : memref<8x512xbf16, #tpu.memory_space<vmem>>, vector<8x512xbf16>
    %cst_51 = arith.constant dense<0.000000e+00> : vector<8x512xf32>
    %61 = tpu.matmul %2, %60, %cst_51 {dimension_numbers = #tpu.dot_dimension_numbers<[1], [0], [0], [1], [0, 0, 1, 1], [], []>} : vector<8x8xbf16>, vector<8x512xbf16>, vector<8x512xf32> -> vector<8x512xf32>
    %62 = arith.addf %59, %61 : vector<8x512xf32>
    %c0_52 = arith.constant 0 : index
    %c0_53 = arith.constant 0 : index
    %63 = vector.load %arg18[%c0_52, %c0_53] : memref<1x512xf32, #tpu.memory_space<vmem>>, vector<1x512xf32>
    %64 = vector.broadcast %63 : vector<1x512xf32> to vector<8x512xf32>
    %65 = arith.addf %62, %64 : vector<8x512xf32>
    %cst_54 = arith.constant 0.000000e+00 : f32
    %66 = vector.broadcast %cst_54 : f32 to vector<8x512xf32>
    %67 = arith.maximumf %65, %66 : vector<8x512xf32>
    %68 = arith.truncf %67 : vector<8x512xf32> to vector<8x512xbf16>
    %c0_55 = arith.constant 0 : index
    %c0_56 = arith.constant 0 : index
    %69 = vector.load %arg19[%c0_55, %c0_56] : memref<512x512xbf16, #tpu.memory_space<vmem>>, vector<512x512xbf16>
    %cst_57 = arith.constant dense<0.000000e+00> : vector<8x512xf32>
    %70 = tpu.matmul %68, %69, %cst_57 {dimension_numbers = #tpu.dot_dimension_numbers<[1], [0], [0], [1], [0, 0, 1, 1], [], []>} : vector<8x512xbf16>, vector<512x512xbf16>, vector<8x512xf32> -> vector<8x512xf32>
    %c0_58 = arith.constant 0 : index
    %c0_59 = arith.constant 0 : index
    %71 = vector.load %arg20[%c0_58, %c0_59] : memref<1x512xf32, #tpu.memory_space<vmem>>, vector<1x512xf32>
    %72 = vector.broadcast %71 : vector<1x512xf32> to vector<8x512xf32>
    %73 = arith.addf %70, %72 : vector<8x512xf32>
    %cst_60 = arith.constant 0.000000e+00 : f32
    %74 = vector.broadcast %cst_60 : f32 to vector<8x512xf32>
    %75 = arith.maximumf %73, %74 : vector<8x512xf32>
    %76 = arith.truncf %75 : vector<8x512xf32> to vector<8x512xbf16>
    %c0_61 = arith.constant 0 : index
    %c0_62 = arith.constant 0 : index
    %77 = vector.load %arg21[%c0_61, %c0_62] : memref<512x512xbf16, #tpu.memory_space<vmem>>, vector<512x512xbf16>
    %cst_63 = arith.constant dense<0.000000e+00> : vector<8x512xf32>
    %78 = tpu.matmul %76, %77, %cst_63 {dimension_numbers = #tpu.dot_dimension_numbers<[1], [0], [0], [1], [0, 0, 1, 1], [], []>} : vector<8x512xbf16>, vector<512x512xbf16>, vector<8x512xf32> -> vector<8x512xf32>
    %c0_64 = arith.constant 0 : index
    %c0_65 = arith.constant 0 : index
    %79 = vector.load %arg22[%c0_64, %c0_65] : memref<1x512xf32, #tpu.memory_space<vmem>>, vector<1x512xf32>
    %80 = vector.broadcast %79 : vector<1x512xf32> to vector<8x512xf32>
    %81 = arith.addf %78, %80 : vector<8x512xf32>
    %cst_66 = arith.constant 0.000000e+00 : f32
    %82 = vector.broadcast %cst_66 : f32 to vector<8x512xf32>
    %83 = arith.maximumf %81, %82 : vector<8x512xf32>
    %84 = arith.truncf %83 : vector<8x512xf32> to vector<8x512xbf16>
    %c0_67 = arith.constant 0 : index
    %c0_68 = arith.constant 0 : index
    %85 = vector.load %arg23[%c0_67, %c0_68] : memref<512x512xbf16, #tpu.memory_space<vmem>>, vector<512x512xbf16>
    %cst_69 = arith.constant dense<0.000000e+00> : vector<8x512xf32>
    %86 = tpu.matmul %84, %85, %cst_69 {dimension_numbers = #tpu.dot_dimension_numbers<[1], [0], [0], [1], [0, 0, 1, 1], [], []>} : vector<8x512xbf16>, vector<512x512xbf16>, vector<8x512xf32> -> vector<8x512xf32>
    %c0_70 = arith.constant 0 : index
    %c0_71 = arith.constant 0 : index
    %87 = vector.load %arg24[%c0_70, %c0_71] : memref<1x512xf32, #tpu.memory_space<vmem>>, vector<1x512xf32>
    %88 = vector.broadcast %87 : vector<1x512xf32> to vector<8x512xf32>
    %89 = arith.addf %86, %88 : vector<8x512xf32>
    %cst_72 = arith.constant 0.000000e+00 : f32
    %90 = vector.broadcast %cst_72 : f32 to vector<8x512xf32>
    %91 = arith.maximumf %89, %90 : vector<8x512xf32>
    %92 = arith.truncf %91 : vector<8x512xf32> to vector<8x512xbf16>
    %c0_73 = arith.constant 0 : index
    %c0_74 = arith.constant 0 : index
    %93 = vector.load %arg25[%c0_73, %c0_74] : memref<512x64xbf16, #tpu.memory_space<vmem>>, vector<512x64xbf16>
    %cst_75 = arith.constant dense<0.000000e+00> : vector<8x64xf32>
    %94 = tpu.matmul %92, %93, %cst_75 {dimension_numbers = #tpu.dot_dimension_numbers<[1], [0], [0], [1], [0, 0, 1, 1], [], []>} : vector<8x512xbf16>, vector<512x64xbf16>, vector<8x64xf32> -> vector<8x64xf32>
    %c0_76 = arith.constant 0 : index
    %c0_77 = arith.constant 0 : index
    %95 = vector.load %arg26[%c0_76, %c0_77] : memref<1x64xf32, #tpu.memory_space<vmem>>, vector<1x64xf32>
    %96 = vector.broadcast %95 : vector<1x64xf32> to vector<8x64xf32>
    %97 = arith.addf %94, %96 : vector<8x64xf32>
    %cst_78 = arith.constant 0.000000e+00 : f32
    %98 = vector.broadcast %cst_78 : f32 to vector<8x64xf32>
    %99 = arith.subf %98, %97 : vector<8x64xf32>
    %100 = math.exp %99 : vector<8x64xf32>
    %cst_79 = arith.constant 1.000000e+00 : f32
    %101 = vector.broadcast %cst_79 : f32 to vector<8x64xf32>
    %102 = arith.addf %101, %100 : vector<8x64xf32>
    %103 = tpu.reciprocal %102 : vector<8x64xf32> -> vector<8x64xf32>
    %c0_80 = arith.constant 0 : index
    %c0_81 = arith.constant 0 : index
    %104 = vector.load %arg27[%c0_80, %c0_81] : memref<8x64xf32, #tpu.memory_space<vmem>>, vector<8x64xf32>
    tpu.vector_store %arg27[%c0_80, %c0_81], %103 {strides = array<i32>} : memref<8x64xf32, #tpu.memory_space<vmem>>, vector<8x64xf32>,
    return
  }
}

</mosaic_0001>

<bundles_post_ra>
// kernel: cvae_forward.1
= control target key start
LH: loop header
LB: loop body
LE: loop exit
PB: predicated region body
PF: predicated region fallthrough
CT: control target
= control target key end

     0   :  { %s10239_s6 = smov 1   ;;  %s10240_s10 = smov 2   ;;  %s10753_s0 = inlined_call_operand.smem [shape: u32[30], index: -1, kind: input, shape index: {}] }
   0x1   :  { %s10288_s5 = sld [smem:[%s10753_s0]]   ;;  %s10241_s14 = smov 3  }
   0x2   :  { %s10293_s9 = sld [smem:[%s10753_s0 + %s10239_s6]]   ;;  %s10242_s18 = smov 4  }
   0x3   :  { %s10298_s13 = sld [smem:[%s10753_s0 + %s10240_s10]]   ;;  %s10243_s22 = smov 5  }
   0x4   :  { %s10303_s17 = sld [smem:[%s10753_s0 + %s10241_s14]]   ;;  %s10244_s26 = smov 6  }
   0x5   :  { %s10308_s21 = sld [smem:[%s10753_s0 + %s10242_s18]]   ;;  %s10245_s30 = smov 7  }
   0x6   :  { %s10313_s25 = sld [smem:[%s10753_s0 + %s10243_s22]]   ;;  %s10246_s4 = smov 8  }
   0x7   :  { %s10318_s29 = sld [smem:[%s10753_s0 + %s10244_s26]]   ;;  %s10247_s10 = smov 9  }
   0x8   :  { %s10323_s3 = sld [smem:[%s10753_s0 + %s10245_s30]]   ;;  %s10248_s15 = smov 10  }
   0x9   :  { %10758 = sst [smem:[#allocation23_spill]] %s10298_s13  ;;  %s10249_s20 = smov 11  }
   0xa   :  { %s10328_s8 = sld [smem:[%s10753_s0 + %s10246_s4]]   ;;  %s10250_s26 = smov 12  }
   0xb   :  { %s10333_s14 = sld [smem:[%s10753_s0 + %s10247_s10]]   ;;  %s10251_s1 = smov 13  }
   0xc   :  { %s10338_s19 = sld [smem:[%s10753_s0 + %s10248_s15]]   ;;  %s10252_s7 = smov 14  }
   0xd   :  { %s10343_s24 = sld [smem:[%s10753_s0 + %s10249_s20]]   ;;  %s10253_s15 = smov 15  }
   0xe   :  { %s10348_s30 = sld [smem:[%s10753_s0 + %s10250_s26]]   ;;  %s10254_s22 = smov 16  }
   0xf   :  { %s10353_s6 = sld [smem:[%s10753_s0 + %s10251_s1]]   ;;  %s10255_s28 = smov 17  }
  0x10   :  { %s10358_s12 = sld [smem:[%s10753_s0 + %s10252_s7]]   ;;  %s10256_s7 = smov 18  }
  0x11   :  { %s10363_s20 = sld [smem:[%s10753_s0 + %s10253_s15]]   ;;  %s10257_s15 = smov 19  }
  0x12   :  { %s10368_s27 = sld [smem:[%s10753_s0 + %s10254_s22]]   ;;  %s10258_s22 = smov 20  }
  0x13   :  { %10759 = sst [smem:[#allocation24_spill]] %s10343_s24 }
  0x14   :  { %s10373_s4 = sld [smem:[%s10753_s0 + %s10255_s28]]   ;;  %s10259_s28 = smov 21  }
  0x15   :  { %10760 = sst [smem:[#allocation25_spill]] %s10353_s6 }
  0x16   :  { %10761 = sst [smem:[#allocation26_spill]] %s10358_s12 }
  0x17   :  { %10762 = sst [smem:[#allocation27_spill]] %s10363_s20 }
  0x18   :  { %10763 = sst [smem:[#allocation28_spill]] %s10368_s27 }
  0x19   :  { %s10378_s13 = sld [smem:[%s10753_s0 + %s10256_s7]]   ;;  %s10260_s7 = smov 22  }
  0x1a   :  { %10764 = sst [smem:[#allocation29_spill]] %s10373_s4 }
  0x1b   :  { %s10383_s20 = sld [smem:[%s10753_s0 + %s10257_s15]]   ;;  %s10261_s15 = smov 23  }
  0x1c   :  { %s10388_s6 = sld [smem:[%s10753_s0 + %s10258_s22]]   ;;  %s10262_s22 = smov 24  }
  0x1d   :  { %s10393_s27 = sld [smem:[%s10753_s0 + %s10259_s28]]   ;;  %s10263_s28 = smov 25  }
  0x1e   :  { %s10403_s4 = sld [smem:[%s10753_s0 + %s10261_s15]]   ;;  %s10265_s15 = smov 27  }
  0x1f   :  { %10765 = sst [smem:[#allocation30_spill]] %s10378_s13 }
  0x20   :  { %s10398_s13 = sld [smem:[%s10753_s0 + %s10260_s7]]   ;;  %s10264_s7 = smov 26  }
  0x21   :  { %s10413_s24 = sld [smem:[%s10753_s0 + %s10263_s28]]   ;;  %s10267_s28 = smov 29  }
  0x22   :  { %10766 = sst [smem:[#allocation31_spill]] %s10388_s6 }
  0x23   :  { %s10408_s6 = sld [smem:[%s10753_s0 + %s10262_s22]]   ;;  %s10266_s22 = smov 28  }
  0x24   :  { %s10423_s12 = sld [smem:[%s10753_s0 + %s10265_s15]]  }
  0x26   :  { %10767 = sst [smem:[#allocation32_spill]] %s10398_s13 }
  0x27   :  { %10769 = sst [smem:[#allocation34_spill]] %s10413_s24 }
  0x28   :  { %s10418_s13 = sld [smem:[%s10753_s0 + %s10264_s7]]  }
  0x29   :  { %10768 = sst [smem:[#allocation33_spill]] %s10408_s6 }
  0x2a   :  { %s10428_s6 = sld [smem:[%s10753_s0 + %s10266_s22]]  }
  0x2b   :  { %s10433_s24 = sld [smem:[%s10753_s0 + %s10267_s28]]  }
  0x2c   :  { %65 = vsyncpa [#allocation3], 0 }
  0x2d   :  { %66 = vsyncpa [#allocation6], 0 }
  0x2e   :  { %67 = vsyncpa [#allocation9], 0 }
  0x2f   :  { %68 = vsyncpa [#allocation12], 0 }
  0x30   :  { %69 = vsyncpa [#allocation4], 0 }
  0x31   :  { %70 = vsyncpa [#allocation15], 0  ;;  %s10268_s7 = smov [#allocation5]   ;;  %s10269_s11 = smov [#allocation8]  }
  0x32   :  { %s102_s10 = sshll.u32 %s10268_s7, 4  ;;  %s144_s15 = sshll.u32 %s10269_s11, 4  ;;  %s103_s10 = int_to_ptr.vmem [resolvable:$true] %s102_s10  ;;  %s145_s15 = int_to_ptr.vmem [resolvable:$true] %s144_s15 }
  0x33   :  { %s10055_s16 = scalar_lea.vmem %s103_s10, 16384  ;;  %p10060_p1 = scmp.lt.s32.totalorder %s103_s10, %s103_s10 }
  0x34   :  { %p10056_p0 = scmp.ne.s32.totalorder %s103_s10, %s10055_s16  ;;  %p10061_p2 = scmp.lt.s32.totalorder %s10055_s16, %s10055_s16 }
  0x36   :  { %p10062_p3 = por %p10061_p2, %p10060_p1 }
  0x38   :  { %p10063_p4 = pnand %p10062_p3, %p10056_p0 }
  0x3a   :  { %10066 = shalt.err (!%p10063_p4)
}
  0x3b   :  { %s10270_s0 = smov 256   ;;  %s10271_s18 = smov 16  }
  0x3c   :  { %108 = dma.hbm_to_vmem [thread:$0]  %s10328_s8, 16384, %s103_s10, [#allocation6], %s10270_s0, %s10270_s0, %s10271_s18  }
  0x3d   :  { %s10075_s22 = scalar_lea.vmem %s145_s15, 16384  ;;  %p10080_p6 = scmp.lt.s32.totalorder %s145_s15, %s145_s15 }
  0x3e   :  { %p10076_p5 = scmp.ne.s32.totalorder %s145_s15, %s10075_s22  ;;  %p10081_p7 = scmp.lt.s32.totalorder %s10075_s22, %s10075_s22 }
  0x40   :  { %p10082_p8 = por %p10081_p7, %p10080_p6 }
  0x42   :  { %p10083_p9 = pnand %p10082_p8, %p10076_p5 }
  0x44   :  { %10086 = shalt.err (!%p10083_p9)
}
  0x45   :  { %150 = dma.hbm_to_vmem [thread:$0]  %s10383_s20, 16384, %s145_s15, [#allocation9], %s10270_s0, %s10270_s0, %s10271_s18  }
  0x46   :  { %s10272_s23 = smov [#allocation2]   ;;  %s10273_s28 = smov [#allocation7]  }
  0x47   :  { %s88_s26 = sshll.u32 %s10272_s23, 4  ;;  %s116_s1 = sshll.u32 %s10273_s28, 4  ;;  %s89_s26 = int_to_ptr.vmem [resolvable:$true] %s88_s26  ;;  %s117_s1 = int_to_ptr.vmem [resolvable:$true] %s116_s1 }
  0x48   :  { %s10095_s2 = scalar_lea.vmem %s89_s26, 16384  ;;  %p10100_p11 = scmp.lt.s32.totalorder %s89_s26, %s89_s26 }
  0x49   :  { %p10096_p10 = scmp.ne.s32.totalorder %s89_s26, %s10095_s2  ;;  %p10101_p12 = scmp.lt.s32.totalorder %s10095_s2, %s10095_s2 }
  0x4b   :  { %p10102_p13 = por %p10101_p12, %p10100_p11 }
  0x4d   :  { %p10103_p0 = pnand %p10102_p13, %p10096_p10 }
  0x4f   :  { %10106 = shalt.err (!%p10103_p0)
}
  0x50   :  { %94 = dma.hbm_to_vmem [thread:$0]  %s10318_s29, 16384, %s89_s26, [#allocation3], %s10270_s0, %s10270_s0, %s10271_s18  }
  0x51   :  { %s10115_s8 = scalar_lea.vmem %s117_s1, 16384  ;;  %p10120_p2 = scmp.lt.s32.totalorder %s117_s1, %s117_s1 }
  0x52   :  { %p10116_p1 = scmp.ne.s32.totalorder %s117_s1, %s10115_s8  ;;  %p10121_p3 = scmp.lt.s32.totalorder %s10115_s8, %s10115_s8 }
  0x54   :  { %p10122_p4 = por %p10121_p3, %p10120_p2 }
  0x56   :  { %p10123_p5 = pnand %p10122_p4, %p10116_p1 }
  0x58   :  { %10126 = shalt.err (!%p10123_p5)
}
  0x59   :  { %122 = dma.hbm_to_vmem [thread:$0]  %s10338_s19, 16384, %s117_s1, [#allocation6], %s10270_s0, %s10270_s0, %s10271_s18  }
  0x5a   :  { %s10274_s20 = smov [#allocation10]   ;;  %s10275_s10 = smov [#allocation11]  }
  0x5b   :  { %s158_s7 = sshll.u32 %s10274_s20, 4  ;;  %s172_s11 = sshll.u32 %s10275_s10, 4  ;;  %s159_s7 = int_to_ptr.vmem [resolvable:$true] %s158_s7  ;;  %s173_s11 = int_to_ptr.vmem [resolvable:$true] %s172_s11 }
  0x5c   :  { %s10135_s15 = scalar_lea.vmem %s159_s7, 16384  ;;  %p10140_p7 = scmp.lt.s32.totalorder %s159_s7, %s159_s7 }
  0x5d   :  { %p10136_p6 = scmp.ne.s32.totalorder %s159_s7, %s10135_s15  ;;  %p10141_p8 = scmp.lt.s32.totalorder %s10135_s15, %s10135_s15 }
  0x5f   :  { %p10142_p9 = por %p10141_p8, %p10140_p7 }
  0x61   :  { %p10143_p10 = pnand %p10142_p9, %p10136_p6 }
  0x63   :  { %10146 = shalt.err (!%p10143_p10)
}
  0x64   :  { %164 = dma.hbm_to_vmem [thread:$0]  %s10393_s27, 16384, %s159_s7, [#allocation9], %s10270_s0, %s10270_s0, %s10271_s18  }
  0x65   :  { %s10155_s29 = scalar_lea.vmem %s173_s11, 16384  ;;  %p10160_p12 = scmp.lt.s32.totalorder %s173_s11, %s173_s11 }
  0x66   :  { %p10156_p11 = scmp.ne.s32.totalorder %s173_s11, %s10155_s29  ;;  %p10161_p13 = scmp.lt.s32.totalorder %s10155_s29, %s10155_s29 }
  0x68   :  { %p10162_p0 = por %p10161_p13, %p10160_p12 }
  0x6a   :  { %p10163_p1 = pnand %p10162_p0, %p10156_p11 }
  0x6c   :  { %10166 = shalt.err (!%p10163_p1)
}
  0x6d   :  { %178 = dma.hbm_to_vmem [thread:$0]  %s10403_s4, 16384, %s173_s11, [#allocation12], %s10270_s0, %s10270_s0, %s10271_s18  }
  0x6e   :  { %10227 = dma.done.wait [#allocation3], 16384  }
  0x6f   :  { %10228 = vsyncadd [#allocation3], 4294950912 }
  0x70   :  { %10229 = dma.done.wait [#allocation6], 32768  }
  0x71   :  { %10230 = vsyncadd [#allocation6], 4294934528 }
  0x72   :  { %10231 = dma.done.wait [#allocation9], 32768  }
  0x73   :  { %10232 = vsyncadd [#allocation9], 4294934528 }
  0x74   :  { %10233 = dma.done.wait [#allocation12], 16384  }
  0x75   :  { %10234 = vsyncadd [#allocation12], 4294950912  ;;  %v10276_v0 = vmov 0   ;;  %v224_v1 = vld [vmem:[%s10308_s21] sm:$0xff]  ;;  %vm240_vm0 = vcmask 1043456   ;;  %v225_v2 = vld [vmem:[%s10308_s21 + $0x8] sm:$0xff] }
  0x76   :  { %285 = vmatprep.mubr.bf16.mxu0 %v10276_v0  ;;  %326 = vmatprep.mubr.bf16.mxu1 %v10276_v0  ;;  %v205_v3 = vld [vmem:[%s10293_s9] sm:$0xff]  ;;  %v7676_v4 = vcombine.high %v224_v1, %v224_v1  ;;  %v7678_v5 = vcombine.high %v225_v2, %v225_v2  ;;  %v7675_v6 = vcombine.low %v224_v1, %v224_v1  ;;  %v8764_v13 = vld [vmem:[%s10303_s17 + $0x6c] ss:$16 sps:$4 sm:$0xff]   ;;  %vm236_vm1 = vcmask 64512   ;;  %v8762_v14 = vld [vmem:[%s10303_s17 + $0x68] ss:$16 sps:$4 sm:$0xff]  }
  0x77   :  { %v7677_v7 = vcombine.low %v225_v2, %v225_v2  ;;  %v8761_v8 = vld [vmem:[%s10303_s17 + $0x64] ss:$16 sps:$4 sm:$0xff]   ;;  %v10469_v11 = vpack.c.bf16 %v205_v3, %v205_v3  ;;  %v8759_v12 = vld [vmem:[%s10303_s17 + $0x60] ss:$16 sps:$4 sm:$0xff]   ;;  %v8770_v16 = vld [vmem:[%s10303_s17 + $0x4c] ss:$16 sps:$4 sm:$0xff]  }
  0x78   :  { %7679 = vmatprep.subr.msk.bf16.mxu0 %vm240_vm0, %v7676_v4  ;;  %7681 = vmatprep.subr.msk.bf16.mxu1 %vm240_vm0, %v7678_v5  ;;  %v242_v9 = vsel %vm240_vm0, %v7675_v6, 0  ;;  %v8767_v15 = vld [vmem:[%s10303_s17 + $0x44] ss:$16 sps:$4 sm:$0xff]   ;;  %v8765_v17 = vld [vmem:[%s10303_s17 + $0x40] ss:$16 sps:$4 sm:$0xff]   ;;  %vm415_vm2 = vcmask 523264  }
  0x79   :  { %v248_v10 = vsel %vm240_vm0, %v7677_v7, 0  ;;  %268 = vmatpush1.bf16.msra.mxu0 %v242_v9  ;;  %v8768_v18 = vld [vmem:[%s10303_s17 + $0x48] ss:$16 sps:$4 sm:$0xff]   ;;  %v8773_v19 = vld [vmem:[%s10303_s17 + $0x24] ss:$16 sps:$4 sm:$0xff]   ;;  %s10771_s9 = sld [smem:[#allocation24_spill]] }
  0x7a   :  { %309 = vmatpush1.bf16.msra.mxu1 %v248_v10  ;;  %427 = vmatprep.subr.bf16.mxu0 %v8761_v8  ;;  %v8776_v20 = vld [vmem:[%s10303_s17 + $0x2c] ss:$16 sps:$4 sm:$0xff]   ;;  %v8771_v21 = vld [vmem:[%s10303_s17 + $0x20] ss:$16 sps:$4 sm:$0xff]   ;;  %v8774_v22 = vld [vmem:[%s10303_s17 + $0x28] ss:$16 sps:$4 sm:$0xff]  }
  0x7b   :  { %468 = vmatprep.subr.bf16.mxu1 %v8764_v13  ;;  %v8779_v23 = vld [vmem:[%s10303_s17 + $0x4] ss:$16 sps:$4 sm:$0xff]   ;;  %v8782_v24 = vld [vmem:[%s10303_s17 + $0xc] ss:$16 sps:$4 sm:$0xff]   ;;  %v8777_v25 = vld [vmem:[%s10303_s17] ss:$16 sps:$4 sm:$0xff]  }
  0x7c   :  { %7680 = vmatmul.mubr.msk.bf16.vlgmr.msra.gmra.mxu0 %vm236_vm1, %v10469_v11  ;;  %v8780_v26 = vld [vmem:[%s10303_s17 + $0x8] ss:$16 sps:$4 sm:$0xff]   ;;  %v204_v27 = vld [vmem:[%s10288_s5] sm:$0xff]  ;;  %s10770_s5 = sld [smem:[#allocation26_spill]]  ;;  %vm4107_vm3 = vcmask 130048   ;;  %s10277_s0 = smov [#allocation14]  }
  0x7d   :  { %7682 = vmatmul.mubr.msk.bf16.vlgmr.msra.gmra.mxu1 %vm236_vm1, %v10469_v11  ;;  %428 = vmatpush1.bf16.msra.mxu0 %v8759_v12  ;;  %v8785_v28 = vld [vmem:[#allocation2 + $0xe4] ss:$16 sps:$4 sm:$0xff]   ;;  %v207_v30 = vpack.c.bf16 %v204_v27, %v204_v27  ;;  %v8783_v31 = vld [vmem:[#allocation2 + $0xe0] ss:$16 sps:$4 sm:$0xff]   ;;  %s10772_s17 = sld [smem:[#allocation29_spill]]  ;;  %s7617_s18 = sshll.u32 %s10277_s0, 4  ;;  %s7618_s18 = int_to_ptr.vmem [resolvable:$true] %s7617_s18 }
  0x7e   :  { %469 = vmatpush1.bf16.msra.mxu1 %v8762_v14  ;;  %429 = vmatprep.subr.bf16.mxu0 %v8767_v15  ;;  %v8788_v29 = vld [vmem:[#allocation2 + $0x2e4] ss:$16 sps:$4 sm:$0xff]   ;;  %v8786_v32 = vld [vmem:[#allocation2 + $0x2e0] ss:$16 sps:$4 sm:$0xff]   ;;  %s10773_s21 = sld [smem:[#allocation28_spill]]  ;;  %s10167_s22 = scalar_lea.vmem %s7618_s18, 128 }
  0x7f   :  { %470 = vmatprep.subr.bf16.mxu1 %v8770_v16  ;;  %451 = vmatprep.mubr.bf16.mxu0 %v10276_v0  ;;  %v8791_v33 = vld [vmem:[#allocation2 + $0xc4] ss:$16 sps:$4 sm:$0xff]   ;;  %v8789_v35 = vld [vmem:[#allocation2 + $0xc0] ss:$16 sps:$4 sm:$0xff]   ;;  %s10777_s19 = sld [smem:[#allocation30_spill]]  ;;  %p10168_p2 = scmp.ne.s32.totalorder %s7618_s18, %s10167_s22 }
  0x80   :  { %492 = vmatprep.mubr.bf16.mxu1 %v10276_v0  ;;  %v8794_v34 = vld [vmem:[#allocation2 + $0x2c4] ss:$16 sps:$4 sm:$0xff]   ;;  %v8792_v36 = vld [vmem:[#allocation2 + $0x2c0] ss:$16 sps:$4 sm:$0xff]   ;;  %s10779_s27 = sld [smem:[#allocation32_spill]]  ;;  %p10172_p3 = scmp.lt.s32.totalorder %s7618_s18, %s7618_s18 }
  0x81   :  { %430 = vmatpush1.bf16.msra.mxu0 %v8765_v17  ;;  %v8797_v37 = vld [vmem:[#allocation2 + $0xa4] ss:$16 sps:$4 sm:$0xff]   ;;  %v8795_v39 = vld [vmem:[#allocation2 + $0xa0] ss:$16 sps:$4 sm:$0xff]   ;;  %s10780_s4 = sld [smem:[#allocation34_spill]]  ;;  %p10173_p4 = scmp.lt.s32.totalorder %s10167_s22, %s10167_s22 }
  0x82   :  { %471 = vmatpush1.bf16.msra.mxu1 %v8768_v18  ;;  %431 = vmatprep.subr.bf16.mxu0 %v8773_v19  ;;  %v8800_v38 = vld [vmem:[#allocation2 + $0x2a4] ss:$16 sps:$4 sm:$0xff]   ;;  %v8798_v40 = vld [vmem:[#allocation2 + $0x2a0] ss:$16 sps:$4 sm:$0xff]   ;;  %s10781_s16 = sld [smem:[#allocation33_spill]] }
  0x83   :  { %472 = vmatprep.subr.bf16.mxu1 %v8776_v20  ;;  %v8803_v41 = vld [vmem:[#allocation2 + $0x84] ss:$16 sps:$4 sm:$0xff]   ;;  %v8801_v43 = vld [vmem:[#allocation2 + $0x80] ss:$16 sps:$4 sm:$0xff]   ;;  %p10174_p5 = por %p10173_p4, %p10172_p3 }
  0x84   :  { %v8806_v42 = vld [vmem:[#allocation2 + $0x284] ss:$16 sps:$4 sm:$0xff]   ;;  %v8804_v44 = vld [vmem:[#allocation2 + $0x280] ss:$16 sps:$4 sm:$0xff]  }
  0x85   :  { %432 = vmatpush1.bf16.msra.mxu0 %v8771_v21  ;;  %v8809_v45 = vld [vmem:[#allocation2 + $0x64] ss:$16 sps:$4 sm:$0xff]   ;;  %v8807_v47 = vld [vmem:[#allocation2 + $0x60] ss:$16 sps:$4 sm:$0xff]   ;;  %p10175_p6 = pnand %p10174_p5, %p10168_p2 }
  0x86   :  { %473 = vmatpush1.bf16.msra.mxu1 %v8774_v22  ;;  %433 = vmatprep.subr.bf16.mxu0 %v8779_v23  ;;  %v8812_v46 = vld [vmem:[#allocation2 + $0x264] ss:$16 sps:$4 sm:$0xff]   ;;  %v8810_v48 = vld [vmem:[#allocation2 + $0x260] ss:$16 sps:$4 sm:$0xff]  }
  0x87   :  { %474 = vmatprep.subr.bf16.mxu1 %v8782_v24  ;;  %v8815_v49 = vld [vmem:[#allocation2 + $0x44] ss:$16 sps:$4 sm:$0xff]   ;;  %v8813_v51 = vld [vmem:[#allocation2 + $0x40] ss:$16 sps:$4 sm:$0xff]  }
  0x88   :  { %v8818_v50 = vld [vmem:[#allocation2 + $0x244] ss:$16 sps:$4 sm:$0xff]   ;;  %v8816_v52 = vld [vmem:[#allocation2 + $0x240] ss:$16 sps:$4 sm:$0xff]  }
  0x89   :  { %434 = vmatpush1.bf16.msra.mxu0 %v8777_v25  ;;  %v8821_v53 = vld [vmem:[#allocation2 + $0x24] ss:$16 sps:$4 sm:$0xff]   ;;  %v8819_v55 = vld [vmem:[#allocation2 + $0x20] ss:$16 sps:$4 sm:$0xff]  }
  0x8a   :  { %475 = vmatpush1.bf16.msra.mxu1 %v8780_v26  ;;  %1325 = vmatprep.subr.bf16.mxu0 %v8785_v28  ;;  %v8824_v54 = vld [vmem:[#allocation2 + $0x224] ss:$16 sps:$4 sm:$0xff]   ;;  %v8822_v56 = vld [vmem:[#allocation2 + $0x220] ss:$16 sps:$4 sm:$0xff]  }
  0x8b   :  { %1366 = vmatprep.subr.bf16.mxu1 %v8788_v29  ;;  %v8827_v57 = vld [vmem:[#allocation2 + $0x4] ss:$16 sps:$4 sm:$0xff]   ;;  %v8825_v59 = vld [vmem:[#allocation2] ss:$16 sps:$4 sm:$0xff]  }
  0x8c   :  { %7699 = vmatmul.mubr.msk.bf16.vlgmr.msra.gmra.mxu0 %vm415_vm2, %v207_v30  ;;  %v8830_v58 = vld [vmem:[#allocation2 + $0x204] ss:$16 sps:$4 sm:$0xff]   ;;  %v8828_v60 = vld [vmem:[#allocation2 + $0x200] ss:$16 sps:$4 sm:$0xff]  }
  0x8d   :  { %7700 = vmatmul.mubr.msk.bf16.vlgmr.msra.gmra.mxu1 %vm415_vm2, %v207_v30  ;;  %1326 = vmatpush1.bf16.msra.mxu0 %v8783_v31  ;;  %v8833_v61 = vld [vmem:[#allocation2 + $0x1e4] ss:$16 sps:$4 sm:$0xff]   ;;  %v8831_v63 = vld [vmem:[#allocation2 + $0x1e0] ss:$16 sps:$4 sm:$0xff]   ;;  %v8881_v31 = vld [vmem:[#allocation2 + $0xec] ss:$16 sps:$4 sm:$0xff]  }
  0x8e   :  { %1367 = vmatpush1.bf16.msra.mxu1 %v8786_v32  ;;  %1327 = vmatprep.subr.bf16.mxu0 %v8791_v33  ;;  %v8836_v62 = vld [vmem:[#allocation2 + $0x3e4] ss:$16 sps:$4 sm:$0xff]   ;;  %v8834_v1 = vld [vmem:[#allocation2 + $0x3e0] ss:$16 sps:$4 sm:$0xff]   ;;  %v8884_v32 = vld [vmem:[#allocation2 + $0x2ec] ss:$16 sps:$4 sm:$0xff]  }
  0x8f   :  { %1368 = vmatprep.subr.bf16.mxu1 %v8794_v34  ;;  %v8839_v2 = vld [vmem:[#allocation2 + $0x1c4] ss:$16 sps:$4 sm:$0xff]   ;;  %v8837_v4 = vld [vmem:[#allocation2 + $0x1c0] ss:$16 sps:$4 sm:$0xff]  }
  0x90   :  { %v8842_v3 = vld [vmem:[#allocation2 + $0x3c4] ss:$16 sps:$4 sm:$0xff]   ;;  %v8840_v5 = vld [vmem:[#allocation2 + $0x3c0] ss:$16 sps:$4 sm:$0xff]  }
  0x91   :  { %1328 = vmatpush1.bf16.msra.mxu0 %v8789_v35  ;;  %v8845_v6 = vld [vmem:[#allocation2 + $0x1a4] ss:$16 sps:$4 sm:$0xff]   ;;  %v8843_v8 = vld [vmem:[#allocation2 + $0x1a0] ss:$16 sps:$4 sm:$0xff]   ;;  %v503_v35 = vlaneseq }
  0x92   :  { %1369 = vmatpush1.bf16.msra.mxu1 %v8792_v36  ;;  %1329 = vmatprep.subr.bf16.mxu0 %v8797_v37  ;;  %v8848_v7 = vld [vmem:[#allocation2 + $0x3a4] ss:$16 sps:$4 sm:$0xff]   ;;  %v8846_v9 = vld [vmem:[#allocation2 + $0x3a0] ss:$16 sps:$4 sm:$0xff]  }
  0x93   :  { %1370 = vmatprep.subr.bf16.mxu1 %v8800_v38  ;;  %v8851_v10 = vld [vmem:[#allocation2 + $0x184] ss:$16 sps:$4 sm:$0xff]   ;;  %v8849_v13 = vld [vmem:[#allocation2 + $0x180] ss:$16 sps:$4 sm:$0xff]  }
  0x94   :  { %v8854_v12 = vld [vmem:[#allocation2 + $0x384] ss:$16 sps:$4 sm:$0xff]   ;;  %v8852_v14 = vld [vmem:[#allocation2 + $0x380] ss:$16 sps:$4 sm:$0xff]  }
  0x95   :  { %1330 = vmatpush1.bf16.msra.mxu0 %v8795_v39  ;;  %v8857_v15 = vld [vmem:[#allocation2 + $0x164] ss:$16 sps:$4 sm:$0xff]   ;;  %v8855_v17 = vld [vmem:[#allocation2 + $0x160] ss:$16 sps:$4 sm:$0xff]  }
  0x96   :  { %1371 = vmatpush1.bf16.msra.mxu1 %v8798_v40  ;;  %1331 = vmatprep.subr.bf16.mxu0 %v8803_v41  ;;  %v8860_v16 = vld [vmem:[#allocation2 + $0x364] ss:$16 sps:$4 sm:$0xff]   ;;  %v8858_v18 = vld [vmem:[#allocation2 + $0x360] ss:$16 sps:$4 sm:$0xff]   ;;  %v504_v40 = vshrl.u32 %v503_v35, 7 }
  0x97   :  { %1372 = vmatprep.subr.bf16.mxu1 %v8806_v42  ;;  %v8863_v19 = vld [vmem:[#allocation2 + $0x144] ss:$16 sps:$4 sm:$0xff]   ;;  %v8861_v21 = vld [vmem:[#allocation2 + $0x140] ss:$16 sps:$4 sm:$0xff]   ;;  %v8912_v35 = vld [vmem:[#allocation2 + $0x248] ss:$16 sps:$4 sm:$0xff]  }
  0x98   :  { %v8866_v20 = vld [vmem:[#allocation2 + $0x344] ss:$16 sps:$4 sm:$0xff]   ;;  %v8864_v22 = vld [vmem:[#allocation2 + $0x340] ss:$16 sps:$4 sm:$0xff]  }
  0x99   :  { %1332 = vmatpush1.bf16.msra.mxu0 %v8801_v43  ;;  %v8869_v23 = vld [vmem:[#allocation2 + $0x124] ss:$16 sps:$4 sm:$0xff]   ;;  %v8867_v25 = vld [vmem:[#allocation2 + $0x120] ss:$16 sps:$4 sm:$0xff]   ;;  %v10495_v43 = vsub.s32 0, %v504_v40 }
  0x9a   :  { %1373 = vmatpush1.bf16.msra.mxu1 %v8804_v44  ;;  %1333 = vmatprep.subr.bf16.mxu0 %v8809_v45  ;;  %v8872_v24 = vld [vmem:[#allocation2 + $0x324] ss:$16 sps:$4 sm:$0xff]   ;;  %v8870_v26 = vld [vmem:[#allocation2 + $0x320] ss:$16 sps:$4 sm:$0xff]   ;;  %v10497_v44 = vsub.s32 2, %v504_v40 }
  0x9b   :  { %1374 = vmatprep.subr.bf16.mxu1 %v8812_v46  ;;  %v8875_v27 = vld [vmem:[#allocation2 + $0x104] ss:$16 sps:$4 sm:$0xff]   ;;  %v8873_v29 = vld [vmem:[#allocation2 + $0x100] ss:$16 sps:$4 sm:$0xff]   ;;  %v10500_v46 = vsub.s32 1, %v504_v40 }
  0x9c   :  { %v8878_v28 = vld [vmem:[#allocation2 + $0x304] ss:$16 sps:$4 sm:$0xff]   ;;  %v8876_v30 = vld [vmem:[#allocation2 + $0x300] ss:$16 sps:$4 sm:$0xff]  }
  0x9d   :  { %1334 = vmatpush1.bf16.msra.mxu0 %v8807_v47  ;;  %v501_v45 = vld [vmem:[%s10313_s25] sm:$0xf]  ;;  %v10502_v47 = vsub.s32 3, %v504_v40  ;;  %v8923_v40 = vld [vmem:[#allocation2 + $0xc] ss:$16 sps:$4 sm:$0xff]   ;;  %s10774_s25 = sld [smem:[#allocation25_spill]] }
  0x9e   :  { %1375 = vmatpush1.bf16.msra.mxu1 %v8810_v48  ;;  %1335 = vmatprep.subr.bf16.mxu0 %v8815_v49  ;;  %v506_v48 = vrot.slane %v501_v45, %v10495_v43  ;;  %v514_v49 = vrot.slane %v501_v45, %v10497_v44 }
  0x9f   :  { %1376 = vmatprep.subr.bf16.mxu1 %v8818_v50 }
  0xa1   :  { %1336 = vmatpush1.bf16.msra.mxu0 %v8813_v51 }
  0xa2   :  { %1377 = vmatpush1.bf16.msra.mxu1 %v8816_v52  ;;  %1337 = vmatprep.subr.bf16.mxu0 %v8821_v53 }
  0xa3   :  { %1378 = vmatprep.subr.bf16.mxu1 %v8824_v54  ;;  %v510_v54 = vrot.slane %v501_v45, %v10500_v46 }
  0xa5   :  { %1338 = vmatpush1.bf16.msra.mxu0 %v8819_v55  ;;  %v518_v55 = vrot.slane %v501_v45, %v10502_v47  ;;  %v8924_v45 = vld [vmem:[#allocation2 + $0x208] ss:$16 sps:$4 sm:$0xff]  }
  0xa6   :  { %1379 = vmatpush1.bf16.msra.mxu1 %v8822_v56  ;;  %1339 = vmatprep.subr.bf16.mxu0 %v8827_v57 }
  0xa7   :  { %1380 = vmatprep.subr.bf16.mxu1 %v8830_v58 }
  0xa9   :  { %1340 = vmatpush1.bf16.msra.mxu0 %v8825_v59 }
  0xaa   :  { %1381 = vmatpush1.bf16.msra.mxu1 %v8828_v60  ;;  %1341 = vmatprep.subr.bf16.mxu0 %v8833_v61 }
  0xab   :  { %1382 = vmatprep.subr.bf16.mxu1 %v8836_v62 }
  0xad   :  { %1342 = vmatpush2.bf16.msra.mxu0 %v8831_v63 }
  0xae   :  { %1383 = vmatpush2.bf16.msra.mxu1 %v8834_v1  ;;  %1343 = vmatprep.subr.bf16.mxu0 %v8839_v2 }
  0xaf   :  { %1384 = vmatprep.subr.bf16.mxu1 %v8842_v3 }
  0xb1   :  { %1344 = vmatpush2.bf16.msra.mxu0 %v8837_v4 }
  0xb2   :  { %1385 = vmatpush2.bf16.msra.mxu1 %v8840_v5  ;;  %1345 = vmatprep.subr.bf16.mxu0 %v8845_v6 }
  0xb3   :  { %1386 = vmatprep.subr.bf16.mxu1 %v8848_v7 }
  0xb5   :  { %1346 = vmatpush2.bf16.msra.mxu0 %v8843_v8 }
  0xb6   :  { %1387 = vmatpush2.bf16.msra.mxu1 %v8846_v9  ;;  %1347 = vmatprep.subr.bf16.mxu0 %v8851_v10  ;;  %v8879_v9 = vld [vmem:[#allocation2 + $0xe8] ss:$16 sps:$4 sm:$0xff]  }
  0xb7   :  { %1388 = vmatprep.subr.bf16.mxu1 %v8854_v12  ;;  %v8882_v10 = vld [vmem:[#allocation2 + $0x2e8] ss:$16 sps:$4 sm:$0xff]  }
  0xb9   :  { %1348 = vmatpush2.bf16.msra.mxu0 %v8849_v13 }
  0xba   :  { %1389 = vmatpush2.bf16.msra.mxu1 %v8852_v14  ;;  %1349 = vmatprep.subr.bf16.mxu0 %v8857_v15  ;;  %v8887_v14 = vld [vmem:[#allocation2 + $0xcc] ss:$16 sps:$4 sm:$0xff]  }
  0xbb   :  { %1390 = vmatprep.subr.bf16.mxu1 %v8860_v16  ;;  %v8890_v15 = vld [vmem:[#allocation2 + $0x2cc] ss:$16 sps:$4 sm:$0xff]  }
  0xbd   :  { %1350 = vmatpush2.bf16.msra.mxu0 %v8855_v17 }
  0xbe   :  { %1391 = vmatpush2.bf16.msra.mxu1 %v8858_v18  ;;  %1351 = vmatprep.subr.bf16.mxu0 %v8863_v19  ;;  %v8885_v18 = vld [vmem:[#allocation2 + $0xc8] ss:$16 sps:$4 sm:$0xff]  }
  0xbf   :  { %1392 = vmatprep.subr.bf16.mxu1 %v8866_v20  ;;  %v8888_v19 = vld [vmem:[#allocation2 + $0x2c8] ss:$16 sps:$4 sm:$0xff]   ;;  %v8893_v20 = vld [vmem:[#allocation2 + $0xac] ss:$16 sps:$4 sm:$0xff]  }
  0xc1   :  { %1352 = vmatpush2.bf16.msra.mxu0 %v8861_v21  ;;  %v8896_v21 = vld [vmem:[#allocation2 + $0x2ac] ss:$16 sps:$4 sm:$0xff]  }
  0xc2   :  { %1393 = vmatpush2.bf16.msra.mxu1 %v8864_v22  ;;  %1353 = vmatprep.subr.bf16.mxu0 %v8869_v23  ;;  %v8891_v22 = vld [vmem:[#allocation2 + $0xa8] ss:$16 sps:$4 sm:$0xff]  }
  0xc3   :  { %1394 = vmatprep.subr.bf16.mxu1 %v8872_v24  ;;  %v8894_v23 = vld [vmem:[#allocation2 + $0x2a8] ss:$16 sps:$4 sm:$0xff]   ;;  %v8899_v24 = vld [vmem:[#allocation2 + $0x8c] ss:$16 sps:$4 sm:$0xff]  }
  0xc5   :  { %1354 = vmatpush2.bf16.msra.mxu0 %v8867_v25  ;;  %v8902_v25 = vld [vmem:[#allocation2 + $0x28c] ss:$16 sps:$4 sm:$0xff]  }
  0xc6   :  { %1395 = vmatpush2.bf16.msra.mxu1 %v8870_v26  ;;  %1355 = vmatprep.subr.bf16.mxu0 %v8875_v27  ;;  %v8897_v26 = vld [vmem:[#allocation2 + $0x88] ss:$16 sps:$4 sm:$0xff]  }
  0xc7   :  { %1396 = vmatprep.subr.bf16.mxu1 %v8878_v28  ;;  %v8900_v27 = vld [vmem:[#allocation2 + $0x288] ss:$16 sps:$4 sm:$0xff]   ;;  %v8905_v28 = vld [vmem:[#allocation2 + $0x6c] ss:$16 sps:$4 sm:$0xff]  }
  0xc9   :  { %1356 = vmatpush2.bf16.msra.mxu0 %v8873_v29  ;;  %v8908_v29 = vld [vmem:[#allocation2 + $0x26c] ss:$16 sps:$4 sm:$0xff]  }
  0xca   :  { %1397 = vmatpush2.bf16.msra.mxu1 %v8876_v30  ;;  %1407 = vmatprep.subr.bf16.mxu0 %v8881_v31  ;;  %v8903_v30 = vld [vmem:[#allocation2 + $0x68] ss:$16 sps:$4 sm:$0xff]  }
  0xcb   :  { %1448 = vmatprep.subr.bf16.mxu1 %v8884_v32  ;;  %v8906_v31 = vld [vmem:[#allocation2 + $0x268] ss:$16 sps:$4 sm:$0xff]   ;;  %v8911_v32 = vld [vmem:[#allocation2 + $0x4c] ss:$16 sps:$4 sm:$0xff]  }
 0x13c   :  { %v287_v33 = vpop.f32.mrf.mxu0 }
 0x13d   :  { %v328_v34 = vpop.f32.mrf.mxu1 }
 0x13e   :  { %v289_v36 = vpop.f32.mrf.mxu0 }
 0x13f   :  { %v330_v37 = vpop.f32.mrf.mxu1 }
 0x140   :  { %v291_v38 = vpop.f32.mrf.mxu0 }
 0x141   :  { %v332_v39 = vpop.f32.mrf.mxu1  ;;  %v8915_v38 = vld [vmem:[#allocation2 + $0x28] ss:$16 sps:$4 sm:$0xff]  }
 0x142   :  { %v292_v41 = vpop.f32.mrf.mxu0  ;;  %v8918_v39 = vld [vmem:[#allocation2 + $0x228] ss:$16 sps:$4 sm:$0xff]  }
 0x143   :  { %v333_v42 = vpop.f32.mrf.mxu1  ;;  %v8926_v41 = vld [vmem:[#allocation2 + $0x20c] ss:$16 sps:$4 sm:$0xff]  }
 0x144   :  { %v8921_v42 = vld [vmem:[#allocation2 + $0x8] ss:$16 sps:$4 sm:$0xff]  }
 0x14c   :  { %v453_v50 = vpop.f32.mrf.mxu0 }
 0x14d   :  { %v494_v51 = vpop.f32.mrf.mxu1  ;;  %v454_v52 = vadd.f32 %v453_v50, %v287_v33  ;;  %v8914_v33 = vld [vmem:[#allocation2 + $0x24c] ss:$16 sps:$4 sm:$0xff]   ;;  %v8927_v50 = vld [vmem:[#allocation2 + $0x1e8] ss:$16 sps:$4 sm:$0xff]  }
 0x14e   :  { %v495_v53 = vadd.f32 %v494_v51, %v328_v34  ;;  %v455_v56 = vpop.f32.mrf.mxu0  ;;  %v8909_v34 = vld [vmem:[#allocation2 + $0x48] ss:$16 sps:$4 sm:$0xff]  }
 0x14f   :  { %v496_v57 = vpop.f32.mrf.mxu1  ;;  %v523_v58 = vadd.f32 %v506_v48, %v454_v52  ;;  %v456_v60 = vadd.f32 %v455_v56, %v289_v36  ;;  %v8917_v36 = vld [vmem:[#allocation2 + $0x2c] ss:$16 sps:$4 sm:$0xff]   ;;  %v8930_v51 = vld [vmem:[#allocation2 + $0x3e8] ss:$16 sps:$4 sm:$0xff]  }
 0x150   :  { %v525_v59 = vadd.f32 %v514_v49, %v495_v53  ;;  %v497_v61 = vadd.f32 %v496_v57, %v330_v37  ;;  %v457_v62 = vpop.f32.mrf.mxu0  ;;  %v8920_v37 = vld [vmem:[#allocation2 + $0x22c] ss:$16 sps:$4 sm:$0xff]  }
 0x151   :  { %v498_v63 = vpop.f32.mrf.mxu1  ;;  %v527_v1 = vmax.f32 %v523_v58, 0.0  ;;  %v524_v3 = vadd.f32 %v510_v54, %v456_v60  ;;  %v8929_v48 = vld [vmem:[#allocation2 + $0x1ec] ss:$16 sps:$4 sm:$0xff]   ;;  %v8933_v54 = vld [vmem:[#allocation2 + $0x1c8] ss:$16 sps:$4 sm:$0xff]  }
 0x152   :  { %v529_v2 = vmax.f32 %v525_v59, 0.0  ;;  %v526_v4 = vadd.f32 %v518_v55, %v497_v61  ;;  %v458_v5 = vpop.f32.mrf.mxu0  ;;  %v8932_v49 = vld [vmem:[#allocation2 + $0x3ec] ss:$16 sps:$4 sm:$0xff]   ;;  %v8936_v55 = vld [vmem:[#allocation2 + $0x3c8] ss:$16 sps:$4 sm:$0xff]  }
 0x153   :  { %v499_v6 = vpop.f32.mrf.mxu1  ;;  %v528_v7 = vmax.f32 %v524_v3, 0.0  ;;  %v10508_v16 = vpack.c.bf16 %v527_v1, %v527_v1  ;;  %v8935_v52 = vld [vmem:[#allocation2 + $0x1cc] ss:$16 sps:$4 sm:$0xff]   ;;  %v8939_v58 = vld [vmem:[#allocation2 + $0x1a8] ss:$16 sps:$4 sm:$0xff]  }
 0x154   :  { %v530_v8 = vmax.f32 %v526_v4, 0.0  ;;  %v10510_v17 = vpack.c.bf16 %v529_v2, %v529_v2  ;;  %v8938_v53 = vld [vmem:[#allocation2 + $0x3cc] ss:$16 sps:$4 sm:$0xff]   ;;  %v8942_v59 = vld [vmem:[#allocation2 + $0x3a8] ss:$16 sps:$4 sm:$0xff]  }
 0x155   :  { %v532_v12 = vpack.c.bf16 %v528_v7, %v528_v7  ;;  %v8941_v56 = vld [vmem:[#allocation2 + $0x1ac] ss:$16 sps:$4 sm:$0xff]   ;;  %v8945_v62 = vld [vmem:[#allocation2 + $0x188] ss:$16 sps:$4 sm:$0xff]  }
 0x156   :  { %v534_v13 = vpack.c.bf16 %v530_v8, %v530_v8  ;;  %v8944_v57 = vld [vmem:[#allocation2 + $0x3ac] ss:$16 sps:$4 sm:$0xff]   ;;  %v8948_v63 = vld [vmem:[#allocation2 + $0x388] ss:$16 sps:$4 sm:$0xff]  }
 0x157   :  { %1357 = vmatprep.mubr.bf16.mxu0 %v532_v12  ;;  %v8947_v60 = vld [vmem:[#allocation2 + $0x18c] ss:$16 sps:$4 sm:$0xff]   ;;  %v8951_v3 = vld [vmem:[#allocation2 + $0x168] ss:$16 sps:$4 sm:$0xff]  }
 0x158   :  { %1398 = vmatprep.mubr.bf16.mxu1 %v534_v13  ;;  %1358 = vmatmul.mubr.bf16.vlgmr.msra.gmra.mxu0 %v10508_v16  ;;  %v8950_v61 = vld [vmem:[#allocation2 + $0x38c] ss:$16 sps:$4 sm:$0xff]   ;;  %v8954_v4 = vld [vmem:[#allocation2 + $0x368] ss:$16 sps:$4 sm:$0xff]  }
 0x159   :  { %1399 = vmatmul.mubr.bf16.vlgmr.msra.gmra.mxu1 %v10510_v17  ;;  %1408 = vmatpush1.bf16.msra.mxu0 %v8879_v9  ;;  %v8953_v1 = vld [vmem:[#allocation2 + $0x16c] ss:$16 sps:$4 sm:$0xff]   ;;  %v8957_v7 = vld [vmem:[#allocation2 + $0x148] ss:$16 sps:$4 sm:$0xff]  }
 0x15a   :  { %1449 = vmatpush1.bf16.msra.mxu1 %v8882_v10  ;;  %1439 = vmatprep.mubr.bf16.mxu0 %v532_v12  ;;  %v8956_v2 = vld [vmem:[#allocation2 + $0x36c] ss:$16 sps:$4 sm:$0xff]   ;;  %v8960_v8 = vld [vmem:[#allocation2 + $0x348] ss:$16 sps:$4 sm:$0xff]  }
 0x15b   :  { %1480 = vmatprep.mubr.bf16.mxu1 %v534_v13  ;;  %1409 = vmatprep.subr.bf16.mxu0 %v8887_v14  ;;  %v8959_v5 = vld [vmem:[#allocation2 + $0x14c] ss:$16 sps:$4 sm:$0xff]   ;;  %v8963_v12 = vld [vmem:[#allocation2 + $0x128] ss:$16 sps:$4 sm:$0xff]  }
 0x15c   :  { %1450 = vmatprep.subr.bf16.mxu1 %v8890_v15  ;;  %v8962_v6 = vld [vmem:[#allocation2 + $0x34c] ss:$16 sps:$4 sm:$0xff]   ;;  %v8966_v13 = vld [vmem:[#allocation2 + $0x328] ss:$16 sps:$4 sm:$0xff]  }
 0x15d   :  { %1410 = vmatpush1.bf16.msra.mxu0 %v8885_v18  ;;  %v8965_v9 = vld [vmem:[#allocation2 + $0x12c] ss:$16 sps:$4 sm:$0xff]   ;;  %v8969_v18 = vld [vmem:[#allocation2 + $0x108] ss:$16 sps:$4 sm:$0xff]  }
 0x15e   :  { %1451 = vmatpush1.bf16.msra.mxu1 %v8888_v19  ;;  %1411 = vmatprep.subr.bf16.mxu0 %v8893_v20  ;;  %v8968_v10 = vld [vmem:[#allocation2 + $0x32c] ss:$16 sps:$4 sm:$0xff]   ;;  %v8972_v19 = vld [vmem:[#allocation2 + $0x308] ss:$16 sps:$4 sm:$0xff]   ;;  %v8977_v20 = vld [vmem:[#allocation5 + $0xe4] ss:$16 sps:$4 sm:$0xff]  }
 0x15f   :  { %1452 = vmatprep.subr.bf16.mxu1 %v8896_v21  ;;  %v8971_v14 = vld [vmem:[#allocation2 + $0x10c] ss:$16 sps:$4 sm:$0xff]   ;;  %v8975_v21 = vld [vmem:[#allocation5 + $0xe0] ss:$16 sps:$4 sm:$0xff]  }
 0x160   :  { %v8974_v15 = vld [vmem:[#allocation2 + $0x30c] ss:$16 sps:$4 sm:$0xff]  }
 0x161   :  { %1412 = vmatpush1.bf16.msra.mxu0 %v8891_v22  ;;  %v8980_v22 = vld [vmem:[#allocation5 + $0xc4] ss:$16 sps:$4 sm:$0xff]  }
 0x162   :  { %1453 = vmatpush1.bf16.msra.mxu1 %v8894_v23  ;;  %1413 = vmatprep.subr.bf16.mxu0 %v8899_v24  ;;  %v8978_v23 = vld [vmem:[#allocation5 + $0xc0] ss:$16 sps:$4 sm:$0xff]   ;;  %v8983_v24 = vld [vmem:[#allocation5 + $0xa4] ss:$16 sps:$4 sm:$0xff]  }
 0x163   :  { %1454 = vmatprep.subr.bf16.mxu1 %v8902_v25  ;;  %v8981_v25 = vld [vmem:[#allocation5 + $0xa0] ss:$16 sps:$4 sm:$0xff]  }
 0x165   :  { %1414 = vmatpush1.bf16.msra.mxu0 %v8897_v26  ;;  %v8986_v26 = vld [vmem:[#allocation5 + $0x84] ss:$16 sps:$4 sm:$0xff]  }
 0x166   :  { %1455 = vmatpush1.bf16.msra.mxu1 %v8900_v27  ;;  %1415 = vmatprep.subr.bf16.mxu0 %v8905_v28  ;;  %v8984_v27 = vld [vmem:[#allocation5 + $0x80] ss:$16 sps:$4 sm:$0xff]  }
 0x167   :  { %1456 = vmatprep.subr.bf16.mxu1 %v8908_v29  ;;  %v9023_v28 = vld [vmem:[#allocation5 + $0x2e0] ss:$16 sps:$4 sm:$0xff]   ;;  %v9025_v29 = vld [vmem:[#allocation5 + $0x2e4] ss:$16 sps:$4 sm:$0xff]  }
 0x169   :  { %1416 = vmatpush1.bf16.msra.mxu0 %v8903_v30  ;;  %v8989_v30 = vld [vmem:[#allocation5 + $0x64] ss:$16 sps:$4 sm:$0xff]  }
 0x16a   :  { %1457 = vmatpush1.bf16.msra.mxu1 %v8906_v31  ;;  %1417 = vmatprep.subr.bf16.mxu0 %v8911_v32  ;;  %v8987_v31 = vld [vmem:[#allocation5 + $0x60] ss:$16 sps:$4 sm:$0xff]   ;;  %v9031_v32 = vld [vmem:[#allocation5 + $0x2c4] ss:$16 sps:$4 sm:$0xff]  }
 0x16b   :  { %1458 = vmatprep.subr.bf16.mxu1 %v8914_v33  ;;  %v8990_v33 = vld [vmem:[#allocation5 + $0x40] ss:$16 sps:$4 sm:$0xff]  }
 0x16d   :  { %1418 = vmatpush1.bf16.msra.mxu0 %v8909_v34  ;;  %v9035_v34 = vld [vmem:[#allocation5 + $0x2a0] ss:$16 sps:$4 sm:$0xff]  }
 0x16e   :  { %1459 = vmatpush1.bf16.msra.mxu1 %v8912_v35  ;;  %1419 = vmatprep.subr.bf16.mxu0 %v8917_v36  ;;  %v9037_v35 = vld [vmem:[#allocation5 + $0x2a4] ss:$16 sps:$4 sm:$0xff]  }
 0x16f   :  { %1460 = vmatprep.subr.bf16.mxu1 %v8920_v37  ;;  %v8995_v36 = vld [vmem:[#allocation5 + $0x24] ss:$16 sps:$4 sm:$0xff]   ;;  %v8993_v37 = vld [vmem:[#allocation5 + $0x20] ss:$16 sps:$4 sm:$0xff]  }
 0x171   :  { %1420 = vmatpush1.bf16.msra.mxu0 %v8915_v38  ;;  %v9041_v38 = vld [vmem:[#allocation5 + $0x280] ss:$16 sps:$4 sm:$0xff]  }
 0x172   :  { %1461 = vmatpush1.bf16.msra.mxu1 %v8918_v39  ;;  %1421 = vmatprep.subr.bf16.mxu0 %v8923_v40  ;;  %v9043_v39 = vld [vmem:[#allocation5 + $0x284] ss:$16 sps:$4 sm:$0xff]  }
 0x173   :  { %1462 = vmatprep.subr.bf16.mxu1 %v8926_v41  ;;  %v8998_v40 = vld [vmem:[#allocation5 + $0x4] ss:$16 sps:$4 sm:$0xff]   ;;  %v8996_v41 = vld [vmem:[#allocation5] ss:$16 sps:$4 sm:$0xff]  }
 0x175   :  { %1422 = vmatpush1.bf16.msra.mxu0 %v8921_v42  ;;  %v9047_v42 = vld [vmem:[#allocation5 + $0x260] ss:$16 sps:$4 sm:$0xff]  }
 0x176   :  { %1463 = vmatpush1.bf16.msra.mxu1 %v8924_v45  ;;  %1423 = vmatprep.subr.bf16.mxu0 %v8929_v48  ;;  %v9049_v45 = vld [vmem:[#allocation5 + $0x264] ss:$16 sps:$4 sm:$0xff]  }
 0x177   :  { %1464 = vmatprep.subr.bf16.mxu1 %v8932_v49  ;;  %v9001_v48 = vld [vmem:[#allocation5 + $0x1e4] ss:$16 sps:$4 sm:$0xff]   ;;  %v8999_v49 = vld [vmem:[#allocation5 + $0x1e0] ss:$16 sps:$4 sm:$0xff]  }
 0x179   :  { %1424 = vmatpush2.bf16.msra.mxu0 %v8927_v50  ;;  %v9053_v50 = vld [vmem:[#allocation5 + $0x240] ss:$16 sps:$4 sm:$0xff]  }
 0x17a   :  { %1465 = vmatpush2.bf16.msra.mxu1 %v8930_v51  ;;  %1425 = vmatprep.subr.bf16.mxu0 %v8935_v52  ;;  %v9055_v51 = vld [vmem:[#allocation5 + $0x244] ss:$16 sps:$4 sm:$0xff]  }
 0x17b   :  { %1466 = vmatprep.subr.bf16.mxu1 %v8938_v53  ;;  %v9004_v52 = vld [vmem:[#allocation5 + $0x1c4] ss:$16 sps:$4 sm:$0xff]   ;;  %v9002_v53 = vld [vmem:[#allocation5 + $0x1c0] ss:$16 sps:$4 sm:$0xff]  }
 0x17d   :  { %1426 = vmatpush2.bf16.msra.mxu0 %v8933_v54  ;;  %v9059_v54 = vld [vmem:[#allocation5 + $0x220] ss:$16 sps:$4 sm:$0xff]  }
 0x17e   :  { %1467 = vmatpush2.bf16.msra.mxu1 %v8936_v55  ;;  %1427 = vmatprep.subr.bf16.mxu0 %v8941_v56  ;;  %v9061_v55 = vld [vmem:[#allocation5 + $0x224] ss:$16 sps:$4 sm:$0xff]  }
 0x17f   :  { %1468 = vmatprep.subr.bf16.mxu1 %v8944_v57  ;;  %v9007_v56 = vld [vmem:[#allocation5 + $0x1a4] ss:$16 sps:$4 sm:$0xff]   ;;  %v9005_v57 = vld [vmem:[#allocation5 + $0x1a0] ss:$16 sps:$4 sm:$0xff]  }
 0x181   :  { %1428 = vmatpush2.bf16.msra.mxu0 %v8939_v58  ;;  %v9065_v58 = vld [vmem:[#allocation5 + $0x200] ss:$16 sps:$4 sm:$0xff]  }
 0x182   :  { %1469 = vmatpush2.bf16.msra.mxu1 %v8942_v59  ;;  %1429 = vmatprep.subr.bf16.mxu0 %v8947_v60  ;;  %v9067_v59 = vld [vmem:[#allocation5 + $0x204] ss:$16 sps:$4 sm:$0xff]  }
 0x183   :  { %1470 = vmatprep.subr.bf16.mxu1 %v8950_v61  ;;  %v9010_v60 = vld [vmem:[#allocation5 + $0x184] ss:$16 sps:$4 sm:$0xff]   ;;  %v9008_v61 = vld [vmem:[#allocation5 + $0x180] ss:$16 sps:$4 sm:$0xff]  }
 0x185   :  { %1430 = vmatpush2.bf16.msra.mxu0 %v8945_v62  ;;  %v9071_v62 = vld [vmem:[#allocation5 + $0x3e0] ss:$16 sps:$4 sm:$0xff]  }
 0x186   :  { %1471 = vmatpush2.bf16.msra.mxu1 %v8948_v63  ;;  %1431 = vmatprep.subr.bf16.mxu0 %v8953_v1  ;;  %v9073_v63 = vld [vmem:[#allocation5 + $0x3e4] ss:$16 sps:$4 sm:$0xff]  }
 0x187   :  { %1472 = vmatprep.subr.bf16.mxu1 %v8956_v2  ;;  %v9013_v1 = vld [vmem:[#allocation5 + $0x164] ss:$16 sps:$4 sm:$0xff]   ;;  %v9011_v2 = vld [vmem:[#allocation5 + $0x160] ss:$16 sps:$4 sm:$0xff]  }
 0x189   :  { %1432 = vmatpush2.bf16.msra.mxu0 %v8951_v3  ;;  %v9077_v3 = vld [vmem:[#allocation5 + $0x3c0] ss:$16 sps:$4 sm:$0xff]  }
 0x18a   :  { %1473 = vmatpush2.bf16.msra.mxu1 %v8954_v4  ;;  %1433 = vmatprep.subr.bf16.mxu0 %v8959_v5  ;;  %v9079_v4 = vld [vmem:[#allocation5 + $0x3c4] ss:$16 sps:$4 sm:$0xff]  }
 0x18b   :  { %1474 = vmatprep.subr.bf16.mxu1 %v8962_v6  ;;  %v9016_v5 = vld [vmem:[#allocation5 + $0x144] ss:$16 sps:$4 sm:$0xff]   ;;  %v9014_v6 = vld [vmem:[#allocation5 + $0x140] ss:$16 sps:$4 sm:$0xff]  }
 0x18d   :  { %1434 = vmatpush2.bf16.msra.mxu0 %v8957_v7  ;;  %v9083_v7 = vld [vmem:[#allocation5 + $0x3a0] ss:$16 sps:$4 sm:$0xff]  }
 0x18e   :  { %1475 = vmatpush2.bf16.msra.mxu1 %v8960_v8  ;;  %1435 = vmatprep.subr.bf16.mxu0 %v8965_v9  ;;  %v9085_v8 = vld [vmem:[#allocation5 + $0x3a4] ss:$16 sps:$4 sm:$0xff]  }
 0x18f   :  { %1476 = vmatprep.subr.bf16.mxu1 %v8968_v10  ;;  %v9019_v9 = vld [vmem:[#allocation5 + $0x124] ss:$16 sps:$4 sm:$0xff]   ;;  %v9017_v10 = vld [vmem:[#allocation5 + $0x120] ss:$16 sps:$4 sm:$0xff]  }
 0x191   :  { %1436 = vmatpush2.bf16.msra.mxu0 %v8963_v12  ;;  %v9089_v12 = vld [vmem:[#allocation5 + $0x380] ss:$16 sps:$4 sm:$0xff]  }
 0x192   :  { %1477 = vmatpush2.bf16.msra.mxu1 %v8966_v13  ;;  %1437 = vmatprep.subr.bf16.mxu0 %v8971_v14  ;;  %v9091_v13 = vld [vmem:[#allocation5 + $0x384] ss:$16 sps:$4 sm:$0xff]  }
 0x193   :  { %1478 = vmatprep.subr.bf16.mxu1 %v8974_v15  ;;  %v9022_v14 = vld [vmem:[#allocation5 + $0x104] ss:$16 sps:$4 sm:$0xff]   ;;  %v9020_v15 = vld [vmem:[#allocation5 + $0x100] ss:$16 sps:$4 sm:$0xff]  }
 0x195   :  { %1438 = vmatpush2.bf16.msra.mxu0 %v8969_v18  ;;  %v9095_v18 = vld [vmem:[#allocation5 + $0x360] ss:$16 sps:$4 sm:$0xff]  }
 0x196   :  { %1479 = vmatpush2.bf16.msra.mxu1 %v8972_v19  ;;  %2287 = vmatprep.subr.bf16.mxu0 %v8977_v20  ;;  %v9097_v19 = vld [vmem:[#allocation5 + $0x364] ss:$16 sps:$4 sm:$0xff]   ;;  %v9028_v20 = vld [vmem:[#allocation5 + $0xec] ss:$16 sps:$4 sm:$0xff]  }
 0x197   :  { %2328 = vmatprep.subr.bf16.mxu1 %v9025_v29 }
 0x198   :  { %1440 = vmatmul.mubr.bf16.vlgmr.msra.gmra.mxu0 %v10508_v16  ;;  %v9029_v16 = vld [vmem:[#allocation5 + $0x2c0] ss:$16 sps:$4 sm:$0xff]  }
 0x199   :  { %1481 = vmatmul.mubr.bf16.vlgmr.msra.gmra.mxu1 %v10510_v17  ;;  %2288 = vmatpush1.bf16.msra.mxu0 %v8975_v21  ;;  %v8992_v17 = vld [vmem:[#allocation5 + $0x44] ss:$16 sps:$4 sm:$0xff]   ;;  %v9101_v21 = vld [vmem:[#allocation5 + $0x340] ss:$16 sps:$4 sm:$0xff]  }
 0x19a   :  { %2289 = vmatprep.subr.bf16.mxu0 %v8980_v22  ;;  %2329 = vmatpush1.bf16.msra.mxu1 %v9023_v28  ;;  %v9103_v22 = vld [vmem:[#allocation5 + $0x344] ss:$16 sps:$4 sm:$0xff]   ;;  %v10517_v28 = vld [vmem:[%s10323_s3] sm:$0xf]  ;;  %s10775_s3 = sld [smem:[#allocation27_spill]] }
 0x19b   :  { %2330 = vmatprep.subr.bf16.mxu1 %v9031_v32  ;;  %v668_v29 = vrot.slane %v10517_v28, %v10495_v43 }
 0x19d   :  { %2290 = vmatpush1.bf16.msra.mxu0 %v8978_v23  ;;  %v9109_v23 = vld [vmem:[#allocation5 + $0x324] ss:$16 sps:$4 sm:$0xff]  }
 0x19e   :  { %2291 = vmatprep.subr.bf16.mxu0 %v8983_v24  ;;  %2331 = vmatpush1.bf16.msra.mxu1 %v9029_v16  ;;  %v9107_v24 = vld [vmem:[#allocation5 + $0x320] ss:$16 sps:$4 sm:$0xff]  }
 0x19f   :  { %2332 = vmatprep.subr.bf16.mxu1 %v9037_v35 }
 0x1a1   :  { %2292 = vmatpush1.bf16.msra.mxu0 %v8981_v25  ;;  %v9115_v25 = vld [vmem:[#allocation5 + $0x304] ss:$16 sps:$4 sm:$0xff]  }
 0x1a2   :  { %2293 = vmatprep.subr.bf16.mxu0 %v8986_v26  ;;  %2333 = vmatpush1.bf16.msra.mxu1 %v9035_v34  ;;  %v9113_v26 = vld [vmem:[#allocation5 + $0x300] ss:$16 sps:$4 sm:$0xff]  }
 0x1a3   :  { %2334 = vmatprep.subr.bf16.mxu1 %v9043_v39 }
 0x1a5   :  { %2294 = vmatpush1.bf16.msra.mxu0 %v8984_v27  ;;  %v9121_v27 = vld [vmem:[#allocation5 + $0x2ec] ss:$16 sps:$4 sm:$0xff]  }
 0x1a6   :  { %2295 = vmatprep.subr.bf16.mxu0 %v8989_v30  ;;  %2335 = vmatpush1.bf16.msra.mxu1 %v9041_v38  ;;  %v672_v30 = vrot.slane %v10517_v28, %v10500_v46 }
 0x1a7   :  { %2336 = vmatprep.subr.bf16.mxu1 %v9049_v45 }
 0x1a9   :  { %2296 = vmatpush1.bf16.msra.mxu0 %v8987_v31 }
 0x1aa   :  { %2297 = vmatprep.subr.bf16.mxu0 %v8992_v17  ;;  %2337 = vmatpush1.bf16.msra.mxu1 %v9047_v42 }
 0x1ab   :  { %2338 = vmatprep.subr.bf16.mxu1 %v9055_v51  ;;  %v9032_v51 = vld [vmem:[#allocation5 + $0xc8] ss:$16 sps:$4 sm:$0xff]  }
 0x1ad   :  { %2298 = vmatpush1.bf16.msra.mxu0 %v8990_v33 }
 0x1ae   :  { %2299 = vmatprep.subr.bf16.mxu0 %v8995_v36  ;;  %2339 = vmatpush1.bf16.msra.mxu1 %v9053_v50  ;;  %v9034_v50 = vld [vmem:[#allocation5 + $0xcc] ss:$16 sps:$4 sm:$0xff]  }
 0x1af   :  { %2340 = vmatprep.subr.bf16.mxu1 %v9061_v55  ;;  %v9044_v55 = vld [vmem:[#allocation5 + $0x88] ss:$16 sps:$4 sm:$0xff]  }
 0x1b1   :  { %2300 = vmatpush1.bf16.msra.mxu0 %v8993_v37 }
 0x1b2   :  { %2301 = vmatprep.subr.bf16.mxu0 %v8998_v40  ;;  %2341 = vmatpush1.bf16.msra.mxu1 %v9059_v54  ;;  %v9046_v54 = vld [vmem:[#allocation5 + $0x8c] ss:$16 sps:$4 sm:$0xff]  }
 0x1b3   :  { %2342 = vmatprep.subr.bf16.mxu1 %v9067_v59  ;;  %v9056_v59 = vld [vmem:[#allocation5 + $0x48] ss:$16 sps:$4 sm:$0xff]  }
 0x1b5   :  { %2302 = vmatpush1.bf16.msra.mxu0 %v8996_v41 }
 0x1b6   :  { %2303 = vmatprep.subr.bf16.mxu0 %v9001_v48  ;;  %2343 = vmatpush1.bf16.msra.mxu1 %v9065_v58  ;;  %v9026_v48 = vld [vmem:[#allocation5 + $0xe8] ss:$16 sps:$4 sm:$0xff]   ;;  %v9058_v58 = vld [vmem:[#allocation5 + $0x4c] ss:$16 sps:$4 sm:$0xff]  }
 0x1b7   :  { %2344 = vmatprep.subr.bf16.mxu1 %v9073_v63  ;;  %v9068_v63 = vld [vmem:[#allocation5 + $0x8] ss:$16 sps:$4 sm:$0xff]  }
 0x1b9   :  { %2304 = vmatpush2.bf16.msra.mxu0 %v8999_v49 }
 0x1ba   :  { %2305 = vmatprep.subr.bf16.mxu0 %v9004_v52  ;;  %2345 = vmatpush2.bf16.msra.mxu1 %v9071_v62  ;;  %v9040_v52 = vld [vmem:[#allocation5 + $0xac] ss:$16 sps:$4 sm:$0xff]  }
 0x1bb   :  { %2346 = vmatprep.subr.bf16.mxu1 %v9079_v4  ;;  %v9070_v62 = vld [vmem:[#allocation5 + $0xc] ss:$16 sps:$4 sm:$0xff]   ;;  %v9080_v4 = vld [vmem:[#allocation5 + $0x1c8] ss:$16 sps:$4 sm:$0xff]  }
 0x1bd   :  { %2306 = vmatpush2.bf16.msra.mxu0 %v9002_v53  ;;  %v9038_v53 = vld [vmem:[#allocation5 + $0xa8] ss:$16 sps:$4 sm:$0xff]  }
 0x1be   :  { %2307 = vmatprep.subr.bf16.mxu0 %v9007_v56  ;;  %2347 = vmatpush2.bf16.msra.mxu1 %v9077_v3  ;;  %v9052_v56 = vld [vmem:[#allocation5 + $0x6c] ss:$16 sps:$4 sm:$0xff]  }
 0x1bf   :  { %2348 = vmatprep.subr.bf16.mxu1 %v9085_v8  ;;  %v9082_v3 = vld [vmem:[#allocation5 + $0x1cc] ss:$16 sps:$4 sm:$0xff]   ;;  %v9092_v8 = vld [vmem:[#allocation5 + $0x188] ss:$16 sps:$4 sm:$0xff]  }
 0x1c1   :  { %2308 = vmatpush2.bf16.msra.mxu0 %v9005_v57  ;;  %v9050_v57 = vld [vmem:[#allocation5 + $0x68] ss:$16 sps:$4 sm:$0xff]  }
 0x1c2   :  { %2309 = vmatprep.subr.bf16.mxu0 %v9010_v60  ;;  %2349 = vmatpush2.bf16.msra.mxu1 %v9083_v7  ;;  %v9064_v60 = vld [vmem:[#allocation5 + $0x2c] ss:$16 sps:$4 sm:$0xff]  }
 0x1c3   :  { %2350 = vmatprep.subr.bf16.mxu1 %v9091_v13  ;;  %v9094_v7 = vld [vmem:[#allocation5 + $0x18c] ss:$16 sps:$4 sm:$0xff]   ;;  %v676_v13 = vrot.slane %v10517_v28, %v10497_v44 }
 0x1c5   :  { %2310 = vmatpush2.bf16.msra.mxu0 %v9008_v61  ;;  %v9062_v61 = vld [vmem:[#allocation5 + $0x28] ss:$16 sps:$4 sm:$0xff]  }
 0x1c6   :  { %2311 = vmatprep.subr.bf16.mxu0 %v9013_v1  ;;  %2351 = vmatpush2.bf16.msra.mxu1 %v9089_v12  ;;  %v9076_v1 = vld [vmem:[#allocation5 + $0x1ec] ss:$16 sps:$4 sm:$0xff]  }
 0x1c7   :  { %2352 = vmatprep.subr.bf16.mxu1 %v9097_v19  ;;  %v9106_v12 = vld [vmem:[#allocation5 + $0x14c] ss:$16 sps:$4 sm:$0xff]  }
 0x1c9   :  { %2312 = vmatpush2.bf16.msra.mxu0 %v9011_v2  ;;  %v9074_v2 = vld [vmem:[#allocation5 + $0x1e8] ss:$16 sps:$4 sm:$0xff]  }
 0x1ca   :  { %2313 = vmatprep.subr.bf16.mxu0 %v9016_v5  ;;  %2353 = vmatpush2.bf16.msra.mxu1 %v9095_v18  ;;  %v9088_v5 = vld [vmem:[#allocation5 + $0x1ac] ss:$16 sps:$4 sm:$0xff]   ;;  %v680_v18 = vrot.slane %v10517_v28, %v10502_v47 }
 0x1cb   :  { %2354 = vmatprep.subr.bf16.mxu1 %v9103_v22  ;;  %v9110_v22 = vld [vmem:[#allocation5 + $0x128] ss:$16 sps:$4 sm:$0xff]  }
 0x1cd   :  { %2314 = vmatpush2.bf16.msra.mxu0 %v9014_v6  ;;  %v9086_v6 = vld [vmem:[#allocation5 + $0x1a8] ss:$16 sps:$4 sm:$0xff]  }
 0x1ce   :  { %2315 = vmatprep.subr.bf16.mxu0 %v9019_v9  ;;  %2355 = vmatpush2.bf16.msra.mxu1 %v9101_v21  ;;  %v9100_v9 = vld [vmem:[#allocation5 + $0x16c] ss:$16 sps:$4 sm:$0xff]  }
 0x1cf   :  { %2356 = vmatprep.subr.bf16.mxu1 %v9109_v23 }
 0x1d1   :  { %2316 = vmatpush2.bf16.msra.mxu0 %v9017_v10  ;;  %v9098_v10 = vld [vmem:[#allocation5 + $0x168] ss:$16 sps:$4 sm:$0xff]  }
 0x1d2   :  { %2317 = vmatprep.subr.bf16.mxu0 %v9022_v14  ;;  %2357 = vmatpush2.bf16.msra.mxu1 %v9107_v24  ;;  %v9104_v14 = vld [vmem:[#allocation5 + $0x148] ss:$16 sps:$4 sm:$0xff]  }
 0x1d3   :  { %2358 = vmatprep.subr.bf16.mxu1 %v9115_v25  ;;  %v9118_v25 = vld [vmem:[#allocation5 + $0x10c] ss:$16 sps:$4 sm:$0xff]  }
 0x1d5   :  { %2318 = vmatpush2.bf16.msra.mxu0 %v9020_v15  ;;  %v9112_v15 = vld [vmem:[#allocation5 + $0x12c] ss:$16 sps:$4 sm:$0xff]  }
 0x1d6   :  { %2369 = vmatprep.subr.bf16.mxu0 %v9028_v20  ;;  %2359 = vmatpush2.bf16.msra.mxu1 %v9113_v26 }
 0x1d7   :  { %2410 = vmatprep.subr.bf16.mxu1 %v9121_v27 }
 0x218   :  { %v1359_v31 = vpop.f32.mrf.mxu0 }
 0x219   :  { %v1400_v16 = vpop.f32.mrf.mxu1  ;;  %v1360_v32 = vadd.f32 %v1359_v31, %v668_v29 }
 0x21a   :  { %v1361_v17 = vpop.f32.mrf.mxu0 }
 0x21b   :  { %v1402_v33 = vpop.f32.mrf.mxu1  ;;  %v1401_v34 = vadd.f32 %v1400_v16, %v1360_v32  ;;  %v1362_v35 = vadd.f32 %v1361_v17, %v672_v30  ;;  %v9116_v16 = vld [vmem:[#allocation5 + $0x108] ss:$16 sps:$4 sm:$0xff]  }
 0x21c   :  { %v1363_v36 = vpop.f32.mrf.mxu0 }
 0x21d   :  { %v1404_v37 = vpop.f32.mrf.mxu1  ;;  %v1403_v38 = vadd.f32 %v1402_v33, %v1362_v35  ;;  %v1489_v39 = vmax.f32 %v1401_v34, 0.0  ;;  %v9119_v35 = vld [vmem:[#allocation5 + $0x2e8] ss:$16 sps:$4 sm:$0xff]  }
 0x21e   :  { %v1364_v40 = vpop.f32.mrf.mxu0  ;;  %v9124_v37 = vld [vmem:[#allocation5 + $0x2cc] ss:$16 sps:$4 sm:$0xff]  }
 0x21f   :  { %v1405_v41 = vpop.f32.mrf.mxu1  ;;  %v1490_v42 = vmax.f32 %v1403_v38, 0.0  ;;  %v10523_v49 = vpack.c.bf16 %v1489_v39, %v1489_v39  ;;  %v9122_v38 = vld [vmem:[#allocation5 + $0x2c8] ss:$16 sps:$4 sm:$0xff]   ;;  %v9127_v39 = vld [vmem:[#allocation5 + $0x2ac] ss:$16 sps:$4 sm:$0xff]  }
 0x220   :  { %v9125_v40 = vld [vmem:[#allocation5 + $0x2a8] ss:$16 sps:$4 sm:$0xff]   ;;  %v9130_v41 = vld [vmem:[#allocation5 + $0x28c] ss:$16 sps:$4 sm:$0xff]  }
 0x221   :  { %v1494_v45 = vpack.c.bf16 %v1490_v42, %v1490_v42  ;;  %v9167_v42 = vld [vmem:[#allocation7 + $0xe0] ss:$16 sps:$4 sm:$0xff]  }
 0x223   :  { %2319 = vmatprep.mubr.bf16.mxu0 %v1494_v45 }
 0x224   :  { %2320 = vmatmul.mubr.bf16.vlgmr.msra.gmra.mxu0 %v10523_v49 }
 0x225   :  { %2370 = vmatpush1.bf16.msra.mxu0 %v9026_v48  ;;  %2401 = vmatprep.mubr.bf16.mxu0 %v1494_v45  ;;  %v9169_v45 = vld [vmem:[#allocation7 + $0xe4] ss:$16 sps:$4 sm:$0xff]  }
 0x226   :  { %2371 = vmatprep.subr.bf16.mxu0 %v9034_v50  ;;  %v9172_v48 = vld [vmem:[#allocation7 + $0xc4] ss:$16 sps:$4 sm:$0xff]   ;;  %v9128_v50 = vld [vmem:[#allocation5 + $0x288] ss:$16 sps:$4 sm:$0xff]  }
 0x229   :  { %2372 = vmatpush1.bf16.msra.mxu0 %v9032_v51  ;;  %v9170_v51 = vld [vmem:[#allocation7 + $0xc0] ss:$16 sps:$4 sm:$0xff]  }
 0x22a   :  { %2373 = vmatprep.subr.bf16.mxu0 %v9040_v52  ;;  %v9133_v52 = vld [vmem:[#allocation5 + $0x26c] ss:$16 sps:$4 sm:$0xff]  }
 0x22d   :  { %2374 = vmatpush1.bf16.msra.mxu0 %v9038_v53  ;;  %v9131_v53 = vld [vmem:[#allocation5 + $0x268] ss:$16 sps:$4 sm:$0xff]  }
 0x22e   :  { %2375 = vmatprep.subr.bf16.mxu0 %v9046_v54  ;;  %v9173_v54 = vld [vmem:[#allocation7 + $0xa0] ss:$16 sps:$4 sm:$0xff]  }
 0x231   :  { %2376 = vmatpush1.bf16.msra.mxu0 %v9044_v55  ;;  %v9136_v55 = vld [vmem:[#allocation5 + $0x24c] ss:$16 sps:$4 sm:$0xff]  }
 0x232   :  { %2377 = vmatprep.subr.bf16.mxu0 %v9052_v56  ;;  %v9178_v56 = vld [vmem:[#allocation7 + $0x84] ss:$16 sps:$4 sm:$0xff]  }
 0x235   :  { %2378 = vmatpush1.bf16.msra.mxu0 %v9050_v57  ;;  %v9134_v57 = vld [vmem:[#allocation5 + $0x248] ss:$16 sps:$4 sm:$0xff]  }
 0x236   :  { %2379 = vmatprep.subr.bf16.mxu0 %v9058_v58  ;;  %v9176_v58 = vld [vmem:[#allocation7 + $0x80] ss:$16 sps:$4 sm:$0xff]  }
 0x239   :  { %2380 = vmatpush1.bf16.msra.mxu0 %v9056_v59  ;;  %v9139_v59 = vld [vmem:[#allocation5 + $0x22c] ss:$16 sps:$4 sm:$0xff]  }
 0x23a   :  { %2381 = vmatprep.subr.bf16.mxu0 %v9064_v60  ;;  %v9181_v60 = vld [vmem:[#allocation7 + $0x64] ss:$16 sps:$4 sm:$0xff]  }
 0x23d   :  { %2382 = vmatpush1.bf16.msra.mxu0 %v9062_v61  ;;  %v9137_v61 = vld [vmem:[#allocation5 + $0x228] ss:$16 sps:$4 sm:$0xff]  }
 0x23e   :  { %2383 = vmatprep.subr.bf16.mxu0 %v9070_v62  ;;  %v9179_v62 = vld [vmem:[#allocation7 + $0x60] ss:$16 sps:$4 sm:$0xff]  }
 0x241   :  { %2384 = vmatpush1.bf16.msra.mxu0 %v9068_v63  ;;  %v9142_v63 = vld [vmem:[#allocation5 + $0x20c] ss:$16 sps:$4 sm:$0xff]  }
 0x242   :  { %2385 = vmatprep.subr.bf16.mxu0 %v9076_v1  ;;  %v9184_v1 = vld [vmem:[#allocation7 + $0x44] ss:$16 sps:$4 sm:$0xff]  }
 0x245   :  { %2386 = vmatpush2.bf16.msra.mxu0 %v9074_v2  ;;  %v9140_v2 = vld [vmem:[#allocation5 + $0x208] ss:$16 sps:$4 sm:$0xff]  }
 0x246   :  { %2387 = vmatprep.subr.bf16.mxu0 %v9082_v3  ;;  %v9182_v3 = vld [vmem:[#allocation7 + $0x40] ss:$16 sps:$4 sm:$0xff]  }
 0x249   :  { %2388 = vmatpush2.bf16.msra.mxu0 %v9080_v4  ;;  %v9145_v4 = vld [vmem:[#allocation5 + $0x3ec] ss:$16 sps:$4 sm:$0xff]  }
 0x24a   :  { %2389 = vmatprep.subr.bf16.mxu0 %v9088_v5  ;;  %v9187_v5 = vld [vmem:[#allocation7 + $0x24] ss:$16 sps:$4 sm:$0xff]  }
 0x24d   :  { %2390 = vmatpush2.bf16.msra.mxu0 %v9086_v6  ;;  %v9143_v6 = vld [vmem:[#allocation5 + $0x3e8] ss:$16 sps:$4 sm:$0xff]  }
 0x24e   :  { %2391 = vmatprep.subr.bf16.mxu0 %v9094_v7  ;;  %v9185_v7 = vld [vmem:[#allocation7 + $0x20] ss:$16 sps:$4 sm:$0xff]  }
 0x251   :  { %2392 = vmatpush2.bf16.msra.mxu0 %v9092_v8  ;;  %v9148_v8 = vld [vmem:[#allocation5 + $0x3cc] ss:$16 sps:$4 sm:$0xff]  }
 0x252   :  { %2393 = vmatprep.subr.bf16.mxu0 %v9100_v9  ;;  %v9190_v9 = vld [vmem:[#allocation7 + $0x4] ss:$16 sps:$4 sm:$0xff]  }
 0x255   :  { %2394 = vmatpush2.bf16.msra.mxu0 %v9098_v10  ;;  %v9146_v10 = vld [vmem:[#allocation5 + $0x3c8] ss:$16 sps:$4 sm:$0xff]  }
 0x256   :  { %2395 = vmatprep.subr.bf16.mxu0 %v9106_v12  ;;  %v9188_v12 = vld [vmem:[#allocation7] ss:$16 sps:$4 sm:$0xff]  }
 0x258   :  { %v1441_v19 = vpop.f32.mrf.mxu0 }
 0x259   :  { %v1482_v20 = vpop.f32.mrf.mxu1  ;;  %v1442_v21 = vadd.f32 %v1441_v19, %v676_v13  ;;  %2396 = vmatpush2.bf16.msra.mxu0 %v9104_v14  ;;  %v9151_v13 = vld [vmem:[#allocation5 + $0x3ac] ss:$16 sps:$4 sm:$0xff]   ;;  %v9193_v14 = vld [vmem:[#allocation7 + $0x1e4] ss:$16 sps:$4 sm:$0xff]  }
 0x25a   :  { %v1443_v23 = vpop.f32.mrf.mxu0  ;;  %2397 = vmatprep.subr.bf16.mxu0 %v9112_v15  ;;  %v9149_v15 = vld [vmem:[#allocation5 + $0x3a8] ss:$16 sps:$4 sm:$0xff]   ;;  %v9154_v19 = vld [vmem:[#allocation5 + $0x38c] ss:$16 sps:$4 sm:$0xff]  }
 0x25b   :  { %v1484_v24 = vpop.f32.mrf.mxu1  ;;  %v1483_v26 = vadd.f32 %v1482_v20, %v1442_v21  ;;  %v1444_v27 = vadd.f32 %v1443_v23, %v680_v18  ;;  %v9191_v18 = vld [vmem:[#allocation7 + $0x1e0] ss:$16 sps:$4 sm:$0xff]   ;;  %v9196_v20 = vld [vmem:[#allocation7 + $0x1c4] ss:$16 sps:$4 sm:$0xff]   ;;  %v9152_v21 = vld [vmem:[#allocation5 + $0x388] ss:$16 sps:$4 sm:$0xff]  }
 0x25c   :  { %v1445_v29 = vpop.f32.mrf.mxu0  ;;  %v9157_v23 = vld [vmem:[#allocation5 + $0x36c] ss:$16 sps:$4 sm:$0xff]  }
 0x25d   :  { %v1486_v30 = vpop.f32.mrf.mxu1  ;;  %v1485_v31 = vadd.f32 %v1484_v24, %v1444_v27  ;;  %2398 = vmatpush2.bf16.msra.mxu0 %v9110_v22  ;;  %v1491_v32 = vmax.f32 %v1483_v26, 0.0  ;;  %v9194_v22 = vld [vmem:[#allocation7 + $0x1c0] ss:$16 sps:$4 sm:$0xff]   ;;  %v9199_v24 = vld [vmem:[#allocation7 + $0x1a4] ss:$16 sps:$4 sm:$0xff]  }
 0x25e   :  { %v1446_v17 = vpop.f32.mrf.mxu0  ;;  %2399 = vmatprep.subr.bf16.mxu0 %v9118_v25  ;;  %v9155_v25 = vld [vmem:[#allocation5 + $0x368] ss:$16 sps:$4 sm:$0xff]   ;;  %v9197_v26 = vld [vmem:[#allocation7 + $0x1a0] ss:$16 sps:$4 sm:$0xff]   ;;  %v9160_v27 = vld [vmem:[#allocation5 + $0x34c] ss:$16 sps:$4 sm:$0xff]  }
 0x25f   :  { %v1487_v33 = vpop.f32.mrf.mxu1  ;;  %v1492_v28 = vmax.f32 %v1485_v31, 0.0  ;;  %v10530_v36 = vpack.c.bf16 %v1491_v32, %v1491_v32  ;;  %v9202_v29 = vld [vmem:[#allocation7 + $0x184] ss:$16 sps:$4 sm:$0xff]   ;;  %v9158_v30 = vld [vmem:[#allocation5 + $0x348] ss:$16 sps:$4 sm:$0xff]  }
 0x260   :  { %v9200_v31 = vld [vmem:[#allocation7 + $0x180] ss:$16 sps:$4 sm:$0xff]   ;;  %v9205_v32 = vld [vmem:[#allocation7 + $0x164] ss:$16 sps:$4 sm:$0xff]   ;;  %v9161_v17 = vld [vmem:[#allocation5 + $0x328] ss:$16 sps:$4 sm:$0xff]  }
 0x261   :  { %v1496_v34 = vpack.c.bf16 %v1492_v28, %v1492_v28  ;;  %2400 = vmatpush2.bf16.msra.mxu0 %v9116_v16  ;;  %v9163_v16 = vld [vmem:[#allocation5 + $0x32c] ss:$16 sps:$4 sm:$0xff]   ;;  %v9203_v33 = vld [vmem:[#allocation7 + $0x160] ss:$16 sps:$4 sm:$0xff]  }
 0x262   :  { %3249 = vmatprep.subr.bf16.mxu0 %v9169_v45  ;;  %v9166_v28 = vld [vmem:[#allocation5 + $0x30c] ss:$16 sps:$4 sm:$0xff]   ;;  %v9217_v45 = vld [vmem:[#allocation7 + $0x2e4] ss:$16 sps:$4 sm:$0xff]  }
 0x263   :  { %2360 = vmatprep.mubr.bf16.mxu1 %v1496_v34 }
 0x264   :  { %2361 = vmatmul.mubr.bf16.vlgmr.msra.gmra.mxu1 %v10530_v36  ;;  %2402 = vmatmul.mubr.bf16.vlgmr.msra.gmra.mxu0 %v10523_v49  ;;  %v9175_v49 = vld [vmem:[#allocation7 + $0xa4] ss:$16 sps:$4 sm:$0xff]  }
 0x265   :  { %2411 = vmatpush1.bf16.msra.mxu1 %v9119_v35  ;;  %2442 = vmatprep.mubr.bf16.mxu1 %v1496_v34  ;;  %v9208_v34 = vld [vmem:[#allocation7 + $0x144] ss:$16 sps:$4 sm:$0xff]   ;;  %v9164_v35 = vld [vmem:[#allocation5 + $0x308] ss:$16 sps:$4 sm:$0xff]  }
 0x266   :  { %2412 = vmatprep.subr.bf16.mxu1 %v9124_v37  ;;  %3250 = vmatpush1.bf16.msra.mxu0 %v9167_v42  ;;  %v9206_v37 = vld [vmem:[#allocation7 + $0x140] ss:$16 sps:$4 sm:$0xff]  }
 0x267   :  { %3251 = vmatprep.subr.bf16.mxu0 %v9172_v48  ;;  %v9215_v42 = vld [vmem:[#allocation7 + $0x2e0] ss:$16 sps:$4 sm:$0xff]   ;;  %v9220_v48 = vld [vmem:[#allocation7 + $0xec] ss:$16 sps:$4 sm:$0xff]  }
 0x269   :  { %2413 = vmatpush1.bf16.msra.mxu1 %v9122_v38  ;;  %v9211_v38 = vld [vmem:[#allocation7 + $0x124] ss:$16 sps:$4 sm:$0xff]  }
 0x26a   :  { %2414 = vmatprep.subr.bf16.mxu1 %v9127_v39  ;;  %3252 = vmatpush1.bf16.msra.mxu0 %v9170_v51  ;;  %v9209_v39 = vld [vmem:[#allocation7 + $0x120] ss:$16 sps:$4 sm:$0xff]   ;;  %v9223_v51 = vld [vmem:[#allocation7 + $0x2c4] ss:$16 sps:$4 sm:$0xff]  }
 0x26b   :  { %3253 = vmatprep.subr.bf16.mxu0 %v9175_v49  ;;  %v9233_v49 = vld [vmem:[#allocation7 + $0x280] ss:$16 sps:$4 sm:$0xff]  }
 0x26d   :  { %2415 = vmatpush1.bf16.msra.mxu1 %v9125_v40  ;;  %v9214_v40 = vld [vmem:[#allocation7 + $0x104] ss:$16 sps:$4 sm:$0xff]  }
 0x26e   :  { %2416 = vmatprep.subr.bf16.mxu1 %v9130_v41  ;;  %3254 = vmatpush1.bf16.msra.mxu0 %v9173_v54  ;;  %v9212_v41 = vld [vmem:[#allocation7 + $0x100] ss:$16 sps:$4 sm:$0xff]  }
 0x26f   :  { %3255 = vmatprep.subr.bf16.mxu0 %v9178_v56  ;;  %v9239_v54 = vld [vmem:[#allocation7 + $0x260] ss:$16 sps:$4 sm:$0xff]  }
 0x270   :  { %v9245_v56 = vld [vmem:[#allocation7 + $0x240] ss:$16 sps:$4 sm:$0xff]  }
 0x271   :  { %2417 = vmatpush1.bf16.msra.mxu1 %v9128_v50  ;;  %v9221_v50 = vld [vmem:[#allocation7 + $0x2c0] ss:$16 sps:$4 sm:$0xff]  }
 0x272   :  { %2418 = vmatprep.subr.bf16.mxu1 %v9133_v52  ;;  %3256 = vmatpush1.bf16.msra.mxu0 %v9176_v58  ;;  %v9227_v52 = vld [vmem:[#allocation7 + $0x2a0] ss:$16 sps:$4 sm:$0xff]  }
 0x273   :  { %3257 = vmatprep.subr.bf16.mxu0 %v9181_v60  ;;  %v9251_v58 = vld [vmem:[#allocation7 + $0x220] ss:$16 sps:$4 sm:$0xff]  }
 0x274   :  { %v9257_v60 = vld [vmem:[#allocation7 + $0x200] ss:$16 sps:$4 sm:$0xff]  }
 0x275   :  { %2419 = vmatpush1.bf16.msra.mxu1 %v9131_v53  ;;  %v9235_v53 = vld [vmem:[#allocation7 + $0x284] ss:$16 sps:$4 sm:$0xff]  }
 0x276   :  { %2420 = vmatprep.subr.bf16.mxu1 %v9136_v55  ;;  %3258 = vmatpush1.bf16.msra.mxu0 %v9179_v62  ;;  %v9241_v55 = vld [vmem:[#allocation7 + $0x264] ss:$16 sps:$4 sm:$0xff]   ;;  %v9263_v62 = vld [vmem:[#allocation7 + $0x3e0] ss:$16 sps:$4 sm:$0xff]  }
 0x277   :  { %3259 = vmatprep.subr.bf16.mxu0 %v9184_v1  ;;  %v9269_v1 = vld [vmem:[#allocation7 + $0x3c0] ss:$16 sps:$4 sm:$0xff]  }
 0x279   :  { %2421 = vmatpush1.bf16.msra.mxu1 %v9134_v57  ;;  %v9247_v57 = vld [vmem:[#allocation7 + $0x244] ss:$16 sps:$4 sm:$0xff]  }
 0x27a   :  { %2422 = vmatprep.subr.bf16.mxu1 %v9139_v59  ;;  %3260 = vmatpush1.bf16.msra.mxu0 %v9182_v3  ;;  %v9253_v59 = vld [vmem:[#allocation7 + $0x224] ss:$16 sps:$4 sm:$0xff]   ;;  %v9275_v3 = vld [vmem:[#allocation7 + $0x3a0] ss:$16 sps:$4 sm:$0xff]  }
 0x27b   :  { %3261 = vmatprep.subr.bf16.mxu0 %v9187_v5  ;;  %v9281_v5 = vld [vmem:[#allocation7 + $0x380] ss:$16 sps:$4 sm:$0xff]  }
 0x27d   :  { %2423 = vmatpush1.bf16.msra.mxu1 %v9137_v61  ;;  %v9259_v61 = vld [vmem:[#allocation7 + $0x204] ss:$16 sps:$4 sm:$0xff]  }
 0x27e   :  { %2424 = vmatprep.subr.bf16.mxu1 %v9142_v63  ;;  %3262 = vmatpush1.bf16.msra.mxu0 %v9185_v7  ;;  %v9265_v63 = vld [vmem:[#allocation7 + $0x3e4] ss:$16 sps:$4 sm:$0xff]   ;;  %v9287_v7 = vld [vmem:[#allocation7 + $0x360] ss:$16 sps:$4 sm:$0xff]  }
 0x27f   :  { %3263 = vmatprep.subr.bf16.mxu0 %v9190_v9  ;;  %v9293_v9 = vld [vmem:[#allocation7 + $0x340] ss:$16 sps:$4 sm:$0xff]  }
 0x281   :  { %2425 = vmatpush1.bf16.msra.mxu1 %v9140_v2  ;;  %v9271_v2 = vld [vmem:[#allocation7 + $0x3c4] ss:$16 sps:$4 sm:$0xff]  }
 0x282   :  { %2426 = vmatprep.subr.bf16.mxu1 %v9145_v4  ;;  %3264 = vmatpush1.bf16.msra.mxu0 %v9188_v12  ;;  %v9277_v4 = vld [vmem:[#allocation7 + $0x3a4] ss:$16 sps:$4 sm:$0xff]  }
 0x283   :  { %3265 = vmatprep.subr.bf16.mxu0 %v9193_v14  ;;  %v9301_v12 = vld [vmem:[#allocation7 + $0x324] ss:$16 sps:$4 sm:$0xff]   ;;  %v9299_v14 = vld [vmem:[#allocation7 + $0x320] ss:$16 sps:$4 sm:$0xff]  }
 0x285   :  { %2427 = vmatpush2.bf16.msra.mxu1 %v9143_v6  ;;  %v9283_v6 = vld [vmem:[#allocation7 + $0x384] ss:$16 sps:$4 sm:$0xff]  }
 0x286   :  { %2428 = vmatprep.subr.bf16.mxu1 %v9148_v8  ;;  %3266 = vmatpush2.bf16.msra.mxu0 %v9191_v18  ;;  %v9289_v8 = vld [vmem:[#allocation7 + $0x364] ss:$16 sps:$4 sm:$0xff]  }
 0x287   :  { %3267 = vmatprep.subr.bf16.mxu0 %v9196_v20  ;;  %v9307_v18 = vld [vmem:[#allocation7 + $0x304] ss:$16 sps:$4 sm:$0xff]   ;;  %v9305_v20 = vld [vmem:[#allocation7 + $0x300] ss:$16 sps:$4 sm:$0xff]  }
 0x289   :  { %2429 = vmatpush2.bf16.msra.mxu1 %v9146_v10  ;;  %v9295_v10 = vld [vmem:[#allocation7 + $0x344] ss:$16 sps:$4 sm:$0xff]  }
 0x28a   :  { %2430 = vmatprep.subr.bf16.mxu1 %v9151_v13  ;;  %3268 = vmatpush2.bf16.msra.mxu0 %v9194_v22  ;;  %v9313_v22 = vld [vmem:[#allocation7 + $0x2ec] ss:$16 sps:$4 sm:$0xff]  }
 0x28b   :  { %3269 = vmatprep.subr.bf16.mxu0 %v9199_v24 }
 0x28d   :  { %2431 = vmatpush2.bf16.msra.mxu1 %v9149_v15 }
 0x28e   :  { %2432 = vmatprep.subr.bf16.mxu1 %v9154_v19  ;;  %3270 = vmatpush2.bf16.msra.mxu0 %v9197_v26 }
 0x28f   :  { %3271 = vmatprep.subr.bf16.mxu0 %v9202_v29 }
 0x291   :  { %2433 = vmatpush2.bf16.msra.mxu1 %v9152_v21 }
 0x292   :  { %2434 = vmatprep.subr.bf16.mxu1 %v9157_v23  ;;  %3272 = vmatpush2.bf16.msra.mxu0 %v9200_v31  ;;  %v10536_v23 = vld [vmem:[%s10333_s14] sm:$0xf]  ;;  %s10776_s14 = sld [smem:[#allocation23_spill]] }
 0x293   :  { %3273 = vmatprep.subr.bf16.mxu0 %v9205_v32  ;;  %v1630_v24 = vrot.slane %v10536_v23, %v10495_v43 }
 0x295   :  { %2435 = vmatpush2.bf16.msra.mxu1 %v9155_v25  ;;  %v1634_v25 = vrot.slane %v10536_v23, %v10500_v46 }
 0x296   :  { %2436 = vmatprep.subr.bf16.mxu1 %v9160_v27  ;;  %3274 = vmatpush2.bf16.msra.mxu0 %v9203_v33 }
 0x297   :  { %3275 = vmatprep.subr.bf16.mxu0 %v9208_v34 }
 0x299   :  { %2437 = vmatpush2.bf16.msra.mxu1 %v9158_v30 }
 0x29a   :  { %2438 = vmatprep.subr.bf16.mxu1 %v9163_v16  ;;  %3276 = vmatpush2.bf16.msra.mxu0 %v9206_v37 }
 0x29b   :  { %3277 = vmatprep.subr.bf16.mxu0 %v9211_v38 }
 0x29d   :  { %2439 = vmatpush2.bf16.msra.mxu1 %v9161_v17 }
 0x29e   :  { %2440 = vmatprep.subr.bf16.mxu1 %v9166_v28  ;;  %3278 = vmatpush2.bf16.msra.mxu0 %v9209_v39 }
 0x29f   :  { %3279 = vmatprep.subr.bf16.mxu0 %v9214_v40  ;;  %v9218_v40 = vld [vmem:[#allocation7 + $0xe8] ss:$16 sps:$4 sm:$0xff]  }
 0x2a1   :  { %2441 = vmatpush2.bf16.msra.mxu1 %v9164_v35 }
 0x2a2   :  { %3280 = vmatpush2.bf16.msra.mxu0 %v9212_v41  ;;  %3290 = vmatprep.subr.bf16.mxu1 %v9217_v45  ;;  %v9224_v45 = vld [vmem:[#allocation7 + $0xc8] ss:$16 sps:$4 sm:$0xff]  }
 0x2a3   :  { %3331 = vmatprep.subr.bf16.mxu0 %v9220_v48  ;;  %v9232_v48 = vld [vmem:[#allocation7 + $0xac] ss:$16 sps:$4 sm:$0xff]  }
 0x2a4   :  { %2443 = vmatmul.mubr.bf16.vlgmr.msra.gmra.mxu1 %v10530_v36  ;;  %v9229_v36 = vld [vmem:[#allocation7 + $0x2a4] ss:$16 sps:$4 sm:$0xff]  }
 0x2a5   :  { %3291 = vmatpush1.bf16.msra.mxu1 %v9215_v42  ;;  %v9226_v42 = vld [vmem:[#allocation7 + $0xcc] ss:$16 sps:$4 sm:$0xff]  }
 0x2a6   :  { %3292 = vmatprep.subr.bf16.mxu1 %v9223_v51  ;;  %v9238_v51 = vld [vmem:[#allocation7 + $0x8c] ss:$16 sps:$4 sm:$0xff]  }
 0x2a9   :  { %3293 = vmatpush1.bf16.msra.mxu1 %v9221_v50  ;;  %v9230_v50 = vld [vmem:[#allocation7 + $0xa8] ss:$16 sps:$4 sm:$0xff]  }
 0x2aa   :  { %3294 = vmatprep.subr.bf16.mxu1 %v9229_v36  ;;  %v9244_v36 = vld [vmem:[#allocation7 + $0x6c] ss:$16 sps:$4 sm:$0xff]  }
 0x2ad   :  { %3295 = vmatpush1.bf16.msra.mxu1 %v9227_v52  ;;  %v9236_v52 = vld [vmem:[#allocation7 + $0x88] ss:$16 sps:$4 sm:$0xff]  }
 0x2ae   :  { %3296 = vmatprep.subr.bf16.mxu1 %v9235_v53  ;;  %v9250_v53 = vld [vmem:[#allocation7 + $0x4c] ss:$16 sps:$4 sm:$0xff]  }
 0x2b1   :  { %3297 = vmatpush1.bf16.msra.mxu1 %v9233_v49  ;;  %v9242_v49 = vld [vmem:[#allocation7 + $0x68] ss:$16 sps:$4 sm:$0xff]  }
 0x2b2   :  { %3298 = vmatprep.subr.bf16.mxu1 %v9241_v55  ;;  %v9256_v55 = vld [vmem:[#allocation7 + $0x2c] ss:$16 sps:$4 sm:$0xff]  }
 0x2b5   :  { %3299 = vmatpush1.bf16.msra.mxu1 %v9239_v54  ;;  %v9248_v54 = vld [vmem:[#allocation7 + $0x48] ss:$16 sps:$4 sm:$0xff]  }
 0x2b6   :  { %3300 = vmatprep.subr.bf16.mxu1 %v9247_v57  ;;  %v9262_v57 = vld [vmem:[#allocation7 + $0xc] ss:$16 sps:$4 sm:$0xff]  }
 0x2b9   :  { %3301 = vmatpush1.bf16.msra.mxu1 %v9245_v56  ;;  %v9254_v56 = vld [vmem:[#allocation7 + $0x28] ss:$16 sps:$4 sm:$0xff]  }
 0x2ba   :  { %3302 = vmatprep.subr.bf16.mxu1 %v9253_v59  ;;  %v9268_v59 = vld [vmem:[#allocation7 + $0x1ec] ss:$16 sps:$4 sm:$0xff]  }
 0x2bd   :  { %3303 = vmatpush1.bf16.msra.mxu1 %v9251_v58  ;;  %v9260_v58 = vld [vmem:[#allocation7 + $0x8] ss:$16 sps:$4 sm:$0xff]  }
 0x2be   :  { %3304 = vmatprep.subr.bf16.mxu1 %v9259_v61  ;;  %v9274_v61 = vld [vmem:[#allocation7 + $0x1cc] ss:$16 sps:$4 sm:$0xff]  }
 0x2c1   :  { %3305 = vmatpush1.bf16.msra.mxu1 %v9257_v60  ;;  %v9266_v60 = vld [vmem:[#allocation7 + $0x1e8] ss:$16 sps:$4 sm:$0xff]  }
 0x2c2   :  { %3306 = vmatprep.subr.bf16.mxu1 %v9265_v63  ;;  %v9280_v63 = vld [vmem:[#allocation7 + $0x1ac] ss:$16 sps:$4 sm:$0xff]  }
 0x2c5   :  { %3307 = vmatpush2.bf16.msra.mxu1 %v9263_v62  ;;  %v9272_v62 = vld [vmem:[#allocation7 + $0x1c8] ss:$16 sps:$4 sm:$0xff]  }
 0x2c6   :  { %3308 = vmatprep.subr.bf16.mxu1 %v9271_v2  ;;  %v9286_v2 = vld [vmem:[#allocation7 + $0x18c] ss:$16 sps:$4 sm:$0xff]  }
 0x2c9   :  { %3309 = vmatpush2.bf16.msra.mxu1 %v9269_v1  ;;  %v9278_v1 = vld [vmem:[#allocation7 + $0x1a8] ss:$16 sps:$4 sm:$0xff]  }
 0x2ca   :  { %3310 = vmatprep.subr.bf16.mxu1 %v9277_v4  ;;  %v9292_v4 = vld [vmem:[#allocation7 + $0x16c] ss:$16 sps:$4 sm:$0xff]  }
 0x2cd   :  { %3311 = vmatpush2.bf16.msra.mxu1 %v9275_v3  ;;  %v9284_v3 = vld [vmem:[#allocation7 + $0x188] ss:$16 sps:$4 sm:$0xff]  }
 0x2ce   :  { %3312 = vmatprep.subr.bf16.mxu1 %v9283_v6  ;;  %v9298_v6 = vld [vmem:[#allocation7 + $0x14c] ss:$16 sps:$4 sm:$0xff]  }
 0x2d1   :  { %3313 = vmatpush2.bf16.msra.mxu1 %v9281_v5  ;;  %v9290_v5 = vld [vmem:[#allocation7 + $0x168] ss:$16 sps:$4 sm:$0xff]  }
 0x2d2   :  { %3314 = vmatprep.subr.bf16.mxu1 %v9289_v8  ;;  %v9296_v8 = vld [vmem:[#allocation7 + $0x148] ss:$16 sps:$4 sm:$0xff]  }
 0x2d5   :  { %3315 = vmatpush2.bf16.msra.mxu1 %v9287_v7  ;;  %v1638_v7 = vrot.slane %v10536_v23, %v10497_v44 }
 0x2d6   :  { %3316 = vmatprep.subr.bf16.mxu1 %v9295_v10  ;;  %v1642_v10 = vrot.slane %v10536_v23, %v10502_v47 }
 0x2d9   :  { %3317 = vmatpush2.bf16.msra.mxu1 %v9293_v9  ;;  %v9304_v9 = vld [vmem:[#allocation7 + $0x12c] ss:$16 sps:$4 sm:$0xff]  }
 0x2da   :  { %3318 = vmatprep.subr.bf16.mxu1 %v9301_v12 }
 0x2dd   :  { %3319 = vmatpush2.bf16.msra.mxu1 %v9299_v14 }
 0x2de   :  { %3320 = vmatprep.subr.bf16.mxu1 %v9307_v18 }
 0x2e1   :  { %3321 = vmatpush2.bf16.msra.mxu1 %v9305_v20 }
 0x2e2   :  { %3372 = vmatprep.subr.bf16.mxu1 %v9313_v22  ;;  %v9308_v22 = vld [vmem:[#allocation7 + $0x108] ss:$16 sps:$4 sm:$0xff]  }
 0x2e4   :  { %v2321_v13 = vpop.f32.mrf.mxu0 }
 0x2e5   :  { %v2322_v26 = vadd.f32 %v2321_v13, %v1630_v24  ;;  %v9302_v13 = vld [vmem:[#allocation7 + $0x128] ss:$16 sps:$4 sm:$0xff]  }
 0x2e6   :  { %v2323_v15 = vpop.f32.mrf.mxu0 }
 0x2e7   :  { %v2324_v30 = vadd.f32 %v2323_v15, %v1634_v25  ;;  %v9310_v15 = vld [vmem:[#allocation7 + $0x10c] ss:$16 sps:$4 sm:$0xff]  }
 0x2e8   :  { %v2325_v19 = vpop.f32.mrf.mxu0 }
 0x2ea   :  { %v2326_v21 = vpop.f32.mrf.mxu0 }
 0x324   :  { %v2362_v27 = vpop.f32.mrf.mxu1  ;;  %v10542_v29 = vpop.f32.mrf.mxu0 }
 0x325   :  { %v2363_v31 = vadd.f32 %v2362_v27, %v2322_v26  ;;  %v2404_v12 = vadd.f32 %v10542_v29, %v1638_v7  ;;  %v9311_v29 = vld [vmem:[#allocation7 + $0x2e8] ss:$16 sps:$4 sm:$0xff]   ;;  %v9355_v7 = vld [vmem:[#allocation7 + $0x32c] ss:$16 sps:$4 sm:$0xff]  }
 0x326   :  { %v2364_v16 = vpop.f32.mrf.mxu1  ;;  %v10544_v32 = vpop.f32.mrf.mxu0 }
 0x327   :  { %v2365_v17 = vadd.f32 %v2364_v16, %v2324_v30  ;;  %v2451_v33 = vmax.f32 %v2363_v31, 0.0  ;;  %v2406_v18 = vadd.f32 %v10544_v32, %v1642_v10  ;;  %v9316_v31 = vld [vmem:[#allocation7 + $0x2cc] ss:$16 sps:$4 sm:$0xff]   ;;  %v9314_v16 = vld [vmem:[#allocation7 + $0x2c8] ss:$16 sps:$4 sm:$0xff]  }
 0x328   :  { %v2366_v28 = vpop.f32.mrf.mxu1  ;;  %v2407_v34 = vpop.f32.mrf.mxu0  ;;  %v9319_v32 = vld [vmem:[#allocation7 + $0x2ac] ss:$16 sps:$4 sm:$0xff]   ;;  %v9356_v10 = vld [vmem:[#allocation7 + $0x308] ss:$16 sps:$4 sm:$0xff]  }
 0x329   :  { %v2452_v35 = vmax.f32 %v2365_v17, 0.0  ;;  %v10546_v41 = vpack.c.bf16 %v2451_v33, %v2451_v33  ;;  %v9317_v17 = vld [vmem:[#allocation7 + $0x2a8] ss:$16 sps:$4 sm:$0xff]   ;;  %v9322_v33 = vld [vmem:[#allocation7 + $0x28c] ss:$16 sps:$4 sm:$0xff]  }
 0x32a   :  { %v2367_v37 = vpop.f32.mrf.mxu1  ;;  %v2408_v38 = vpop.f32.mrf.mxu0  ;;  %v9359_v28 = vld [vmem:[%s10348_s30 + $0x78] sm:$0xff]  }
 0x32b   :  { %v2456_v39 = vpack.c.bf16 %v2452_v35, %v2452_v35  ;;  %v9360_v34 = vld [vmem:[%s10348_s30 + $0x38] sm:$0xff]   ;;  %v9361_v35 = vld [vmem:[%s10348_s30 + $0x70] sm:$0xff]  }
 0x32c   :  { %v9320_v37 = vld [vmem:[#allocation7 + $0x288] ss:$16 sps:$4 sm:$0xff]   ;;  %v9362_v38 = vld [vmem:[%s10348_s30 + $0x30] sm:$0xff]  }
 0x32d   :  { %3281 = vmatprep.mubr.bf16.mxu0 %v2456_v39 }
 0x32e   :  { %3282 = vmatmul.mubr.bf16.vlgmr.msra.gmra.mxu0 %v10546_v41 }
 0x32f   :  { %3332 = vmatpush1.bf16.msra.mxu0 %v9218_v40  ;;  %3363 = vmatprep.mubr.bf16.mxu0 %v2456_v39  ;;  %v9325_v39 = vld [vmem:[#allocation7 + $0x26c] ss:$16 sps:$4 sm:$0xff]  }
 0x330   :  { %3333 = vmatprep.subr.bf16.mxu0 %v9226_v42  ;;  %v9363_v40 = vld [vmem:[%s10348_s30 + $0x68] sm:$0xff]  }
 0x331   :  { %v9364_v42 = vld [vmem:[%s10348_s30 + $0x28] sm:$0xff]  }
 0x333   :  { %3334 = vmatpush1.bf16.msra.mxu0 %v9224_v45  ;;  %v9328_v45 = vld [vmem:[#allocation7 + $0x24c] ss:$16 sps:$4 sm:$0xff]  }
 0x334   :  { %3335 = vmatprep.subr.bf16.mxu0 %v9232_v48  ;;  %v9365_v48 = vld [vmem:[%s10348_s30 + $0x60] sm:$0xff]  }
 0x337   :  { %3336 = vmatpush1.bf16.msra.mxu0 %v9230_v50  ;;  %v9326_v50 = vld [vmem:[#allocation7 + $0x248] ss:$16 sps:$4 sm:$0xff]  }
 0x338   :  { %3337 = vmatprep.subr.bf16.mxu0 %v9238_v51  ;;  %v9366_v51 = vld [vmem:[%s10348_s30 + $0x20] sm:$0xff]  }
 0x33b   :  { %3338 = vmatpush1.bf16.msra.mxu0 %v9236_v52  ;;  %v9331_v52 = vld [vmem:[#allocation7 + $0x22c] ss:$16 sps:$4 sm:$0xff]  }
 0x33c   :  { %3339 = vmatprep.subr.bf16.mxu0 %v9244_v36  ;;  %v9367_v36 = vld [vmem:[%s10348_s30 + $0x58] sm:$0xff]  }
 0x33f   :  { %3340 = vmatpush1.bf16.msra.mxu0 %v9242_v49  ;;  %v9329_v49 = vld [vmem:[#allocation7 + $0x228] ss:$16 sps:$4 sm:$0xff]  }
 0x340   :  { %3341 = vmatprep.subr.bf16.mxu0 %v9250_v53  ;;  %v9368_v53 = vld [vmem:[%s10348_s30 + $0x18] sm:$0xff]  }
 0x343   :  { %3342 = vmatpush1.bf16.msra.mxu0 %v9248_v54  ;;  %v9334_v54 = vld [vmem:[#allocation7 + $0x20c] ss:$16 sps:$4 sm:$0xff]  }
 0x344   :  { %3343 = vmatprep.subr.bf16.mxu0 %v9256_v55  ;;  %v9369_v55 = vld [vmem:[%s10348_s30 + $0x50] sm:$0xff]  }
 0x347   :  { %3344 = vmatpush1.bf16.msra.mxu0 %v9254_v56  ;;  %v9332_v56 = vld [vmem:[#allocation7 + $0x208] ss:$16 sps:$4 sm:$0xff]  }
 0x348   :  { %3345 = vmatprep.subr.bf16.mxu0 %v9262_v57  ;;  %v9370_v57 = vld [vmem:[%s10348_s30 + $0x10] sm:$0xff]  }
 0x34b   :  { %3346 = vmatpush1.bf16.msra.mxu0 %v9260_v58  ;;  %v9337_v58 = vld [vmem:[#allocation7 + $0x3ec] ss:$16 sps:$4 sm:$0xff]  }
 0x34c   :  { %3347 = vmatprep.subr.bf16.mxu0 %v9268_v59  ;;  %v9335_v59 = vld [vmem:[#allocation7 + $0x3e8] ss:$16 sps:$4 sm:$0xff]  }
 0x34f   :  { %3348 = vmatpush2.bf16.msra.mxu0 %v9266_v60  ;;  %v9340_v60 = vld [vmem:[#allocation7 + $0x3cc] ss:$16 sps:$4 sm:$0xff]  }
 0x350   :  { %3349 = vmatprep.subr.bf16.mxu0 %v9274_v61  ;;  %v9338_v61 = vld [vmem:[#allocation7 + $0x3c8] ss:$16 sps:$4 sm:$0xff]  }
 0x353   :  { %3350 = vmatpush2.bf16.msra.mxu0 %v9272_v62  ;;  %v9343_v62 = vld [vmem:[#allocation7 + $0x3ac] ss:$16 sps:$4 sm:$0xff]  }
 0x354   :  { %3351 = vmatprep.subr.bf16.mxu0 %v9280_v63  ;;  %v9341_v63 = vld [vmem:[#allocation7 + $0x3a8] ss:$16 sps:$4 sm:$0xff]  }
 0x357   :  { %3352 = vmatpush2.bf16.msra.mxu0 %v9278_v1  ;;  %v9346_v1 = vld [vmem:[#allocation7 + $0x38c] ss:$16 sps:$4 sm:$0xff]  }
 0x358   :  { %3353 = vmatprep.subr.bf16.mxu0 %v9286_v2  ;;  %v9344_v2 = vld [vmem:[#allocation7 + $0x388] ss:$16 sps:$4 sm:$0xff]  }
 0x35b   :  { %3354 = vmatpush2.bf16.msra.mxu0 %v9284_v3  ;;  %v9349_v3 = vld [vmem:[#allocation7 + $0x36c] ss:$16 sps:$4 sm:$0xff]  }
 0x35c   :  { %3355 = vmatprep.subr.bf16.mxu0 %v9292_v4  ;;  %v9347_v4 = vld [vmem:[#allocation7 + $0x368] ss:$16 sps:$4 sm:$0xff]  }
 0x35f   :  { %3356 = vmatpush2.bf16.msra.mxu0 %v9290_v5  ;;  %v9352_v5 = vld [vmem:[#allocation7 + $0x34c] ss:$16 sps:$4 sm:$0xff]  }
 0x360   :  { %3357 = vmatprep.subr.bf16.mxu0 %v9298_v6  ;;  %v9350_v6 = vld [vmem:[#allocation7 + $0x348] ss:$16 sps:$4 sm:$0xff]  }
 0x363   :  { %3358 = vmatpush2.bf16.msra.mxu0 %v9296_v8  ;;  %v9353_v8 = vld [vmem:[#allocation7 + $0x328] ss:$16 sps:$4 sm:$0xff]  }
 0x364   :  { %v2444_v14 = vpop.f32.mrf.mxu1  ;;  %3359 = vmatprep.subr.bf16.mxu0 %v9304_v9  ;;  %v9358_v9 = vld [vmem:[#allocation7 + $0x30c] ss:$16 sps:$4 sm:$0xff]  }
 0x365   :  { %v2445_v19 = vadd.f32 %v2444_v14, %v2404_v12  ;;  %v9371_v12 = vld [vmem:[%s10348_s30 + $0x48] sm:$0xff]   ;;  %v9373_v14 = vld [vmem:[%s10348_s30 + $0x40] sm:$0xff]  }
 0x366   :  { %v2446_v20 = vpop.f32.mrf.mxu1 }
 0x367   :  { %v2447_v21 = vadd.f32 %v2446_v20, %v2406_v18  ;;  %3360 = vmatpush2.bf16.msra.mxu0 %v9302_v13  ;;  %v2453_v24 = vmax.f32 %v2445_v19, 0.0  ;;  %v9372_v13 = vld [vmem:[%s10348_s30 + $0x8] sm:$0xff]   ;;  %v9375_v18 = vld [vmem:[%s10770_s5 + $0x78] sm:$0xff]  }
 0x368   :  { %v2448_v25 = vpop.f32.mrf.mxu1  ;;  %3361 = vmatprep.subr.bf16.mxu0 %v9310_v15  ;;  %v9374_v15 = vld [vmem:[%s10348_s30] sm:$0xff]   ;;  %v9391_v19 = vld [vmem:[%s10348_s30 + $0xf8] sm:$0xff]  }
 0x369   :  { %v2454_v26 = vmax.f32 %v2447_v21, 0.0  ;;  %v10555_v30 = vpack.c.bf16 %v2453_v24, %v2453_v24  ;;  %v9392_v20 = vld [vmem:[%s10348_s30 + $0xb8] sm:$0xff]   ;;  %v9393_v21 = vld [vmem:[%s10348_s30 + $0xf0] sm:$0xff]   ;;  %v9395_v24 = vld [vmem:[%s10348_s30 + $0xe8] sm:$0xff]  }
 0x36a   :  { %v2449_v27 = vpop.f32.mrf.mxu1  ;;  %v9396_v25 = vld [vmem:[%s10348_s30 + $0xa8] sm:$0xff]  }
 0x36b   :  { %v2458_v23 = vpack.c.bf16 %v2454_v26, %v2454_v26  ;;  %3362 = vmatpush2.bf16.msra.mxu0 %v9308_v22  ;;  %v9394_v22 = vld [vmem:[%s10348_s30 + $0xb0] sm:$0xff]   ;;  %v9397_v26 = vld [vmem:[%s10348_s30 + $0xe0] sm:$0xff]  }
 0x36c   :  { %8582 = vmatprep.subr.bf16.mxu0 %v9359_v28  ;;  %v9398_v27 = vld [vmem:[%s10348_s30 + $0xa0] sm:$0xff]  }
 0x36d   :  { %3322 = vmatprep.mubr.bf16.mxu1 %v2458_v23  ;;  %v9405_v28 = vld [vmem:[%s10348_s30 + $0xc0] sm:$0xff]  }
 0x36e   :  { %3323 = vmatmul.mubr.bf16.vlgmr.msra.gmra.mxu1 %v10555_v30  ;;  %3364 = vmatmul.mubr.bf16.vlgmr.msra.gmra.mxu0 %v10546_v41  ;;  %v9323_v41 = vld [vmem:[#allocation7 + $0x268] ss:$16 sps:$4 sm:$0xff]  }
 0x36f   :  { %3373 = vmatpush1.bf16.msra.mxu1 %v9311_v29  ;;  %3404 = vmatprep.mubr.bf16.mxu1 %v2458_v23  ;;  %v9399_v23 = vld [vmem:[%s10348_s30 + $0xd8] sm:$0xff]  }
 0x370   :  { %3374 = vmatprep.subr.bf16.mxu1 %v9316_v31  ;;  %8583 = vmatpush3.bf16.msra.mxu0 %v9360_v34  ;;  %v9400_v29 = vld [vmem:[%s10348_s30 + $0x98] sm:$0xff]   ;;  %v9402_v31 = vld [vmem:[%s10348_s30 + $0x90] sm:$0xff]  }
 0x371   :  { %8584 = vmatprep.subr.bf16.mxu0 %v9361_v35  ;;  %v9406_v35 = vld [vmem:[%s10348_s30 + $0x80] sm:$0xff]  }
 0x373   :  { %3375 = vmatpush1.bf16.msra.mxu1 %v9314_v16  ;;  %v9403_v16 = vld [vmem:[%s10348_s30 + $0xc8] sm:$0xff]  }
 0x374   :  { %3376 = vmatprep.subr.bf16.mxu1 %v9319_v32  ;;  %8585 = vmatpush3.bf16.msra.mxu0 %v9362_v38  ;;  %v9407_v38 = vld [vmem:[%s10770_s5 + $0xf8] sm:$0xff]  }
 0x375   :  { %8586 = vmatprep.subr.bf16.mxu0 %v9363_v40 }
 0x377   :  { %3377 = vmatpush1.bf16.msra.mxu1 %v9317_v17  ;;  %v9404_v17 = vld [vmem:[%s10348_s30 + $0x88] sm:$0xff]  }
 0x378   :  { %3378 = vmatprep.subr.bf16.mxu1 %v9322_v33  ;;  %8587 = vmatpush3.bf16.msra.mxu0 %v9364_v42 }
 0x379   :  { %8588 = vmatprep.subr.bf16.mxu0 %v9365_v48 }
 0x37b   :  { %3379 = vmatpush1.bf16.msra.mxu1 %v9320_v37 }
 0x37c   :  { %3380 = vmatprep.subr.bf16.mxu1 %v9325_v39  ;;  %8589 = vmatpush3.bf16.msra.mxu0 %v9366_v51  ;;  %v2587_v39 = vld [vmem:[%s10771_s9] sm:$0xf] }
 0x37d   :  { %8590 = vmatprep.subr.bf16.mxu0 %v9367_v36  ;;  %v2592_v40 = vrot.slane %v2587_v39, %v10495_v43 }
 0x37f   :  { %3381 = vmatpush1.bf16.msra.mxu1 %v9323_v41  ;;  %v2596_v41 = vrot.slane %v2587_v39, %v10500_v46 }
 0x380   :  { %3382 = vmatprep.subr.bf16.mxu1 %v9328_v45  ;;  %8591 = vmatpush3.bf16.msra.mxu0 %v9368_v53 }
 0x381   :  { %8592 = vmatprep.subr.bf16.mxu0 %v9369_v55 }
 0x383   :  { %3383 = vmatpush1.bf16.msra.mxu1 %v9326_v50 }
 0x384   :  { %3384 = vmatprep.subr.bf16.mxu1 %v9331_v52  ;;  %8593 = vmatpush3.bf16.msra.mxu0 %v9370_v57 }
 0x385   :  { %8594 = vmatprep.subr.bf16.mxu0 %v9371_v12  ;;  %v9389_v12 = vld [vmem:[%s10770_s5 + $0x40] sm:$0xff]  }
 0x387   :  { %3385 = vmatpush1.bf16.msra.mxu1 %v9329_v49 }
 0x388   :  { %3386 = vmatprep.subr.bf16.mxu1 %v9334_v54  ;;  %8595 = vmatpush3.bf16.msra.mxu0 %v9372_v13  ;;  %v9390_v13 = vld [vmem:[%s10770_s5] sm:$0xff]  }
 0x389   :  { %8596 = vmatprep.subr.bf16.mxu0 %v9373_v14  ;;  %v2600_v14 = vrot.slane %v2587_v39, %v10497_v44 }
 0x38b   :  { %3387 = vmatpush1.bf16.msra.mxu1 %v9332_v56 }
 0x38c   :  { %3388 = vmatprep.subr.bf16.mxu1 %v9337_v58  ;;  %8597 = vmatpush3.bf16.msra.mxu0 %v9374_v15  ;;  %v2604_v15 = vrot.slane %v2587_v39, %v10502_v47  ;;  %v9418_v39 = vld [vmem:[%s10770_s5 + $0x90] sm:$0xff]  }
 0x38d   :  { %8626 = vmatprep.subr.bf16.mxu0 %v9375_v18 }
 0x38f   :  { %3389 = vmatpush2.bf16.msra.mxu1 %v9335_v59 }
 0x390   :  { %3390 = vmatprep.subr.bf16.mxu1 %v9340_v60  ;;  %v9376_v60 = vld [vmem:[%s10770_s5 + $0x38] sm:$0xff]  }
 0x393   :  { %3391 = vmatpush2.bf16.msra.mxu1 %v9338_v61 }
 0x394   :  { %3392 = vmatprep.subr.bf16.mxu1 %v9343_v62  ;;  %v9377_v62 = vld [vmem:[%s10770_s5 + $0x70] sm:$0xff]  }
 0x397   :  { %3393 = vmatpush2.bf16.msra.mxu1 %v9341_v63  ;;  %v9378_v63 = vld [vmem:[%s10770_s5 + $0x30] sm:$0xff]  }
 0x398   :  { %3394 = vmatprep.subr.bf16.mxu1 %v9346_v1  ;;  %v9379_v1 = vld [vmem:[%s10770_s5 + $0x68] sm:$0xff]  }
 0x39b   :  { %3395 = vmatpush2.bf16.msra.mxu1 %v9344_v2  ;;  %v9380_v2 = vld [vmem:[%s10770_s5 + $0x28] sm:$0xff]  }
 0x39c   :  { %3396 = vmatprep.subr.bf16.mxu1 %v9349_v3  ;;  %v9381_v3 = vld [vmem:[%s10770_s5 + $0x60] sm:$0xff]  }
 0x39f   :  { %3397 = vmatpush2.bf16.msra.mxu1 %v9347_v4  ;;  %v9382_v4 = vld [vmem:[%s10770_s5 + $0x20] sm:$0xff]  }
 0x3a0   :  { %3398 = vmatprep.subr.bf16.mxu1 %v9352_v5  ;;  %v9383_v5 = vld [vmem:[%s10770_s5 + $0x58] sm:$0xff]  }
 0x3a3   :  { %3399 = vmatpush2.bf16.msra.mxu1 %v9350_v6  ;;  %v9384_v6 = vld [vmem:[%s10770_s5 + $0x18] sm:$0xff]  }
 0x3a4   :  { %3400 = vmatprep.subr.bf16.mxu1 %v9355_v7  ;;  %v9385_v7 = vld [vmem:[%s10770_s5 + $0x50] sm:$0xff]  }
 0x3a7   :  { %3401 = vmatpush2.bf16.msra.mxu1 %v9353_v8  ;;  %v9386_v8 = vld [vmem:[%s10770_s5 + $0x10] sm:$0xff]  }
 0x3a8   :  { %3402 = vmatprep.subr.bf16.mxu1 %v9358_v9  ;;  %v9387_v9 = vld [vmem:[%s10770_s5 + $0x48] sm:$0xff]  }
 0x3ab   :  { %3403 = vmatpush2.bf16.msra.mxu1 %v9356_v10  ;;  %v9388_v10 = vld [vmem:[%s10770_s5 + $0x8] sm:$0xff]  }
 0x3ac   :  { %8604 = vmatprep.subr.bf16.mxu1 %v9391_v19 }
 0x3ae   :  { %3405 = vmatmul.mubr.bf16.vlgmr.msra.gmra.mxu1 %v10555_v30  ;;  %v9401_v30 = vld [vmem:[%s10348_s30 + $0xd0] sm:$0xff]   ;;  %s10778_s30 = sld [smem:[#allocation31_spill]] }
 0x3af   :  { %8605 = vmatpush3.bf16.msra.mxu1 %v9392_v20 }
 0x3b0   :  { %8606 = vmatprep.subr.bf16.mxu1 %v9393_v21 }
 0x3b3   :  { %8607 = vmatpush3.bf16.msra.mxu1 %v9394_v22 }
 0x3b4   :  { %8608 = vmatprep.subr.bf16.mxu1 %v9395_v24 }
 0x3b7   :  { %8609 = vmatpush3.bf16.msra.mxu1 %v9396_v25 }
 0x3b8   :  { %8610 = vmatprep.subr.bf16.mxu1 %v9397_v26 }
 0x3bb   :  { %8611 = vmatpush3.bf16.msra.mxu1 %v9398_v27 }
 0x3bc   :  { %8612 = vmatprep.subr.bf16.mxu1 %v9399_v23 }
 0x3bf   :  { %8613 = vmatpush3.bf16.msra.mxu1 %v9400_v29 }
 0x3c0   :  { %8614 = vmatprep.subr.bf16.mxu1 %v9401_v30  ;;  %v9408_v30 = vld [vmem:[%s10770_s5 + $0xb8] sm:$0xff]  }
 0x3c3   :  { %8615 = vmatpush3.bf16.msra.mxu1 %v9402_v31 }
 0x3c4   :  { %8616 = vmatprep.subr.bf16.mxu1 %v9403_v16  ;;  %v9409_v16 = vld [vmem:[%s10770_s5 + $0xf0] sm:$0xff]  }
 0x3c7   :  { %8617 = vmatpush3.bf16.msra.mxu1 %v9404_v17  ;;  %v9411_v17 = vld [vmem:[%s10770_s5 + $0xe8] sm:$0xff]  }
 0x3c8   :  { %8618 = vmatprep.subr.bf16.mxu1 %v9405_v28  ;;  %v9413_v28 = vld [vmem:[%s10770_s5 + $0xe0] sm:$0xff]  }
 0x3cb   :  { %8619 = vmatpush3.bf16.msra.mxu1 %v9406_v35  ;;  %v9415_v35 = vld [vmem:[%s10770_s5 + $0xd8] sm:$0xff]  }
 0x3cc   :  { %8648 = vmatprep.subr.bf16.mxu1 %v9407_v38  ;;  %v9417_v38 = vld [vmem:[%s10770_s5 + $0xd0] sm:$0xff]  }
 0x3ee   :  { %v3283_v32 = vpop.f32.mrf.mxu0 }
 0x3ef   :  { %v3284_v42 = vadd.f32 %v3283_v32, %v2592_v40  ;;  %v9410_v32 = vld [vmem:[%s10770_s5 + $0xb0] sm:$0xff]   ;;  %v9419_v40 = vld [vmem:[%s10770_s5 + $0xc8] sm:$0xff]  }
 0x3f0   :  { %v3285_v33 = vpop.f32.mrf.mxu0 }
 0x3f1   :  { %v3286_v50 = vadd.f32 %v3285_v33, %v2596_v41  ;;  %v9412_v33 = vld [vmem:[%s10770_s5 + $0xa8] sm:$0xff]  }
 0x3f2   :  { %v3287_v34 = vpop.f32.mrf.mxu0  ;;  %v9420_v41 = vld [vmem:[%s10770_s5 + $0x88] sm:$0xff]  }
 0x3f3   :  { %v9414_v34 = vld [vmem:[%s10770_s5 + $0xa0] sm:$0xff]  }
 0x3f4   :  { %v3288_v37 = vpop.f32.mrf.mxu0 }
 0x3f5   :  { %v9416_v37 = vld [vmem:[%s10770_s5 + $0x98] sm:$0xff]  }
 0x42e   :  { %v3324_v45 = vpop.f32.mrf.mxu1  ;;  %v3365_v48 = vpop.f32.mrf.mxu0 }
 0x42f   :  { %v3325_v51 = vadd.f32 %v3324_v45, %v3284_v42  ;;  %v3366_v18 = vadd.f32 %v3365_v48, %v2600_v14  ;;  %v9421_v42 = vld [vmem:[%s10770_s5 + $0xc0] sm:$0xff]  }
 0x430   :  { %v3326_v52 = vpop.f32.mrf.mxu1  ;;  %v3367_v36 = vpop.f32.mrf.mxu0  ;;  %v9422_v45 = vld [vmem:[%s10770_s5 + $0x80] sm:$0xff]  }
 0x431   :  { %v3327_v49 = vadd.f32 %v3326_v52, %v3286_v50  ;;  %v3413_v53 = vmax.f32 %v3325_v51, 0.0  ;;  %v3368_v20 = vadd.f32 %v3367_v36, %v2604_v15  ;;  %v4121_v48 = vld [vmem:[%s10772_s17] sm:$0xff]  ;;  %v4122_v52 = vld [vmem:[%s10772_s17 + $0x8] sm:$0xff] }
 0x432   :  { %v3328_v54 = vpop.f32.mrf.mxu1  ;;  %v3369_v55 = vpop.f32.mrf.mxu0  ;;  %v8152_v50 = vcombine.high %v4121_v48, %v4121_v48  ;;  %v8151_v51 = vcombine.low %v4121_v48, %v4121_v48  ;;  %v9429_v36 = vld [vmem:[%s10773_s21 + $0x4] ss:$16 sps:$4 sm:$0xff]   ;;  %v8118_v15 = vld [vmem:[%s10775_s3] ss:$0 sm:$0xff] }
 0x433   :  { %v3414_v56 = vmax.f32 %v3327_v49, 0.0  ;;  %v3417_v61 = vpack.c.bf16 %v3413_v53, %v3413_v53  ;;  %v8154_v49 = vcombine.high %v4122_v52, %v4122_v52  ;;  %v8153_v53 = vcombine.low %v4122_v52, %v4122_v52  ;;  %v9432_v54 = vld [vmem:[%s10773_s21 + $0xc] ss:$16 sps:$4 sm:$0xff]   ;;  %v9454_v48 = vld [vmem:[#allocation8 + $0x280] ss:$16 sps:$4 sm:$0xff]  }
 0x434   :  { %v3329_v57 = vpop.f32.mrf.mxu1  ;;  %v3370_v58 = vpop.f32.mrf.mxu0  ;;  %v4134_v55 = vsel %vm240_vm0, %v8151_v51, 0  ;;  %v9462_v51 = vld [vmem:[#allocation8 + $0x264] ss:$16 sps:$4 sm:$0xff]   ;;  %v9457_v52 = vld [vmem:[#allocation8 + $0x60] ss:$16 sps:$4 sm:$0xff]  }
 0x435   :  { %v3418_v59 = vpack.c.bf16 %v3414_v56, %v3414_v56  ;;  %v4140_v56 = vsel %vm240_vm0, %v8153_v53, 0  ;;  %v9427_v57 = vld [vmem:[%s10773_s21] ss:$16 sps:$4 sm:$0xff]   ;;  %v9430_v58 = vld [vmem:[%s10773_s21 + $0x8] ss:$16 sps:$4 sm:$0xff]  }
 0x436   :  { %v9468_v53 = vld [vmem:[#allocation8 + $0x244] ss:$16 sps:$4 sm:$0xff]  }
 0x437   :  { %3716 = vmatprep.mubr.bf16.mxu0 %v3418_v59 }
 0x438   :  { %3717 = vmatmul.mubr.bf16.vlgmr.msra.gmra.mxu0 %v3417_v61 }
 0x439   :  { %8627 = vmatpush3.bf16.msra.mxu0 %v9376_v60  ;;  %4059 = vmatprep.mubr.bf16.mxu0 %v3418_v59  ;;  %v9435_v59 = vld [vmem:[#allocation8 + $0xe4] ss:$16 sps:$4 sm:$0xff]  }
 0x43a   :  { %8628 = vmatprep.subr.bf16.mxu0 %v9377_v62 }
 0x43d   :  { %8629 = vmatpush3.bf16.msra.mxu0 %v9378_v63 }
 0x43e   :  { %8630 = vmatprep.subr.bf16.mxu0 %v9379_v1 }
 0x441   :  { %8631 = vmatpush3.bf16.msra.mxu0 %v9380_v2 }
 0x442   :  { %8632 = vmatprep.subr.bf16.mxu0 %v9381_v3 }
 0x445   :  { %8633 = vmatpush3.bf16.msra.mxu0 %v9382_v4 }
 0x446   :  { %8634 = vmatprep.subr.bf16.mxu0 %v9383_v5 }
 0x449   :  { %8635 = vmatpush3.bf16.msra.mxu0 %v9384_v6  ;;  %v8085_v6 = vld [vmem:[%s10774_s25] ss:$0 sm:$0xff] }
 0x44a   :  { %8636 = vmatprep.subr.bf16.mxu0 %v9385_v7 }
 0x44d   :  { %8637 = vmatpush3.bf16.msra.mxu0 %v9386_v8 }
 0x44e   :  { %8638 = vmatprep.subr.bf16.mxu0 %v9387_v9 }
 0x451   :  { %8639 = vmatpush3.bf16.msra.mxu0 %v9388_v10 }
 0x452   :  { %8640 = vmatprep.subr.bf16.mxu0 %v9389_v12 }
 0x455   :  { %8641 = vmatpush3.bf16.msra.mxu0 %v9390_v13 }
 0x456   :  { %8155 = vmatprep.subr.msk.bf16.mxu0 %vm240_vm0, %v8152_v50  ;;  %v9459_v50 = vld [vmem:[#allocation8 + $0x64] ss:$16 sps:$4 sm:$0xff]  }
 0x458   :  { %4060 = vmatmul.mubr.bf16.vlgmr.msra.gmra.mxu0 %v3417_v61  ;;  %v9438_v61 = vld [vmem:[#allocation8 + $0x2e4] ss:$16 sps:$4 sm:$0xff]  }
 0x459   :  { %4177 = vmatprep.mubr.bf16.mxu0 %v10276_v0  ;;  %4160 = vmatpush1.bf16.msra.mxu0 %v4134_v55  ;;  %v9466_v55 = vld [vmem:[#allocation8 + $0x240] ss:$16 sps:$4 sm:$0xff]  }
 0x45a   :  { %4264 = vmatprep.subr.bf16.mxu0 %v9429_v36  ;;  %v9460_v36 = vld [vmem:[#allocation8 + $0x260] ss:$16 sps:$4 sm:$0xff]  }
 0x460   :  { %8156 = vmatmul.mubr.msk.bf16.vlgmr.msra.gmra.mxu0 %vm236_vm1, %v10469_v11 }
 0x461   :  { %4265 = vmatpush1.bf16.msra.mxu0 %v9427_v57  ;;  %4282 = vmatprep.mubr.bf16.mxu0 %v10276_v0  ;;  %v9474_v57 = vld [vmem:[#allocation8 + $0x224] ss:$16 sps:$4 sm:$0xff]  }
 0x462   :  { %5156 = vmatprep.subr.bf16.mxu0 %v9435_v59  ;;  %v9472_v59 = vld [vmem:[#allocation8 + $0x220] ss:$16 sps:$4 sm:$0xff]  }
 0x46e   :  { %v3406_v19 = vpop.f32.mrf.mxu1 }
 0x46f   :  { %v3407_v21 = vadd.f32 %v3406_v19, %v3366_v18 }
 0x470   :  { %v3408_v22 = vpop.f32.mrf.mxu1 }
 0x471   :  { %v3409_v24 = vadd.f32 %v3408_v22, %v3368_v20  ;;  %v3415_v25 = vmax.f32 %v3407_v21, 0.0 }
 0x472   :  { %v3410_v26 = vpop.f32.mrf.mxu1 }
 0x473   :  { %v3416_v27 = vmax.f32 %v3409_v24, 0.0  ;;  %v3419_v31 = vpack.c.bf16 %v3415_v25, %v3415_v25 }
 0x474   :  { %v3411_v23 = vpop.f32.mrf.mxu1 }
 0x475   :  { %v3420_v29 = vpack.c.bf16 %v3416_v27, %v3416_v27  ;;  %v4110_v23 = vld [vmem:[%s10776_s14] sm:$0xff] }
 0x477   :  { %3756 = vmatprep.mubr.bf16.mxu1 %v3420_v29 }
 0x478   :  { %3757 = vmatmul.mubr.bf16.vlgmr.msra.gmra.mxu1 %v3419_v31 }
 0x479   :  { %8649 = vmatpush3.bf16.msra.mxu1 %v9408_v30  ;;  %4099 = vmatprep.mubr.bf16.mxu1 %v3420_v29 }
 0x47a   :  { %8650 = vmatprep.subr.bf16.mxu1 %v9409_v16  ;;  %v9433_v16 = vld [vmem:[#allocation8 + $0xe0] ss:$16 sps:$4 sm:$0xff]  }
 0x47d   :  { %8651 = vmatpush3.bf16.msra.mxu1 %v9410_v32  ;;  %v9436_v32 = vld [vmem:[#allocation8 + $0x2e0] ss:$16 sps:$4 sm:$0xff]  }
 0x47e   :  { %8652 = vmatprep.subr.bf16.mxu1 %v9411_v17 }
 0x481   :  { %8653 = vmatpush3.bf16.msra.mxu1 %v9412_v33  ;;  %v9441_v33 = vld [vmem:[#allocation8 + $0xc4] ss:$16 sps:$4 sm:$0xff]  }
 0x482   :  { %8654 = vmatprep.subr.bf16.mxu1 %v9413_v28  ;;  %v9444_v28 = vld [vmem:[#allocation8 + $0x2c4] ss:$16 sps:$4 sm:$0xff]  }
 0x485   :  { %8655 = vmatpush3.bf16.msra.mxu1 %v9414_v34  ;;  %v9439_v34 = vld [vmem:[#allocation8 + $0xc0] ss:$16 sps:$4 sm:$0xff]  }
 0x486   :  { %8656 = vmatprep.subr.bf16.mxu1 %v9415_v35  ;;  %v9442_v35 = vld [vmem:[#allocation8 + $0x2c0] ss:$16 sps:$4 sm:$0xff]  }
 0x489   :  { %8657 = vmatpush3.bf16.msra.mxu1 %v9416_v37  ;;  %v9447_v37 = vld [vmem:[#allocation8 + $0xa4] ss:$16 sps:$4 sm:$0xff]  }
 0x48a   :  { %8658 = vmatprep.subr.bf16.mxu1 %v9417_v38  ;;  %v9450_v38 = vld [vmem:[#allocation8 + $0x2a4] ss:$16 sps:$4 sm:$0xff]  }
 0x48d   :  { %8659 = vmatpush3.bf16.msra.mxu1 %v9418_v39  ;;  %v9445_v39 = vld [vmem:[#allocation8 + $0xa0] ss:$16 sps:$4 sm:$0xff]  }
 0x48e   :  { %8660 = vmatprep.subr.bf16.mxu1 %v9419_v40  ;;  %v9448_v40 = vld [vmem:[#allocation8 + $0x2a0] ss:$16 sps:$4 sm:$0xff]  }
 0x491   :  { %8661 = vmatpush3.bf16.msra.mxu1 %v9420_v41  ;;  %v9453_v41 = vld [vmem:[#allocation8 + $0x84] ss:$16 sps:$4 sm:$0xff]  }
 0x492   :  { %8662 = vmatprep.subr.bf16.mxu1 %v9421_v42  ;;  %v9456_v42 = vld [vmem:[#allocation8 + $0x284] ss:$16 sps:$4 sm:$0xff]  }
 0x495   :  { %8663 = vmatpush3.bf16.msra.mxu1 %v9422_v45  ;;  %v9451_v45 = vld [vmem:[#allocation8 + $0x80] ss:$16 sps:$4 sm:$0xff]  }
 0x496   :  { %8157 = vmatprep.subr.msk.bf16.mxu1 %vm240_vm0, %v8154_v49  ;;  %v9465_v49 = vld [vmem:[#allocation8 + $0x44] ss:$16 sps:$4 sm:$0xff]  }
 0x498   :  { %4100 = vmatmul.mubr.bf16.vlgmr.msra.gmra.mxu1 %v3419_v31 }
 0x499   :  { %4218 = vmatprep.mubr.bf16.mxu1 %v10276_v0  ;;  %4201 = vmatpush1.bf16.msra.mxu1 %v4140_v56  ;;  %v9471_v56 = vld [vmem:[#allocation8 + $0x24] ss:$16 sps:$4 sm:$0xff]  }
 0x49a   :  { %4305 = vmatprep.subr.bf16.mxu1 %v9432_v54  ;;  %v9463_v54 = vld [vmem:[#allocation8 + $0x40] ss:$16 sps:$4 sm:$0xff]  }
 0x4a0   :  { %8158 = vmatmul.mubr.msk.bf16.vlgmr.msra.gmra.mxu1 %vm236_vm1, %v10469_v11 }
 0x4a1   :  { %4306 = vmatpush1.bf16.msra.mxu1 %v9430_v58  ;;  %4323 = vmatprep.mubr.bf16.mxu1 %v10276_v0  ;;  %v9469_v58 = vld [vmem:[#allocation8 + $0x20] ss:$16 sps:$4 sm:$0xff]  }
 0x4a2   :  { %5197 = vmatprep.subr.bf16.mxu1 %v9438_v61  ;;  %v9480_v61 = vld [vmem:[#allocation8 + $0x204] ss:$16 sps:$4 sm:$0xff]  }
 0x4f8   :  { %v8598_v60 = vpop.f32.mrf.mxu0 }
 0x4fa   :  { %v8599_v62 = vpop.f32.mrf.mxu0 }
 0x4fb   :  { %v8600_v5 = vadd.f32 %v8599_v62, %v8598_v60  ;;  %v9477_v60 = vld [vmem:[#allocation8 + $0x4] ss:$16 sps:$4 sm:$0xff]   ;;  %v9475_v62 = vld [vmem:[#allocation8] ss:$16 sps:$4 sm:$0xff]  }
 0x4fc   :  { %v8601_v63 = vpop.f32.mrf.mxu0 }
 0x4fd   :  { %v3719_v9 = vadd.f32 %v8600_v5, %v8085_v6  ;;  %v9478_v63 = vld [vmem:[#allocation8 + $0x200] ss:$16 sps:$4 sm:$0xff]   ;;  %v9492_v5 = vld [vmem:[#allocation8 + $0x3c4] ss:$16 sps:$4 sm:$0xff]  }
 0x4fe   :  { %v8602_v1 = vpop.f32.mrf.mxu0  ;;  %v9487_v6 = vld [vmem:[#allocation8 + $0x1c0] ss:$16 sps:$4 sm:$0xff]  }
 0x4ff   :  { %v9483_v1 = vld [vmem:[#allocation8 + $0x1e4] ss:$16 sps:$4 sm:$0xff]  }
 0x518   :  { %v8642_v2 = vpop.f32.mrf.mxu0 }
 0x51a   :  { %v8643_v3 = vpop.f32.mrf.mxu0 }
 0x51b   :  { %v8644_v14 = vadd.f32 %v8643_v3, %v8642_v2  ;;  %v9486_v2 = vld [vmem:[#allocation8 + $0x3e4] ss:$16 sps:$4 sm:$0xff]   ;;  %v9481_v3 = vld [vmem:[#allocation8 + $0x1e0] ss:$16 sps:$4 sm:$0xff]  }
 0x51c   :  { %v8645_v4 = vpop.f32.mrf.mxu0 }
 0x51d   :  { %v4062_v20 = vadd.f32 %v8644_v14, %v8118_v15  ;;  %v9484_v4 = vld [vmem:[#allocation8 + $0x3e0] ss:$16 sps:$4 sm:$0xff]  }
 0x51e   :  { %v8646_v11 = vpop.f32.mrf.mxu0  ;;  %v9499_v14 = vld [vmem:[#allocation8 + $0x180] ss:$16 sps:$4 sm:$0xff]  }
 0x51f   :  { %v9489_v11 = vld [vmem:[#allocation8 + $0x1c4] ss:$16 sps:$4 sm:$0xff]   ;;  %v9502_v15 = vld [vmem:[#allocation8 + $0x380] ss:$16 sps:$4 sm:$0xff]  }
 0x538   :  { %v8620_v7 = vpop.f32.mrf.mxu1 }
 0x53a   :  { %v8621_v8 = vpop.f32.mrf.mxu1 }
 0x53b   :  { %v8622_v10 = vadd.f32 %v8621_v8, %v8620_v7  ;;  %v9490_v7 = vld [vmem:[#allocation8 + $0x3c0] ss:$16 sps:$4 sm:$0xff]   ;;  %v9495_v8 = vld [vmem:[#allocation8 + $0x1a4] ss:$16 sps:$4 sm:$0xff]  }
 0x53c   :  { %v8623_v0 = vpop.f32.mrf.mxu1 }
 0x53d   :  { %v3759_v12 = vadd.f32 %v8622_v10, %v3719_v9  ;;  %v9498_v9 = vld [vmem:[#allocation8 + $0x3a4] ss:$16 sps:$4 sm:$0xff]   ;;  %v9493_v10 = vld [vmem:[#allocation8 + $0x1a0] ss:$16 sps:$4 sm:$0xff]  }
 0x53e   :  { %v8624_v13 = vpop.f32.mrf.mxu1  ;;  %v9496_v0 = vld [vmem:[#allocation8 + $0x3a0] ss:$16 sps:$4 sm:$0xff]  }
 0x53f   :  { %4108 = vst.msk [vmem:[#allocation14] sm:$0xff] %vm4107_vm3, %v3759_v12  ;;  %v9504_v13 = vld [vmem:[#allocation8 + $0x384] ss:$16 sps:$4 sm:$0xff]  }
 0x558   :  { %v8664_v18 = vpop.f32.mrf.mxu1 }
 0x55a   :  { %v8665_v19 = vpop.f32.mrf.mxu1 }
 0x55b   :  { %v8666_v21 = vadd.f32 %v8665_v19, %v8664_v18  ;;  %v9507_v18 = vld [vmem:[#allocation8 + $0x164] ss:$16 sps:$4 sm:$0xff]  }
 0x55c   :  { %v8667_v22 = vpop.f32.mrf.mxu1  ;;  %v9510_v19 = vld [vmem:[#allocation8 + $0x364] ss:$16 sps:$4 sm:$0xff]  }
 0x55d   :  { %v4102_v24 = vadd.f32 %v8666_v21, %v4062_v20  ;;  %v9505_v20 = vld [vmem:[#allocation8 + $0x160] ss:$16 sps:$4 sm:$0xff]   ;;  %v9513_v22 = vld [vmem:[#allocation8 + $0x144] ss:$16 sps:$4 sm:$0xff]  }
 0x55e   :  { %v8668_v25 = vpop.f32.mrf.mxu1  ;;  %v9508_v21 = vld [vmem:[#allocation8 + $0x360] ss:$16 sps:$4 sm:$0xff]  }
 0x55f   :  { %v4111_v26 = vmul.f32 0.5, %v4102_v24  ;;  %4109 = vst.msk [vmem:[#allocation16] sm:$0xff] %vm4107_vm3, %v4102_v24  ;;  %v9516_v24 = vld [vmem:[#allocation8 + $0x344] ss:$16 sps:$4 sm:$0xff]   ;;  %v9511_v25 = vld [vmem:[#allocation8 + $0x140] ss:$16 sps:$4 sm:$0xff]  }
 0x561   :  { %v4112_v27 = vmul.f32 1.442695, %v4111_v26  ;;  %v9514_v26 = vld [vmem:[#allocation8 + $0x340] ss:$16 sps:$4 sm:$0xff]  }
 0x563   :  { %10041 = vpow2.f32 %v4112_v27  ;;  %v4179_v27 = vpop.f32.mrf.mxu0 }
 0x570   :  { %v10042_v29 = vpop.eup %10041 }
 0x571   :  { %v4114_v30 = vmul.f32 %v10042_v29, %v4110_v23  ;;  %v4220_v23 = vpop.f32.mrf.mxu1  ;;  %v4181_v29 = vpop.f32.mrf.mxu0 }
 0x573   :  { %v4115_v31 = vadd.f32 %v4114_v30, %v3759_v12  ;;  %v9501_v12 = vld [vmem:[#allocation8 + $0x184] ss:$16 sps:$4 sm:$0xff]   ;;  %v4222_v30 = vpop.f32.mrf.mxu1 }
 0x575   :  { %v4116_v17 = vpack.c.bf16 %v4115_v31, %v4115_v31  ;;  %v4183_v31 = vpop.f32.mrf.mxu0 }
 0x576   :  { %v9556_v31 = vld [vmem:[#allocation8 + $0x268] ss:$16 sps:$4 sm:$0xff]  }
 0x577   :  { %8163 = vmatmul.mubr.msk.bf16.vlgmr.msra.gmra.mxu0 %vm4107_vm3, %v4116_v17  ;;  %8164 = vmatmul.mubr.msk.bf16.vlgmr.msra.gmra.mxu1 %vm4107_vm3, %v4116_v17 }
 0x578   :  { %5157 = vmatpush1.bf16.msra.mxu0 %v9433_v16  ;;  %5198 = vmatpush1.bf16.msra.mxu1 %v9436_v32  ;;  %v4224_v16 = vpop.f32.mrf.mxu1  ;;  %v4184_v32 = vpop.f32.mrf.mxu0 }
 0x579   :  { %5158 = vmatprep.subr.bf16.mxu0 %v9441_v33  ;;  %5199 = vmatprep.subr.bf16.mxu1 %v9444_v28  ;;  %v9519_v33 = vld [vmem:[#allocation8 + $0x124] ss:$16 sps:$4 sm:$0xff]   ;;  %v9561_v16 = vld [vmem:[#allocation8 + $0x4c] ss:$16 sps:$4 sm:$0xff]  }
 0x57a   :  { %v4225_v17 = vpop.f32.mrf.mxu1  ;;  %v9522_v28 = vld [vmem:[#allocation8 + $0x324] ss:$16 sps:$4 sm:$0xff]   ;;  %v9564_v32 = vld [vmem:[#allocation8 + $0x24c] ss:$16 sps:$4 sm:$0xff]  }
 0x57b   :  { %v9559_v17 = vld [vmem:[#allocation8 + $0x48] ss:$16 sps:$4 sm:$0xff]  }
 0x57c   :  { %5159 = vmatpush1.bf16.msra.mxu0 %v9439_v34  ;;  %5200 = vmatpush1.bf16.msra.mxu1 %v9442_v35  ;;  %v9517_v34 = vld [vmem:[#allocation8 + $0x120] ss:$16 sps:$4 sm:$0xff]  }
 0x57d   :  { %5160 = vmatprep.subr.bf16.mxu0 %v9447_v37  ;;  %5201 = vmatprep.subr.bf16.mxu1 %v9450_v38  ;;  %v9520_v35 = vld [vmem:[#allocation8 + $0x320] ss:$16 sps:$4 sm:$0xff]   ;;  %v9525_v37 = vld [vmem:[#allocation8 + $0x104] ss:$16 sps:$4 sm:$0xff]  }
 0x57e   :  { %v9528_v38 = vld [vmem:[#allocation8 + $0x304] ss:$16 sps:$4 sm:$0xff]  }
 0x580   :  { %5161 = vmatpush1.bf16.msra.mxu0 %v9445_v39  ;;  %5202 = vmatpush1.bf16.msra.mxu1 %v9448_v40  ;;  %v9523_v39 = vld [vmem:[#allocation8 + $0x100] ss:$16 sps:$4 sm:$0xff]  }
 0x581   :  { %5162 = vmatprep.subr.bf16.mxu0 %v9453_v41  ;;  %5203 = vmatprep.subr.bf16.mxu1 %v9456_v42  ;;  %v9526_v40 = vld [vmem:[#allocation8 + $0x300] ss:$16 sps:$4 sm:$0xff]   ;;  %v9531_v41 = vld [vmem:[#allocation8 + $0xec] ss:$16 sps:$4 sm:$0xff]  }
 0x582   :  { %v9534_v42 = vld [vmem:[#allocation8 + $0x2ec] ss:$16 sps:$4 sm:$0xff]  }
 0x584   :  { %5163 = vmatpush1.bf16.msra.mxu0 %v9451_v45  ;;  %5204 = vmatpush1.bf16.msra.mxu1 %v9454_v48  ;;  %v4332_v45 = vld [vmem:[%s10777_s19] sm:$0xf] }
 0x585   :  { %5164 = vmatprep.subr.bf16.mxu0 %v9459_v50  ;;  %5205 = vmatprep.subr.bf16.mxu1 %v9462_v51  ;;  %v4337_v48 = vrot.slane %v4332_v45, %v10495_v43  ;;  %v4345_v50 = vrot.slane %v4332_v45, %v10497_v44 }
 0x588   :  { %5165 = vmatpush1.bf16.msra.mxu0 %v9457_v52  ;;  %5206 = vmatpush1.bf16.msra.mxu1 %v9460_v36 }
 0x589   :  { %5166 = vmatprep.subr.bf16.mxu0 %v9465_v49  ;;  %5207 = vmatprep.subr.bf16.mxu1 %v9468_v53  ;;  %v4341_v53 = vrot.slane %v4332_v45, %v10500_v46 }
 0x58c   :  { %5167 = vmatpush1.bf16.msra.mxu0 %v9463_v54  ;;  %5208 = vmatpush1.bf16.msra.mxu1 %v9466_v55  ;;  %v4349_v54 = vrot.slane %v4332_v45, %v10502_v47  ;;  %v9582_v45 = vld [vmem:[#allocation8 + $0x3ec] ss:$16 sps:$4 sm:$0xff]  }
 0x58d   :  { %5168 = vmatprep.subr.bf16.mxu0 %v9471_v56  ;;  %5209 = vmatprep.subr.bf16.mxu1 %v9474_v57 }
 0x590   :  { %5169 = vmatpush1.bf16.msra.mxu0 %v9469_v58  ;;  %5210 = vmatpush1.bf16.msra.mxu1 %v9472_v59 }
 0x591   :  { %5170 = vmatprep.subr.bf16.mxu0 %v9477_v60  ;;  %5211 = vmatprep.subr.bf16.mxu1 %v9480_v61 }
 0x594   :  { %5171 = vmatpush1.bf16.msra.mxu0 %v9475_v62  ;;  %5212 = vmatpush1.bf16.msra.mxu1 %v9478_v63 }
 0x595   :  { %5172 = vmatprep.subr.bf16.mxu0 %v9483_v1  ;;  %5213 = vmatprep.subr.bf16.mxu1 %v9486_v2 }
 0x598   :  { %5173 = vmatpush2.bf16.msra.mxu0 %v9481_v3  ;;  %5214 = vmatpush2.bf16.msra.mxu1 %v9484_v4 }
 0x599   :  { %5174 = vmatprep.subr.bf16.mxu0 %v9489_v11  ;;  %5215 = vmatprep.subr.bf16.mxu1 %v9492_v5 }
 0x59c   :  { %5175 = vmatpush2.bf16.msra.mxu0 %v9487_v6  ;;  %5216 = vmatpush2.bf16.msra.mxu1 %v9490_v7 }
 0x59d   :  { %5176 = vmatprep.subr.bf16.mxu0 %v9495_v8  ;;  %5217 = vmatprep.subr.bf16.mxu1 %v9498_v9  ;;  %v9529_v9 = vld [vmem:[#allocation8 + $0xe8] ss:$16 sps:$4 sm:$0xff]  }
 0x5a0   :  { %5177 = vmatpush2.bf16.msra.mxu0 %v9493_v10  ;;  %5218 = vmatpush2.bf16.msra.mxu1 %v9496_v0  ;;  %v9532_v10 = vld [vmem:[#allocation8 + $0x2e8] ss:$16 sps:$4 sm:$0xff]  }
 0x5a1   :  { %5178 = vmatprep.subr.bf16.mxu0 %v9501_v12  ;;  %5219 = vmatprep.subr.bf16.mxu1 %v9504_v13  ;;  %v9537_v13 = vld [vmem:[#allocation8 + $0xcc] ss:$16 sps:$4 sm:$0xff]  }
 0x5a4   :  { %5179 = vmatpush2.bf16.msra.mxu0 %v9499_v14  ;;  %5220 = vmatpush2.bf16.msra.mxu1 %v9502_v15  ;;  %v9540_v14 = vld [vmem:[#allocation8 + $0x2cc] ss:$16 sps:$4 sm:$0xff]   ;;  %v9535_v15 = vld [vmem:[#allocation8 + $0xc8] ss:$16 sps:$4 sm:$0xff]  }
 0x5a5   :  { %5180 = vmatprep.subr.bf16.mxu0 %v9507_v18  ;;  %5221 = vmatprep.subr.bf16.mxu1 %v9510_v19  ;;  %v9538_v18 = vld [vmem:[#allocation8 + $0x2c8] ss:$16 sps:$4 sm:$0xff]   ;;  %v9543_v19 = vld [vmem:[#allocation8 + $0xac] ss:$16 sps:$4 sm:$0xff]  }
 0x5a8   :  { %5181 = vmatpush2.bf16.msra.mxu0 %v9505_v20  ;;  %5222 = vmatpush2.bf16.msra.mxu1 %v9508_v21  ;;  %v9546_v20 = vld [vmem:[#allocation8 + $0x2ac] ss:$16 sps:$4 sm:$0xff]   ;;  %v9541_v21 = vld [vmem:[#allocation8 + $0xa8] ss:$16 sps:$4 sm:$0xff]  }
 0x5a9   :  { %5182 = vmatprep.subr.bf16.mxu0 %v9513_v22  ;;  %5223 = vmatprep.subr.bf16.mxu1 %v9516_v24  ;;  %v9544_v22 = vld [vmem:[#allocation8 + $0x2a8] ss:$16 sps:$4 sm:$0xff]   ;;  %v9549_v24 = vld [vmem:[#allocation8 + $0x8c] ss:$16 sps:$4 sm:$0xff]  }
 0x5ac   :  { %5183 = vmatpush2.bf16.msra.mxu0 %v9511_v25  ;;  %5224 = vmatpush2.bf16.msra.mxu1 %v9514_v26  ;;  %v9552_v25 = vld [vmem:[#allocation8 + $0x28c] ss:$16 sps:$4 sm:$0xff]   ;;  %v9547_v26 = vld [vmem:[#allocation8 + $0x88] ss:$16 sps:$4 sm:$0xff]  }
 0x5ad   :  { %5184 = vmatprep.subr.bf16.mxu0 %v9519_v33  ;;  %5225 = vmatprep.subr.bf16.mxu1 %v9522_v28  ;;  %v9562_v33 = vld [vmem:[#allocation8 + $0x248] ss:$16 sps:$4 sm:$0xff]   ;;  %v9567_v28 = vld [vmem:[#allocation8 + $0x2c] ss:$16 sps:$4 sm:$0xff]  }
 0x5b0   :  { %5185 = vmatpush2.bf16.msra.mxu0 %v9517_v34  ;;  %5226 = vmatpush2.bf16.msra.mxu1 %v9520_v35  ;;  %v9570_v34 = vld [vmem:[#allocation8 + $0x22c] ss:$16 sps:$4 sm:$0xff]   ;;  %v9565_v35 = vld [vmem:[#allocation8 + $0x28] ss:$16 sps:$4 sm:$0xff]  }
 0x5b1   :  { %5186 = vmatprep.subr.bf16.mxu0 %v9525_v37  ;;  %5227 = vmatprep.subr.bf16.mxu1 %v9528_v38  ;;  %v9568_v37 = vld [vmem:[#allocation8 + $0x228] ss:$16 sps:$4 sm:$0xff]   ;;  %v9573_v38 = vld [vmem:[#allocation8 + $0xc] ss:$16 sps:$4 sm:$0xff]  }
 0x5b4   :  { %5187 = vmatpush2.bf16.msra.mxu0 %v9523_v39  ;;  %5228 = vmatpush2.bf16.msra.mxu1 %v9526_v40  ;;  %v9576_v39 = vld [vmem:[#allocation8 + $0x20c] ss:$16 sps:$4 sm:$0xff]   ;;  %v9571_v40 = vld [vmem:[#allocation8 + $0x8] ss:$16 sps:$4 sm:$0xff]  }
 0x5b5   :  { %5238 = vmatprep.subr.bf16.mxu0 %v9531_v41  ;;  %5279 = vmatprep.subr.bf16.mxu1 %v9534_v42  ;;  %v9574_v41 = vld [vmem:[#allocation8 + $0x208] ss:$16 sps:$4 sm:$0xff]   ;;  %v9579_v42 = vld [vmem:[#allocation8 + $0x1ec] ss:$16 sps:$4 sm:$0xff]  }
 0x637   :  { %v4284_v51 = vpop.f32.mrf.mxu0  ;;  %v4325_v52 = vpop.f32.mrf.mxu1 }
 0x638   :  { %v4285_v36 = vadd.f32 %v4284_v51, %v4179_v27  ;;  %v4326_v49 = vadd.f32 %v4325_v52, %v4220_v23  ;;  %v9550_v27 = vld [vmem:[#allocation8 + $0x288] ss:$16 sps:$4 sm:$0xff]   ;;  %v9555_v23 = vld [vmem:[#allocation8 + $0x6c] ss:$16 sps:$4 sm:$0xff]  }
 0x639   :  { %v4286_v55 = vpop.f32.mrf.mxu0  ;;  %v4327_v56 = vpop.f32.mrf.mxu1  ;;  %v9585_v51 = vld [vmem:[#allocation8 + $0x1cc] ss:$16 sps:$4 sm:$0xff]  }
 0x63a   :  { %v4354_v57 = vadd.f32 %v4337_v48, %v4285_v36  ;;  %v4356_v58 = vadd.f32 %v4345_v50, %v4326_v49  ;;  %v4287_v59 = vadd.f32 %v4286_v55, %v4181_v29  ;;  %v4328_v60 = vadd.f32 %v4327_v56, %v4222_v30  ;;  %v9558_v29 = vld [vmem:[#allocation8 + $0x26c] ss:$16 sps:$4 sm:$0xff]   ;;  %v9553_v30 = vld [vmem:[#allocation8 + $0x68] ss:$16 sps:$4 sm:$0xff]  }
 0x63b   :  { %v4288_v61 = vpop.f32.mrf.mxu0  ;;  %v4329_v62 = vpop.f32.mrf.mxu1  ;;  %v9577_v48 = vld [vmem:[#allocation8 + $0x1e8] ss:$16 sps:$4 sm:$0xff]   ;;  %v9588_v52 = vld [vmem:[#allocation8 + $0x3cc] ss:$16 sps:$4 sm:$0xff]  }
 0x63c   :  { %v4355_v63 = vadd.f32 %v4341_v53, %v4287_v59  ;;  %v4357_v1 = vadd.f32 %v4349_v54, %v4328_v60  ;;  %v4358_v2 = vmax.f32 %v4354_v57, 0.0  ;;  %v4360_v3 = vmax.f32 %v4356_v58, 0.0  ;;  %v9580_v50 = vld [vmem:[#allocation8 + $0x3e8] ss:$16 sps:$4 sm:$0xff]   ;;  %v9591_v53 = vld [vmem:[#allocation8 + $0x1ac] ss:$16 sps:$4 sm:$0xff]  }
 0x63d   :  { %v4289_v4 = vpop.f32.mrf.mxu0  ;;  %v4330_v11 = vpop.f32.mrf.mxu1  ;;  %v9583_v36 = vld [vmem:[#allocation8 + $0x1c8] ss:$16 sps:$4 sm:$0xff]   ;;  %v9594_v54 = vld [vmem:[#allocation8 + $0x3ac] ss:$16 sps:$4 sm:$0xff]  }
 0x63e   :  { %v4359_v5 = vmax.f32 %v4355_v63, 0.0  ;;  %v4361_v6 = vmax.f32 %v4357_v1, 0.0  ;;  %v10659_v0 = vpack.c.bf16 %v4358_v2, %v4358_v2  ;;  %v10661_v12 = vpack.c.bf16 %v4360_v3, %v4360_v3  ;;  %v9586_v49 = vld [vmem:[#allocation8 + $0x3c8] ss:$16 sps:$4 sm:$0xff]   ;;  %v9597_v57 = vld [vmem:[#allocation8 + $0x18c] ss:$16 sps:$4 sm:$0xff]  }
 0x63f   :  { %v9589_v55 = vld [vmem:[#allocation8 + $0x1a8] ss:$16 sps:$4 sm:$0xff]   ;;  %v9600_v58 = vld [vmem:[#allocation8 + $0x38c] ss:$16 sps:$4 sm:$0xff]  }
 0x640   :  { %v4363_v7 = vpack.c.bf16 %v4359_v5, %v4359_v5  ;;  %v4365_v8 = vpack.c.bf16 %v4361_v6, %v4361_v6  ;;  %v9592_v56 = vld [vmem:[#allocation8 + $0x3a8] ss:$16 sps:$4 sm:$0xff]   ;;  %v9603_v61 = vld [vmem:[#allocation8 + $0x16c] ss:$16 sps:$4 sm:$0xff]  }
 0x641   :  { %v9595_v59 = vld [vmem:[#allocation8 + $0x188] ss:$16 sps:$4 sm:$0xff]   ;;  %v9606_v62 = vld [vmem:[#allocation8 + $0x36c] ss:$16 sps:$4 sm:$0xff]  }
 0x642   :  { %5188 = vmatprep.mubr.bf16.mxu0 %v4363_v7  ;;  %5229 = vmatprep.mubr.bf16.mxu1 %v4365_v8  ;;  %v9598_v60 = vld [vmem:[#allocation8 + $0x388] ss:$16 sps:$4 sm:$0xff]   ;;  %v9609_v2 = vld [vmem:[#allocation8 + $0x14c] ss:$16 sps:$4 sm:$0xff]  }
 0x643   :  { %5189 = vmatmul.mubr.bf16.vlgmr.msra.gmra.mxu0 %v10659_v0  ;;  %5230 = vmatmul.mubr.bf16.vlgmr.msra.gmra.mxu1 %v10661_v12  ;;  %v9601_v63 = vld [vmem:[#allocation8 + $0x168] ss:$16 sps:$4 sm:$0xff]   ;;  %v9612_v3 = vld [vmem:[#allocation8 + $0x34c] ss:$16 sps:$4 sm:$0xff]  }
 0x644   :  { %5239 = vmatpush1.bf16.msra.mxu0 %v9529_v9  ;;  %5280 = vmatpush1.bf16.msra.mxu1 %v9532_v10  ;;  %v9604_v1 = vld [vmem:[#allocation8 + $0x368] ss:$16 sps:$4 sm:$0xff]   ;;  %v9615_v5 = vld [vmem:[#allocation8 + $0x12c] ss:$16 sps:$4 sm:$0xff]  }
 0x645   :  { %5270 = vmatprep.mubr.bf16.mxu0 %v4363_v7  ;;  %5311 = vmatprep.mubr.bf16.mxu1 %v4365_v8  ;;  %v9607_v4 = vld [vmem:[#allocation8 + $0x148] ss:$16 sps:$4 sm:$0xff]   ;;  %v9618_v6 = vld [vmem:[#allocation8 + $0x32c] ss:$16 sps:$4 sm:$0xff]  }
 0x646   :  { %5240 = vmatprep.subr.bf16.mxu0 %v9537_v13  ;;  %5281 = vmatprep.subr.bf16.mxu1 %v9540_v14  ;;  %v9610_v11 = vld [vmem:[#allocation8 + $0x348] ss:$16 sps:$4 sm:$0xff]   ;;  %v9621_v9 = vld [vmem:[#allocation8 + $0x10c] ss:$16 sps:$4 sm:$0xff]  }
 0x647   :  { %v9613_v7 = vld [vmem:[#allocation8 + $0x128] ss:$16 sps:$4 sm:$0xff]   ;;  %v9624_v10 = vld [vmem:[#allocation8 + $0x30c] ss:$16 sps:$4 sm:$0xff]  }
 0x648   :  { %5241 = vmatpush1.bf16.msra.mxu0 %v9535_v15  ;;  %5282 = vmatpush1.bf16.msra.mxu1 %v9538_v18  ;;  %v9616_v8 = vld [vmem:[#allocation8 + $0x328] ss:$16 sps:$4 sm:$0xff]   ;;  %v9627_v15 = vld [vmem:[#allocation10 + $0xe4] ss:$16 sps:$4 sm:$0xff]   ;;  %v9625_v18 = vld [vmem:[#allocation10 + $0xe0] ss:$16 sps:$4 sm:$0xff]  }
 0x649   :  { %5242 = vmatprep.subr.bf16.mxu0 %v9543_v19  ;;  %5283 = vmatprep.subr.bf16.mxu1 %v9546_v20  ;;  %v9619_v13 = vld [vmem:[#allocation8 + $0x108] ss:$16 sps:$4 sm:$0xff]   ;;  %v9630_v19 = vld [vmem:[#allocation10 + $0xc4] ss:$16 sps:$4 sm:$0xff]   ;;  %v9628_v20 = vld [vmem:[#allocation10 + $0xc0] ss:$16 sps:$4 sm:$0xff]  }
 0x64a   :  { %v9622_v14 = vld [vmem:[#allocation8 + $0x308] ss:$16 sps:$4 sm:$0xff]  }
 0x64c   :  { %5243 = vmatpush1.bf16.msra.mxu0 %v9541_v21  ;;  %5284 = vmatpush1.bf16.msra.mxu1 %v9544_v22  ;;  %v9633_v21 = vld [vmem:[#allocation10 + $0xa4] ss:$16 sps:$4 sm:$0xff]   ;;  %v9631_v22 = vld [vmem:[#allocation10 + $0xa0] ss:$16 sps:$4 sm:$0xff]  }
 0x64d   :  { %5244 = vmatprep.subr.bf16.mxu0 %v9549_v24  ;;  %5285 = vmatprep.subr.bf16.mxu1 %v9552_v25  ;;  %v9636_v24 = vld [vmem:[#allocation10 + $0x84] ss:$16 sps:$4 sm:$0xff]   ;;  %v9634_v25 = vld [vmem:[#allocation10 + $0x80] ss:$16 sps:$4 sm:$0xff]  }
 0x650   :  { %5245 = vmatpush1.bf16.msra.mxu0 %v9547_v26  ;;  %5286 = vmatpush1.bf16.msra.mxu1 %v9550_v27  ;;  %v9673_v26 = vld [vmem:[#allocation10 + $0x2e0] ss:$16 sps:$4 sm:$0xff]   ;;  %v9675_v27 = vld [vmem:[#allocation10 + $0x2e4] ss:$16 sps:$4 sm:$0xff]  }
 0x651   :  { %5246 = vmatprep.subr.bf16.mxu0 %v9555_v23  ;;  %5287 = vmatprep.subr.bf16.mxu1 %v9558_v29  ;;  %v9639_v23 = vld [vmem:[#allocation10 + $0x64] ss:$16 sps:$4 sm:$0xff]   ;;  %v9679_v29 = vld [vmem:[#allocation10 + $0x2c0] ss:$16 sps:$4 sm:$0xff]  }
 0x654   :  { %5247 = vmatpush1.bf16.msra.mxu0 %v9553_v30  ;;  %5288 = vmatpush1.bf16.msra.mxu1 %v9556_v31  ;;  %v9642_v30 = vld [vmem:[#allocation10 + $0x44] ss:$16 sps:$4 sm:$0xff]   ;;  %v9640_v31 = vld [vmem:[#allocation10 + $0x40] ss:$16 sps:$4 sm:$0xff]  }
 0x655   :  { %5248 = vmatprep.subr.bf16.mxu0 %v9561_v16  ;;  %5289 = vmatprep.subr.bf16.mxu1 %v9564_v32  ;;  %v9685_v16 = vld [vmem:[#allocation10 + $0x2a0] ss:$16 sps:$4 sm:$0xff]   ;;  %v9687_v32 = vld [vmem:[#allocation10 + $0x2a4] ss:$16 sps:$4 sm:$0xff]  }
 0x658   :  { %5249 = vmatpush1.bf16.msra.mxu0 %v9559_v17  ;;  %5290 = vmatpush1.bf16.msra.mxu1 %v9562_v33  ;;  %v9645_v17 = vld [vmem:[#allocation10 + $0x24] ss:$16 sps:$4 sm:$0xff]   ;;  %v9643_v33 = vld [vmem:[#allocation10 + $0x20] ss:$16 sps:$4 sm:$0xff]  }
 0x659   :  { %5250 = vmatprep.subr.bf16.mxu0 %v9567_v28  ;;  %5291 = vmatprep.subr.bf16.mxu1 %v9570_v34  ;;  %v9691_v28 = vld [vmem:[#allocation10 + $0x280] ss:$16 sps:$4 sm:$0xff]   ;;  %v9693_v34 = vld [vmem:[#allocation10 + $0x284] ss:$16 sps:$4 sm:$0xff]  }
 0x65c   :  { %5251 = vmatpush1.bf16.msra.mxu0 %v9565_v35  ;;  %5292 = vmatpush1.bf16.msra.mxu1 %v9568_v37  ;;  %v9648_v35 = vld [vmem:[#allocation10 + $0x4] ss:$16 sps:$4 sm:$0xff]   ;;  %v9646_v37 = vld [vmem:[#allocation10] ss:$16 sps:$4 sm:$0xff]  }
 0x65d   :  { %5252 = vmatprep.subr.bf16.mxu0 %v9573_v38  ;;  %5293 = vmatprep.subr.bf16.mxu1 %v9576_v39  ;;  %v9697_v38 = vld [vmem:[#allocation10 + $0x260] ss:$16 sps:$4 sm:$0xff]   ;;  %v9699_v39 = vld [vmem:[#allocation10 + $0x264] ss:$16 sps:$4 sm:$0xff]  }
 0x660   :  { %5253 = vmatpush1.bf16.msra.mxu0 %v9571_v40  ;;  %5294 = vmatpush1.bf16.msra.mxu1 %v9574_v41  ;;  %v9651_v40 = vld [vmem:[#allocation10 + $0x1e4] ss:$16 sps:$4 sm:$0xff]   ;;  %v9649_v41 = vld [vmem:[#allocation10 + $0x1e0] ss:$16 sps:$4 sm:$0xff]  }
 0x661   :  { %5254 = vmatprep.subr.bf16.mxu0 %v9579_v42  ;;  %5295 = vmatprep.subr.bf16.mxu1 %v9582_v45  ;;  %v9703_v42 = vld [vmem:[#allocation10 + $0x240] ss:$16 sps:$4 sm:$0xff]   ;;  %v9705_v45 = vld [vmem:[#allocation10 + $0x244] ss:$16 sps:$4 sm:$0xff]  }
 0x664   :  { %5255 = vmatpush2.bf16.msra.mxu0 %v9577_v48  ;;  %5296 = vmatpush2.bf16.msra.mxu1 %v9580_v50  ;;  %v9654_v48 = vld [vmem:[#allocation10 + $0x1c4] ss:$16 sps:$4 sm:$0xff]   ;;  %v9652_v50 = vld [vmem:[#allocation10 + $0x1c0] ss:$16 sps:$4 sm:$0xff]  }
 0x665   :  { %5256 = vmatprep.subr.bf16.mxu0 %v9585_v51  ;;  %5297 = vmatprep.subr.bf16.mxu1 %v9588_v52  ;;  %v9709_v51 = vld [vmem:[#allocation10 + $0x220] ss:$16 sps:$4 sm:$0xff]   ;;  %v9711_v52 = vld [vmem:[#allocation10 + $0x224] ss:$16 sps:$4 sm:$0xff]  }
 0x668   :  { %5257 = vmatpush2.bf16.msra.mxu0 %v9583_v36  ;;  %5298 = vmatpush2.bf16.msra.mxu1 %v9586_v49  ;;  %v9657_v36 = vld [vmem:[#allocation10 + $0x1a4] ss:$16 sps:$4 sm:$0xff]   ;;  %v9655_v49 = vld [vmem:[#allocation10 + $0x1a0] ss:$16 sps:$4 sm:$0xff]  }
 0x669   :  { %5258 = vmatprep.subr.bf16.mxu0 %v9591_v53  ;;  %5299 = vmatprep.subr.bf16.mxu1 %v9594_v54  ;;  %v9715_v53 = vld [vmem:[#allocation10 + $0x200] ss:$16 sps:$4 sm:$0xff]   ;;  %v9717_v54 = vld [vmem:[#allocation10 + $0x204] ss:$16 sps:$4 sm:$0xff]  }
 0x66c   :  { %5259 = vmatpush2.bf16.msra.mxu0 %v9589_v55  ;;  %5300 = vmatpush2.bf16.msra.mxu1 %v9592_v56  ;;  %v9660_v55 = vld [vmem:[#allocation10 + $0x184] ss:$16 sps:$4 sm:$0xff]   ;;  %v9658_v56 = vld [vmem:[#allocation10 + $0x180] ss:$16 sps:$4 sm:$0xff]  }
 0x66d   :  { %5260 = vmatprep.subr.bf16.mxu0 %v9597_v57  ;;  %5301 = vmatprep.subr.bf16.mxu1 %v9600_v58  ;;  %v9721_v57 = vld [vmem:[#allocation10 + $0x3e0] ss:$16 sps:$4 sm:$0xff]   ;;  %v9723_v58 = vld [vmem:[#allocation10 + $0x3e4] ss:$16 sps:$4 sm:$0xff]  }
 0x670   :  { %5261 = vmatpush2.bf16.msra.mxu0 %v9595_v59  ;;  %5302 = vmatpush2.bf16.msra.mxu1 %v9598_v60  ;;  %v9663_v59 = vld [vmem:[#allocation10 + $0x164] ss:$16 sps:$4 sm:$0xff]   ;;  %v9661_v60 = vld [vmem:[#allocation10 + $0x160] ss:$16 sps:$4 sm:$0xff]  }
 0x671   :  { %5262 = vmatprep.subr.bf16.mxu0 %v9603_v61  ;;  %5303 = vmatprep.subr.bf16.mxu1 %v9606_v62  ;;  %v9727_v61 = vld [vmem:[#allocation10 + $0x3c0] ss:$16 sps:$4 sm:$0xff]   ;;  %v9729_v62 = vld [vmem:[#allocation10 + $0x3c4] ss:$16 sps:$4 sm:$0xff]  }
 0x674   :  { %5263 = vmatpush2.bf16.msra.mxu0 %v9601_v63  ;;  %5304 = vmatpush2.bf16.msra.mxu1 %v9604_v1  ;;  %v9666_v63 = vld [vmem:[#allocation10 + $0x144] ss:$16 sps:$4 sm:$0xff]   ;;  %v9664_v1 = vld [vmem:[#allocation10 + $0x140] ss:$16 sps:$4 sm:$0xff]  }
 0x675   :  { %5264 = vmatprep.subr.bf16.mxu0 %v9609_v2  ;;  %5305 = vmatprep.subr.bf16.mxu1 %v9612_v3  ;;  %v9733_v2 = vld [vmem:[#allocation10 + $0x3a0] ss:$16 sps:$4 sm:$0xff]   ;;  %v9735_v3 = vld [vmem:[#allocation10 + $0x3a4] ss:$16 sps:$4 sm:$0xff]  }
 0x678   :  { %5265 = vmatpush2.bf16.msra.mxu0 %v9607_v4  ;;  %5306 = vmatpush2.bf16.msra.mxu1 %v9610_v11  ;;  %v9669_v4 = vld [vmem:[#allocation10 + $0x124] ss:$16 sps:$4 sm:$0xff]   ;;  %v9667_v11 = vld [vmem:[#allocation10 + $0x120] ss:$16 sps:$4 sm:$0xff]  }
 0x679   :  { %5266 = vmatprep.subr.bf16.mxu0 %v9615_v5  ;;  %5307 = vmatprep.subr.bf16.mxu1 %v9618_v6  ;;  %v9739_v5 = vld [vmem:[#allocation10 + $0x380] ss:$16 sps:$4 sm:$0xff]   ;;  %v9741_v6 = vld [vmem:[#allocation10 + $0x384] ss:$16 sps:$4 sm:$0xff]  }
 0x67c   :  { %5267 = vmatpush2.bf16.msra.mxu0 %v9613_v7  ;;  %5308 = vmatpush2.bf16.msra.mxu1 %v9616_v8  ;;  %v9672_v7 = vld [vmem:[#allocation10 + $0x104] ss:$16 sps:$4 sm:$0xff]   ;;  %v9670_v8 = vld [vmem:[#allocation10 + $0x100] ss:$16 sps:$4 sm:$0xff]  }
 0x67d   :  { %5268 = vmatprep.subr.bf16.mxu0 %v9621_v9  ;;  %5309 = vmatprep.subr.bf16.mxu1 %v9624_v10  ;;  %v9745_v9 = vld [vmem:[#allocation10 + $0x360] ss:$16 sps:$4 sm:$0xff]   ;;  %v9747_v10 = vld [vmem:[#allocation10 + $0x364] ss:$16 sps:$4 sm:$0xff]  }
 0x680   :  { %5269 = vmatpush2.bf16.msra.mxu0 %v9619_v13  ;;  %5310 = vmatpush2.bf16.msra.mxu1 %v9622_v14  ;;  %v9678_v13 = vld [vmem:[#allocation10 + $0xec] ss:$16 sps:$4 sm:$0xff]   ;;  %v9751_v14 = vld [vmem:[#allocation10 + $0x340] ss:$16 sps:$4 sm:$0xff]  }
 0x681   :  { %6118 = vmatprep.subr.bf16.mxu0 %v9627_v15  ;;  %6159 = vmatprep.subr.bf16.mxu1 %v9675_v27  ;;  %v9753_v15 = vld [vmem:[#allocation10 + $0x344] ss:$16 sps:$4 sm:$0xff]  }
 0x683   :  { %5271 = vmatmul.mubr.bf16.vlgmr.msra.gmra.mxu0 %v10659_v0  ;;  %5312 = vmatmul.mubr.bf16.vlgmr.msra.gmra.mxu1 %v10661_v12  ;;  %v9637_v0 = vld [vmem:[#allocation10 + $0x60] ss:$16 sps:$4 sm:$0xff]   ;;  %v9681_v12 = vld [vmem:[#allocation10 + $0x2c4] ss:$16 sps:$4 sm:$0xff]  }
 0x684   :  { %6119 = vmatpush1.bf16.msra.mxu0 %v9625_v18  ;;  %6160 = vmatpush1.bf16.msra.mxu1 %v9673_v26  ;;  %v9759_v18 = vld [vmem:[#allocation10 + $0x324] ss:$16 sps:$4 sm:$0xff]  }
 0x685   :  { %6120 = vmatprep.subr.bf16.mxu0 %v9630_v19  ;;  %6161 = vmatprep.subr.bf16.mxu1 %v9681_v12  ;;  %v9757_v19 = vld [vmem:[#allocation10 + $0x320] ss:$16 sps:$4 sm:$0xff]  }
 0x688   :  { %6121 = vmatpush1.bf16.msra.mxu0 %v9628_v20  ;;  %6162 = vmatpush1.bf16.msra.mxu1 %v9679_v29  ;;  %v9765_v20 = vld [vmem:[#allocation10 + $0x304] ss:$16 sps:$4 sm:$0xff]  }
 0x689   :  { %6122 = vmatprep.subr.bf16.mxu0 %v9633_v21  ;;  %6163 = vmatprep.subr.bf16.mxu1 %v9687_v32  ;;  %v9763_v21 = vld [vmem:[#allocation10 + $0x300] ss:$16 sps:$4 sm:$0xff]  }
 0x68c   :  { %6123 = vmatpush1.bf16.msra.mxu0 %v9631_v22  ;;  %6164 = vmatpush1.bf16.msra.mxu1 %v9685_v16  ;;  %v9771_v22 = vld [vmem:[#allocation10 + $0x2ec] ss:$16 sps:$4 sm:$0xff]  }
 0x68d   :  { %6124 = vmatprep.subr.bf16.mxu0 %v9636_v24  ;;  %6165 = vmatprep.subr.bf16.mxu1 %v9693_v34  ;;  %v10668_v24 = vld [vmem:[%s10778_s30] sm:$0xf] }
 0x68e   :  { %v4503_v26 = vrot.slane %v10668_v24, %v10500_v46 }
 0x690   :  { %6125 = vmatpush1.bf16.msra.mxu0 %v9634_v25  ;;  %6166 = vmatpush1.bf16.msra.mxu1 %v9691_v28  ;;  %v4499_v25 = vrot.slane %v10668_v24, %v10495_v43 }
 0x691   :  { %6126 = vmatprep.subr.bf16.mxu0 %v9639_v23  ;;  %6167 = vmatprep.subr.bf16.mxu1 %v9699_v39 }
 0x694   :  { %6127 = vmatpush1.bf16.msra.mxu0 %v9637_v0  ;;  %6168 = vmatpush1.bf16.msra.mxu1 %v9697_v38  ;;  %v9676_v38 = vld [vmem:[#allocation10 + $0xe8] ss:$16 sps:$4 sm:$0xff]  }
 0x695   :  { %6128 = vmatprep.subr.bf16.mxu0 %v9642_v30  ;;  %6169 = vmatprep.subr.bf16.mxu1 %v9705_v45  ;;  %v9688_v45 = vld [vmem:[#allocation10 + $0xa8] ss:$16 sps:$4 sm:$0xff]  }
 0x698   :  { %6129 = vmatpush1.bf16.msra.mxu0 %v9640_v31  ;;  %6170 = vmatpush1.bf16.msra.mxu1 %v9703_v42  ;;  %v9690_v42 = vld [vmem:[#allocation10 + $0xac] ss:$16 sps:$4 sm:$0xff]  }
 0x699   :  { %6130 = vmatprep.subr.bf16.mxu0 %v9645_v17  ;;  %6171 = vmatprep.subr.bf16.mxu1 %v9711_v52  ;;  %v9700_v52 = vld [vmem:[#allocation10 + $0x68] ss:$16 sps:$4 sm:$0xff]  }
 0x69c   :  { %6131 = vmatpush1.bf16.msra.mxu0 %v9643_v33  ;;  %6172 = vmatpush1.bf16.msra.mxu1 %v9709_v51  ;;  %v9702_v51 = vld [vmem:[#allocation10 + $0x6c] ss:$16 sps:$4 sm:$0xff]  }
 0x69d   :  { %6132 = vmatprep.subr.bf16.mxu0 %v9648_v35  ;;  %6173 = vmatprep.subr.bf16.mxu1 %v9717_v54  ;;  %v9712_v54 = vld [vmem:[#allocation10 + $0x28] ss:$16 sps:$4 sm:$0xff]  }
 0x6a0   :  { %6133 = vmatpush1.bf16.msra.mxu0 %v9646_v37  ;;  %6174 = vmatpush1.bf16.msra.mxu1 %v9715_v53  ;;  %v9714_v53 = vld [vmem:[#allocation10 + $0x2c] ss:$16 sps:$4 sm:$0xff]  }
 0x6a1   :  { %6134 = vmatprep.subr.bf16.mxu0 %v9651_v40  ;;  %6175 = vmatprep.subr.bf16.mxu1 %v9723_v58  ;;  %v9684_v40 = vld [vmem:[#allocation10 + $0xcc] ss:$16 sps:$4 sm:$0xff]   ;;  %v9724_v58 = vld [vmem:[#allocation10 + $0x1e8] ss:$16 sps:$4 sm:$0xff]  }
 0x6a4   :  { %6135 = vmatpush2.bf16.msra.mxu0 %v9649_v41  ;;  %6176 = vmatpush2.bf16.msra.mxu1 %v9721_v57  ;;  %v9682_v41 = vld [vmem:[#allocation10 + $0xc8] ss:$16 sps:$4 sm:$0xff]   ;;  %v9726_v57 = vld [vmem:[#allocation10 + $0x1ec] ss:$16 sps:$4 sm:$0xff]  }
 0x6a5   :  { %6136 = vmatprep.subr.bf16.mxu0 %v9654_v48  ;;  %6177 = vmatprep.subr.bf16.mxu1 %v9729_v62  ;;  %v9696_v48 = vld [vmem:[#allocation10 + $0x8c] ss:$16 sps:$4 sm:$0xff]   ;;  %v9736_v62 = vld [vmem:[#allocation10 + $0x1a8] ss:$16 sps:$4 sm:$0xff]  }
 0x6a8   :  { %6137 = vmatpush2.bf16.msra.mxu0 %v9652_v50  ;;  %6178 = vmatpush2.bf16.msra.mxu1 %v9727_v61  ;;  %v9694_v50 = vld [vmem:[#allocation10 + $0x88] ss:$16 sps:$4 sm:$0xff]   ;;  %v9738_v61 = vld [vmem:[#allocation10 + $0x1ac] ss:$16 sps:$4 sm:$0xff]  }
 0x6a9   :  { %6138 = vmatprep.subr.bf16.mxu0 %v9657_v36  ;;  %6179 = vmatprep.subr.bf16.mxu1 %v9735_v3  ;;  %v9708_v36 = vld [vmem:[#allocation10 + $0x4c] ss:$16 sps:$4 sm:$0xff]   ;;  %v9748_v3 = vld [vmem:[#allocation10 + $0x168] ss:$16 sps:$4 sm:$0xff]  }
 0x6ac   :  { %6139 = vmatpush2.bf16.msra.mxu0 %v9655_v49  ;;  %6180 = vmatpush2.bf16.msra.mxu1 %v9733_v2  ;;  %v9706_v49 = vld [vmem:[#allocation10 + $0x48] ss:$16 sps:$4 sm:$0xff]   ;;  %v9750_v2 = vld [vmem:[#allocation10 + $0x16c] ss:$16 sps:$4 sm:$0xff]  }
 0x6ad   :  { %6140 = vmatprep.subr.bf16.mxu0 %v9660_v55  ;;  %6181 = vmatprep.subr.bf16.mxu1 %v9741_v6  ;;  %v9720_v55 = vld [vmem:[#allocation10 + $0xc] ss:$16 sps:$4 sm:$0xff]  }
 0x6ae   :  { %v9762_v6 = vld [vmem:[#allocation10 + $0x12c] ss:$16 sps:$4 sm:$0xff]  }
 0x6b0   :  { %6141 = vmatpush2.bf16.msra.mxu0 %v9658_v56  ;;  %6182 = vmatpush2.bf16.msra.mxu1 %v9739_v5  ;;  %v9718_v56 = vld [vmem:[#allocation10 + $0x8] ss:$16 sps:$4 sm:$0xff]  }
 0x6b1   :  { %6142 = vmatprep.subr.bf16.mxu0 %v9663_v59  ;;  %6183 = vmatprep.subr.bf16.mxu1 %v9747_v10  ;;  %v9732_v59 = vld [vmem:[#allocation10 + $0x1cc] ss:$16 sps:$4 sm:$0xff]   ;;  %v9754_v5 = vld [vmem:[#allocation10 + $0x148] ss:$16 sps:$4 sm:$0xff]  }
 0x6b4   :  { %6143 = vmatpush2.bf16.msra.mxu0 %v9661_v60  ;;  %6184 = vmatpush2.bf16.msra.mxu1 %v9745_v9  ;;  %v9730_v60 = vld [vmem:[#allocation10 + $0x1c8] ss:$16 sps:$4 sm:$0xff]  }
 0x6b5   :  { %6144 = vmatprep.subr.bf16.mxu0 %v9666_v63  ;;  %6185 = vmatprep.subr.bf16.mxu1 %v9753_v15  ;;  %v9744_v63 = vld [vmem:[#allocation10 + $0x18c] ss:$16 sps:$4 sm:$0xff]  }
 0x6b8   :  { %6145 = vmatpush2.bf16.msra.mxu0 %v9664_v1  ;;  %6186 = vmatpush2.bf16.msra.mxu1 %v9751_v14  ;;  %v9742_v1 = vld [vmem:[#allocation10 + $0x188] ss:$16 sps:$4 sm:$0xff]  }
 0x6b9   :  { %6146 = vmatprep.subr.bf16.mxu0 %v9669_v4  ;;  %6187 = vmatprep.subr.bf16.mxu1 %v9759_v18  ;;  %v9756_v4 = vld [vmem:[#allocation10 + $0x14c] ss:$16 sps:$4 sm:$0xff]  }
 0x6ba   :  { %v9768_v18 = vld [vmem:[#allocation10 + $0x10c] ss:$16 sps:$4 sm:$0xff]  }
 0x6bc   :  { %6147 = vmatpush2.bf16.msra.mxu0 %v9667_v11  ;;  %6188 = vmatpush2.bf16.msra.mxu1 %v9757_v19  ;;  %v4507_v11 = vrot.slane %v10668_v24, %v10497_v44 }
 0x6bd   :  { %6148 = vmatprep.subr.bf16.mxu0 %v9672_v7  ;;  %6189 = vmatprep.subr.bf16.mxu1 %v9765_v20  ;;  %v4511_v7 = vrot.slane %v10668_v24, %v10502_v47 }
 0x6c0   :  { %6149 = vmatpush2.bf16.msra.mxu0 %v9670_v8  ;;  %6190 = vmatpush2.bf16.msra.mxu1 %v9763_v21 }
 0x6c1   :  { %6200 = vmatprep.subr.bf16.mxu0 %v9678_v13  ;;  %6241 = vmatprep.subr.bf16.mxu1 %v9771_v22  ;;  %v9760_v13 = vld [vmem:[#allocation10 + $0x128] ss:$16 sps:$4 sm:$0xff]  }
 0x703   :  { %v5190_v27 = vpop.f32.mrf.mxu0  ;;  %v5231_v23 = vpop.f32.mrf.mxu1 }
 0x704   :  { %v5191_v0 = vadd.f32 %v5190_v27, %v4499_v25 }
 0x705   :  { %v5192_v29 = vpop.f32.mrf.mxu0  ;;  %v5233_v12 = vpop.f32.mrf.mxu1 }
 0x706   :  { %v5232_v30 = vadd.f32 %v5231_v23, %v5191_v0  ;;  %v5193_v31 = vadd.f32 %v5192_v29, %v4503_v26  ;;  %v9766_v26 = vld [vmem:[#allocation10 + $0x108] ss:$16 sps:$4 sm:$0xff]  }
 0x707   :  { %v5194_v16 = vpop.f32.mrf.mxu0  ;;  %v5235_v32 = vpop.f32.mrf.mxu1 }
 0x708   :  { %v5234_v17 = vadd.f32 %v5233_v12, %v5193_v31  ;;  %v5320_v33 = vmax.f32 %v5232_v30, 0.0  ;;  %v9769_v12 = vld [vmem:[#allocation10 + $0x2e8] ss:$16 sps:$4 sm:$0xff]   ;;  %v9774_v31 = vld [vmem:[#allocation10 + $0x2cc] ss:$16 sps:$4 sm:$0xff]  }
 0x709   :  { %v5195_v28 = vpop.f32.mrf.mxu0  ;;  %v5236_v34 = vpop.f32.mrf.mxu1  ;;  %v9772_v16 = vld [vmem:[#allocation10 + $0x2c8] ss:$16 sps:$4 sm:$0xff]   ;;  %v9777_v32 = vld [vmem:[#allocation10 + $0x2ac] ss:$16 sps:$4 sm:$0xff]  }
 0x70a   :  { %v5321_v35 = vmax.f32 %v5234_v17, 0.0  ;;  %v10674_v39 = vpack.c.bf16 %v5320_v33, %v5320_v33  ;;  %v9775_v17 = vld [vmem:[#allocation10 + $0x2a8] ss:$16 sps:$4 sm:$0xff]   ;;  %v9780_v33 = vld [vmem:[#allocation10 + $0x28c] ss:$16 sps:$4 sm:$0xff]  }
 0x70b   :  { %v9817_v28 = vld [vmem:[#allocation11 + $0xe0] ss:$16 sps:$4 sm:$0xff]   ;;  %v9819_v34 = vld [vmem:[#allocation11 + $0xe4] ss:$16 sps:$4 sm:$0xff]  }
 0x70c   :  { %v5325_v37 = vpack.c.bf16 %v5321_v35, %v5321_v35  ;;  %v9822_v35 = vld [vmem:[#allocation11 + $0xc4] ss:$16 sps:$4 sm:$0xff]  }
 0x70e   :  { %6150 = vmatprep.mubr.bf16.mxu0 %v5325_v37 }
 0x70f   :  { %6151 = vmatmul.mubr.bf16.vlgmr.msra.gmra.mxu0 %v10674_v39 }
 0x710   :  { %6201 = vmatpush1.bf16.msra.mxu0 %v9676_v38  ;;  %6232 = vmatprep.mubr.bf16.mxu0 %v5325_v37  ;;  %v9778_v37 = vld [vmem:[#allocation10 + $0x288] ss:$16 sps:$4 sm:$0xff]   ;;  %v9820_v38 = vld [vmem:[#allocation11 + $0xc0] ss:$16 sps:$4 sm:$0xff]  }
 0x711   :  { %6202 = vmatprep.subr.bf16.mxu0 %v9684_v40  ;;  %v9783_v40 = vld [vmem:[#allocation10 + $0x26c] ss:$16 sps:$4 sm:$0xff]  }
 0x714   :  { %6203 = vmatpush1.bf16.msra.mxu0 %v9682_v41  ;;  %v9781_v41 = vld [vmem:[#allocation10 + $0x268] ss:$16 sps:$4 sm:$0xff]  }
 0x715   :  { %6204 = vmatprep.subr.bf16.mxu0 %v9690_v42  ;;  %v9823_v42 = vld [vmem:[#allocation11 + $0xa0] ss:$16 sps:$4 sm:$0xff]  }
 0x718   :  { %6205 = vmatpush1.bf16.msra.mxu0 %v9688_v45  ;;  %v9786_v45 = vld [vmem:[#allocation10 + $0x24c] ss:$16 sps:$4 sm:$0xff]  }
 0x719   :  { %6206 = vmatprep.subr.bf16.mxu0 %v9696_v48  ;;  %v9828_v48 = vld [vmem:[#allocation11 + $0x84] ss:$16 sps:$4 sm:$0xff]  }
 0x71c   :  { %6207 = vmatpush1.bf16.msra.mxu0 %v9694_v50  ;;  %v9784_v50 = vld [vmem:[#allocation10 + $0x248] ss:$16 sps:$4 sm:$0xff]  }
 0x71d   :  { %6208 = vmatprep.subr.bf16.mxu0 %v9702_v51  ;;  %v9826_v51 = vld [vmem:[#allocation11 + $0x80] ss:$16 sps:$4 sm:$0xff]  }
 0x720   :  { %6209 = vmatpush1.bf16.msra.mxu0 %v9700_v52  ;;  %v9789_v52 = vld [vmem:[#allocation10 + $0x22c] ss:$16 sps:$4 sm:$0xff]  }
 0x721   :  { %6210 = vmatprep.subr.bf16.mxu0 %v9708_v36  ;;  %v9831_v36 = vld [vmem:[#allocation11 + $0x64] ss:$16 sps:$4 sm:$0xff]  }
 0x724   :  { %6211 = vmatpush1.bf16.msra.mxu0 %v9706_v49  ;;  %v9787_v49 = vld [vmem:[#allocation10 + $0x228] ss:$16 sps:$4 sm:$0xff]  }
 0x725   :  { %6212 = vmatprep.subr.bf16.mxu0 %v9714_v53  ;;  %v9829_v53 = vld [vmem:[#allocation11 + $0x60] ss:$16 sps:$4 sm:$0xff]  }
 0x728   :  { %6213 = vmatpush1.bf16.msra.mxu0 %v9712_v54  ;;  %v9792_v54 = vld [vmem:[#allocation10 + $0x20c] ss:$16 sps:$4 sm:$0xff]  }
 0x729   :  { %6214 = vmatprep.subr.bf16.mxu0 %v9720_v55  ;;  %v9834_v55 = vld [vmem:[#allocation11 + $0x44] ss:$16 sps:$4 sm:$0xff]  }
 0x72c   :  { %6215 = vmatpush1.bf16.msra.mxu0 %v9718_v56  ;;  %v9790_v56 = vld [vmem:[#allocation10 + $0x208] ss:$16 sps:$4 sm:$0xff]  }
 0x72d   :  { %6216 = vmatprep.subr.bf16.mxu0 %v9726_v57  ;;  %v9832_v57 = vld [vmem:[#allocation11 + $0x40] ss:$16 sps:$4 sm:$0xff]  }
 0x730   :  { %6217 = vmatpush2.bf16.msra.mxu0 %v9724_v58  ;;  %v9795_v58 = vld [vmem:[#allocation10 + $0x3ec] ss:$16 sps:$4 sm:$0xff]  }
 0x731   :  { %6218 = vmatprep.subr.bf16.mxu0 %v9732_v59  ;;  %v9837_v59 = vld [vmem:[#allocation11 + $0x24] ss:$16 sps:$4 sm:$0xff]  }
 0x734   :  { %6219 = vmatpush2.bf16.msra.mxu0 %v9730_v60  ;;  %v9793_v60 = vld [vmem:[#allocation10 + $0x3e8] ss:$16 sps:$4 sm:$0xff]  }
 0x735   :  { %6220 = vmatprep.subr.bf16.mxu0 %v9738_v61  ;;  %v9835_v61 = vld [vmem:[#allocation11 + $0x20] ss:$16 sps:$4 sm:$0xff]  }
 0x738   :  { %6221 = vmatpush2.bf16.msra.mxu0 %v9736_v62  ;;  %v9798_v62 = vld [vmem:[#allocation10 + $0x3cc] ss:$16 sps:$4 sm:$0xff]  }
 0x739   :  { %6222 = vmatprep.subr.bf16.mxu0 %v9744_v63  ;;  %v9840_v63 = vld [vmem:[#allocation11 + $0x4] ss:$16 sps:$4 sm:$0xff]  }
 0x73c   :  { %6223 = vmatpush2.bf16.msra.mxu0 %v9742_v1  ;;  %v9796_v1 = vld [vmem:[#allocation10 + $0x3c8] ss:$16 sps:$4 sm:$0xff]  }
 0x73d   :  { %6224 = vmatprep.subr.bf16.mxu0 %v9750_v2  ;;  %v9838_v2 = vld [vmem:[#allocation11] ss:$16 sps:$4 sm:$0xff]  }
 0x740   :  { %6225 = vmatpush2.bf16.msra.mxu0 %v9748_v3  ;;  %v9801_v3 = vld [vmem:[#allocation10 + $0x3ac] ss:$16 sps:$4 sm:$0xff]  }
 0x741   :  { %6226 = vmatprep.subr.bf16.mxu0 %v9756_v4  ;;  %v9843_v4 = vld [vmem:[#allocation11 + $0x1e4] ss:$16 sps:$4 sm:$0xff]  }
 0x743   :  { %v5272_v8 = vpop.f32.mrf.mxu0  ;;  %v5313_v9 = vpop.f32.mrf.mxu1 }
 0x744   :  { %v5273_v10 = vadd.f32 %v5272_v8, %v4507_v11  ;;  %6227 = vmatpush2.bf16.msra.mxu0 %v9754_v5  ;;  %v9799_v11 = vld [vmem:[#allocation10 + $0x3a8] ss:$16 sps:$4 sm:$0xff]   ;;  %v9841_v5 = vld [vmem:[#allocation11 + $0x1e0] ss:$16 sps:$4 sm:$0xff]  }
 0x745   :  { %v5274_v14 = vpop.f32.mrf.mxu0  ;;  %v5315_v15 = vpop.f32.mrf.mxu1  ;;  %6228 = vmatprep.subr.bf16.mxu0 %v9762_v6  ;;  %v9804_v6 = vld [vmem:[#allocation10 + $0x38c] ss:$16 sps:$4 sm:$0xff]   ;;  %v9802_v8 = vld [vmem:[#allocation10 + $0x388] ss:$16 sps:$4 sm:$0xff]  }
 0x746   :  { %v5314_v19 = vadd.f32 %v5313_v9, %v5273_v10  ;;  %v5275_v20 = vadd.f32 %v5274_v14, %v4511_v7  ;;  %v9846_v7 = vld [vmem:[#allocation11 + $0x1c4] ss:$16 sps:$4 sm:$0xff]   ;;  %v9844_v9 = vld [vmem:[#allocation11 + $0x1c0] ss:$16 sps:$4 sm:$0xff]   ;;  %v9807_v10 = vld [vmem:[#allocation10 + $0x36c] ss:$16 sps:$4 sm:$0xff]  }
 0x747   :  { %v5276_v21 = vpop.f32.mrf.mxu0  ;;  %v5317_v22 = vpop.f32.mrf.mxu1  ;;  %v9805_v14 = vld [vmem:[#allocation10 + $0x368] ss:$16 sps:$4 sm:$0xff]  }
 0x748   :  { %v5316_v25 = vadd.f32 %v5315_v15, %v5275_v20  ;;  %6229 = vmatpush2.bf16.msra.mxu0 %v9760_v13  ;;  %v5322_v27 = vmax.f32 %v5314_v19, 0.0  ;;  %v9849_v13 = vld [vmem:[#allocation11 + $0x1a4] ss:$16 sps:$4 sm:$0xff]   ;;  %v9847_v15 = vld [vmem:[#allocation11 + $0x1a0] ss:$16 sps:$4 sm:$0xff]  }
 0x749   :  { %v5277_v23 = vpop.f32.mrf.mxu0  ;;  %v5318_v0 = vpop.f32.mrf.mxu1  ;;  %6230 = vmatprep.subr.bf16.mxu0 %v9768_v18  ;;  %v9810_v18 = vld [vmem:[#allocation10 + $0x34c] ss:$16 sps:$4 sm:$0xff]   ;;  %v9852_v19 = vld [vmem:[#allocation11 + $0x184] ss:$16 sps:$4 sm:$0xff]   ;;  %v9808_v20 = vld [vmem:[#allocation10 + $0x348] ss:$16 sps:$4 sm:$0xff]  }
 0x74a   :  { %v5323_v24 = vmax.f32 %v5316_v25, 0.0  ;;  %v10681_v30 = vpack.c.bf16 %v5322_v27, %v5322_v27  ;;  %v9850_v21 = vld [vmem:[#allocation11 + $0x180] ss:$16 sps:$4 sm:$0xff]   ;;  %v9813_v22 = vld [vmem:[#allocation10 + $0x32c] ss:$16 sps:$4 sm:$0xff]  }
 0x74b   :  { %v9855_v25 = vld [vmem:[#allocation11 + $0x164] ss:$16 sps:$4 sm:$0xff]   ;;  %v9853_v27 = vld [vmem:[#allocation11 + $0x160] ss:$16 sps:$4 sm:$0xff]   ;;  %v9816_v23 = vld [vmem:[#allocation10 + $0x30c] ss:$16 sps:$4 sm:$0xff]  }
 0x74c   :  { %v5327_v29 = vpack.c.bf16 %v5323_v24, %v5323_v24  ;;  %6231 = vmatpush2.bf16.msra.mxu0 %v9766_v26  ;;  %v9811_v26 = vld [vmem:[#allocation10 + $0x328] ss:$16 sps:$4 sm:$0xff]   ;;  %v9858_v0 = vld [vmem:[#allocation11 + $0x144] ss:$16 sps:$4 sm:$0xff]  }
 0x74d   :  { %7080 = vmatprep.subr.bf16.mxu0 %v9819_v34  ;;  %v9814_v24 = vld [vmem:[#allocation10 + $0x308] ss:$16 sps:$4 sm:$0xff]   ;;  %v9871_v34 = vld [vmem:[#allocation11 + $0x2c0] ss:$16 sps:$4 sm:$0xff]  }
 0x74e   :  { %6191 = vmatprep.mubr.bf16.mxu1 %v5327_v29 }
 0x74f   :  { %6192 = vmatmul.mubr.bf16.vlgmr.msra.gmra.mxu1 %v10681_v30  ;;  %6233 = vmatmul.mubr.bf16.vlgmr.msra.gmra.mxu0 %v10674_v39  ;;  %v9825_v39 = vld [vmem:[#allocation11 + $0xa4] ss:$16 sps:$4 sm:$0xff]  }
 0x750   :  { %6242 = vmatpush1.bf16.msra.mxu1 %v9769_v12  ;;  %6273 = vmatprep.mubr.bf16.mxu1 %v5327_v29  ;;  %v9856_v29 = vld [vmem:[#allocation11 + $0x140] ss:$16 sps:$4 sm:$0xff]   ;;  %v9861_v12 = vld [vmem:[#allocation11 + $0x124] ss:$16 sps:$4 sm:$0xff]  }
 0x751   :  { %6243 = vmatprep.subr.bf16.mxu1 %v9774_v31  ;;  %7081 = vmatpush1.bf16.msra.mxu0 %v9817_v28  ;;  %v9859_v31 = vld [vmem:[#allocation11 + $0x120] ss:$16 sps:$4 sm:$0xff]   ;;  %v9870_v28 = vld [vmem:[#allocation11 + $0xec] ss:$16 sps:$4 sm:$0xff]  }
 0x752   :  { %7082 = vmatprep.subr.bf16.mxu0 %v9822_v35  ;;  %v9873_v35 = vld [vmem:[#allocation11 + $0x2c4] ss:$16 sps:$4 sm:$0xff]  }
 0x754   :  { %6244 = vmatpush1.bf16.msra.mxu1 %v9772_v16  ;;  %v9864_v16 = vld [vmem:[#allocation11 + $0x104] ss:$16 sps:$4 sm:$0xff]  }
 0x755   :  { %6245 = vmatprep.subr.bf16.mxu1 %v9777_v32  ;;  %7083 = vmatpush1.bf16.msra.mxu0 %v9820_v38  ;;  %v9862_v32 = vld [vmem:[#allocation11 + $0x100] ss:$16 sps:$4 sm:$0xff]  }
 0x756   :  { %7084 = vmatprep.subr.bf16.mxu0 %v9825_v39  ;;  %v9883_v38 = vld [vmem:[#allocation11 + $0x280] ss:$16 sps:$4 sm:$0xff]  }
 0x757   :  { %v9889_v39 = vld [vmem:[#allocation11 + $0x260] ss:$16 sps:$4 sm:$0xff]  }
 0x758   :  { %6246 = vmatpush1.bf16.msra.mxu1 %v9775_v17  ;;  %v9865_v17 = vld [vmem:[#allocation11 + $0x2e0] ss:$16 sps:$4 sm:$0xff]  }
 0x759   :  { %6247 = vmatprep.subr.bf16.mxu1 %v9780_v33  ;;  %7085 = vmatpush1.bf16.msra.mxu0 %v9823_v42  ;;  %v9867_v33 = vld [vmem:[#allocation11 + $0x2e4] ss:$16 sps:$4 sm:$0xff]   ;;  %v9895_v42 = vld [vmem:[#allocation11 + $0x240] ss:$16 sps:$4 sm:$0xff]  }
 0x75a   :  { %7086 = vmatprep.subr.bf16.mxu0 %v9828_v48  ;;  %v9901_v48 = vld [vmem:[#allocation11 + $0x220] ss:$16 sps:$4 sm:$0xff]  }
 0x75c   :  { %6248 = vmatpush1.bf16.msra.mxu1 %v9778_v37  ;;  %v9877_v37 = vld [vmem:[#allocation11 + $0x2a0] ss:$16 sps:$4 sm:$0xff]  }
 0x75d   :  { %6249 = vmatprep.subr.bf16.mxu1 %v9783_v40  ;;  %7087 = vmatpush1.bf16.msra.mxu0 %v9826_v51  ;;  %v9885_v40 = vld [vmem:[#allocation11 + $0x284] ss:$16 sps:$4 sm:$0xff]   ;;  %v9907_v51 = vld [vmem:[#allocation11 + $0x200] ss:$16 sps:$4 sm:$0xff]  }
 0x75e   :  { %7088 = vmatprep.subr.bf16.mxu0 %v9831_v36  ;;  %v9913_v36 = vld [vmem:[#allocation11 + $0x3e0] ss:$16 sps:$4 sm:$0xff]  }
 0x760   :  { %6250 = vmatpush1.bf16.msra.mxu1 %v9781_v41  ;;  %v9891_v41 = vld [vmem:[#allocation11 + $0x264] ss:$16 sps:$4 sm:$0xff]  }
 0x761   :  { %6251 = vmatprep.subr.bf16.mxu1 %v9786_v45  ;;  %7089 = vmatpush1.bf16.msra.mxu0 %v9829_v53  ;;  %v9897_v45 = vld [vmem:[#allocation11 + $0x244] ss:$16 sps:$4 sm:$0xff]   ;;  %v9919_v53 = vld [vmem:[#allocation11 + $0x3c0] ss:$16 sps:$4 sm:$0xff]  }
 0x762   :  { %7090 = vmatprep.subr.bf16.mxu0 %v9834_v55  ;;  %v9925_v55 = vld [vmem:[#allocation11 + $0x3a0] ss:$16 sps:$4 sm:$0xff]  }
 0x764   :  { %6252 = vmatpush1.bf16.msra.mxu1 %v9784_v50  ;;  %v9903_v50 = vld [vmem:[#allocation11 + $0x224] ss:$16 sps:$4 sm:$0xff]  }
 0x765   :  { %6253 = vmatprep.subr.bf16.mxu1 %v9789_v52  ;;  %7091 = vmatpush1.bf16.msra.mxu0 %v9832_v57  ;;  %v9909_v52 = vld [vmem:[#allocation11 + $0x204] ss:$16 sps:$4 sm:$0xff]   ;;  %v9931_v57 = vld [vmem:[#allocation11 + $0x380] ss:$16 sps:$4 sm:$0xff]  }
 0x766   :  { %7092 = vmatprep.subr.bf16.mxu0 %v9837_v59  ;;  %v9937_v59 = vld [vmem:[#allocation11 + $0x360] ss:$16 sps:$4 sm:$0xff]  }
 0x768   :  { %6254 = vmatpush1.bf16.msra.mxu1 %v9787_v49  ;;  %v9915_v49 = vld [vmem:[#allocation11 + $0x3e4] ss:$16 sps:$4 sm:$0xff]  }
 0x769   :  { %6255 = vmatprep.subr.bf16.mxu1 %v9792_v54  ;;  %7093 = vmatpush1.bf16.msra.mxu0 %v9835_v61  ;;  %v9921_v54 = vld [vmem:[#allocation11 + $0x3c4] ss:$16 sps:$4 sm:$0xff]   ;;  %v9943_v61 = vld [vmem:[#allocation11 + $0x340] ss:$16 sps:$4 sm:$0xff]  }
 0x76a   :  { %7094 = vmatprep.subr.bf16.mxu0 %v9840_v63  ;;  %v9951_v63 = vld [vmem:[#allocation11 + $0x324] ss:$16 sps:$4 sm:$0xff]  }
 0x76c   :  { %6256 = vmatpush1.bf16.msra.mxu1 %v9790_v56  ;;  %v9927_v56 = vld [vmem:[#allocation11 + $0x3a4] ss:$16 sps:$4 sm:$0xff]  }
 0x76d   :  { %6257 = vmatprep.subr.bf16.mxu1 %v9795_v58  ;;  %7095 = vmatpush1.bf16.msra.mxu0 %v9838_v2  ;;  %v9933_v58 = vld [vmem:[#allocation11 + $0x384] ss:$16 sps:$4 sm:$0xff]   ;;  %v9949_v2 = vld [vmem:[#allocation11 + $0x320] ss:$16 sps:$4 sm:$0xff]  }
 0x76e   :  { %7096 = vmatprep.subr.bf16.mxu0 %v9843_v4  ;;  %v9957_v4 = vld [vmem:[#allocation11 + $0x304] ss:$16 sps:$4 sm:$0xff]  }
 0x770   :  { %6258 = vmatpush2.bf16.msra.mxu1 %v9793_v60  ;;  %v9939_v60 = vld [vmem:[#allocation11 + $0x364] ss:$16 sps:$4 sm:$0xff]  }
 0x771   :  { %6259 = vmatprep.subr.bf16.mxu1 %v9798_v62  ;;  %7097 = vmatpush2.bf16.msra.mxu0 %v9841_v5  ;;  %v9945_v62 = vld [vmem:[#allocation11 + $0x344] ss:$16 sps:$4 sm:$0xff]   ;;  %v9955_v5 = vld [vmem:[#allocation11 + $0x300] ss:$16 sps:$4 sm:$0xff]  }
 0x772   :  { %7098 = vmatprep.subr.bf16.mxu0 %v9846_v7  ;;  %v9963_v7 = vld [vmem:[#allocation11 + $0x2ec] ss:$16 sps:$4 sm:$0xff]  }
 0x774   :  { %6260 = vmatpush2.bf16.msra.mxu1 %v9796_v1 }
 0x775   :  { %6261 = vmatprep.subr.bf16.mxu1 %v9801_v3  ;;  %7099 = vmatpush2.bf16.msra.mxu0 %v9844_v9 }
 0x776   :  { %7100 = vmatprep.subr.bf16.mxu0 %v9849_v13 }
 0x778   :  { %6262 = vmatpush2.bf16.msra.mxu1 %v9799_v11 }
 0x779   :  { %6263 = vmatprep.subr.bf16.mxu1 %v9804_v6  ;;  %7101 = vmatpush2.bf16.msra.mxu0 %v9847_v15 }
 0x77a   :  { %7102 = vmatprep.subr.bf16.mxu0 %v9852_v19 }
 0x77c   :  { %6264 = vmatpush2.bf16.msra.mxu1 %v9802_v8  ;;  %v10687_v8 = vld [vmem:[%s10779_s27] sm:$0xf] }
 0x77d   :  { %6265 = vmatprep.subr.bf16.mxu1 %v9807_v10  ;;  %7103 = vmatpush2.bf16.msra.mxu0 %v9850_v21  ;;  %v5461_v9 = vrot.slane %v10687_v8, %v10495_v43  ;;  %v5465_v10 = vrot.slane %v10687_v8, %v10500_v46 }
 0x77e   :  { %7104 = vmatprep.subr.bf16.mxu0 %v9855_v25 }
 0x780   :  { %6266 = vmatpush2.bf16.msra.mxu1 %v9805_v14 }
 0x781   :  { %6267 = vmatprep.subr.bf16.mxu1 %v9810_v18  ;;  %7105 = vmatpush2.bf16.msra.mxu0 %v9853_v27 }
 0x782   :  { %7106 = vmatprep.subr.bf16.mxu0 %v9858_v0 }
 0x784   :  { %6268 = vmatpush2.bf16.msra.mxu1 %v9808_v20 }
 0x785   :  { %6269 = vmatprep.subr.bf16.mxu1 %v9813_v22  ;;  %7107 = vmatpush2.bf16.msra.mxu0 %v9856_v29 }
 0x786   :  { %7108 = vmatprep.subr.bf16.mxu0 %v9861_v12  ;;  %v9868_v12 = vld [vmem:[#allocation11 + $0xe8] ss:$16 sps:$4 sm:$0xff]  }
 0x788   :  { %6270 = vmatpush2.bf16.msra.mxu1 %v9811_v26 }
 0x789   :  { %6271 = vmatprep.subr.bf16.mxu1 %v9816_v23  ;;  %7109 = vmatpush2.bf16.msra.mxu0 %v9859_v31 }
 0x78a   :  { %7110 = vmatprep.subr.bf16.mxu0 %v9864_v16  ;;  %v9876_v16 = vld [vmem:[#allocation11 + $0xcc] ss:$16 sps:$4 sm:$0xff]  }
 0x78c   :  { %6272 = vmatpush2.bf16.msra.mxu1 %v9814_v24 }
 0x78d   :  { %7111 = vmatpush2.bf16.msra.mxu0 %v9862_v32  ;;  %7121 = vmatprep.subr.bf16.mxu1 %v9867_v33  ;;  %v9874_v32 = vld [vmem:[#allocation11 + $0xc8] ss:$16 sps:$4 sm:$0xff]  }
 0x78e   :  { %7162 = vmatprep.subr.bf16.mxu0 %v9870_v28  ;;  %v9880_v33 = vld [vmem:[#allocation11 + $0xa8] ss:$16 sps:$4 sm:$0xff]   ;;  %v9888_v28 = vld [vmem:[#allocation11 + $0x8c] ss:$16 sps:$4 sm:$0xff]  }
 0x78f   :  { %6274 = vmatmul.mubr.bf16.vlgmr.msra.gmra.mxu1 %v10681_v30  ;;  %v9879_v30 = vld [vmem:[#allocation11 + $0x2a4] ss:$16 sps:$4 sm:$0xff]  }
 0x790   :  { %7122 = vmatpush1.bf16.msra.mxu1 %v9865_v17  ;;  %v9882_v17 = vld [vmem:[#allocation11 + $0xac] ss:$16 sps:$4 sm:$0xff]  }
 0x791   :  { %7123 = vmatprep.subr.bf16.mxu1 %v9873_v35  ;;  %v9894_v35 = vld [vmem:[#allocation11 + $0x6c] ss:$16 sps:$4 sm:$0xff]  }
 0x794   :  { %7124 = vmatpush1.bf16.msra.mxu1 %v9871_v34  ;;  %v9886_v34 = vld [vmem:[#allocation11 + $0x88] ss:$16 sps:$4 sm:$0xff]  }
 0x795   :  { %7125 = vmatprep.subr.bf16.mxu1 %v9879_v30  ;;  %v9900_v30 = vld [vmem:[#allocation11 + $0x4c] ss:$16 sps:$4 sm:$0xff]  }
 0x798   :  { %7126 = vmatpush1.bf16.msra.mxu1 %v9877_v37  ;;  %v9892_v37 = vld [vmem:[#allocation11 + $0x68] ss:$16 sps:$4 sm:$0xff]  }
 0x799   :  { %7127 = vmatprep.subr.bf16.mxu1 %v9885_v40  ;;  %v9906_v40 = vld [vmem:[#allocation11 + $0x2c] ss:$16 sps:$4 sm:$0xff]  }
 0x79c   :  { %7128 = vmatpush1.bf16.msra.mxu1 %v9883_v38  ;;  %v9898_v38 = vld [vmem:[#allocation11 + $0x48] ss:$16 sps:$4 sm:$0xff]  }
 0x79d   :  { %7129 = vmatprep.subr.bf16.mxu1 %v9891_v41  ;;  %v9912_v41 = vld [vmem:[#allocation11 + $0xc] ss:$16 sps:$4 sm:$0xff]  }
 0x7a0   :  { %7130 = vmatpush1.bf16.msra.mxu1 %v9889_v39  ;;  %v9904_v39 = vld [vmem:[#allocation11 + $0x28] ss:$16 sps:$4 sm:$0xff]  }
 0x7a1   :  { %7131 = vmatprep.subr.bf16.mxu1 %v9897_v45  ;;  %v9918_v45 = vld [vmem:[#allocation11 + $0x1ec] ss:$16 sps:$4 sm:$0xff]  }
 0x7a4   :  { %7132 = vmatpush1.bf16.msra.mxu1 %v9895_v42  ;;  %v9910_v42 = vld [vmem:[#allocation11 + $0x8] ss:$16 sps:$4 sm:$0xff]  }
 0x7a5   :  { %7133 = vmatprep.subr.bf16.mxu1 %v9903_v50  ;;  %v9924_v50 = vld [vmem:[#allocation11 + $0x1cc] ss:$16 sps:$4 sm:$0xff]  }
 0x7a8   :  { %7134 = vmatpush1.bf16.msra.mxu1 %v9901_v48  ;;  %v9916_v48 = vld [vmem:[#allocation11 + $0x1e8] ss:$16 sps:$4 sm:$0xff]  }
 0x7a9   :  { %7135 = vmatprep.subr.bf16.mxu1 %v9909_v52  ;;  %v9930_v52 = vld [vmem:[#allocation11 + $0x1ac] ss:$16 sps:$4 sm:$0xff]  }
 0x7ac   :  { %7136 = vmatpush1.bf16.msra.mxu1 %v9907_v51  ;;  %v9922_v51 = vld [vmem:[#allocation11 + $0x1c8] ss:$16 sps:$4 sm:$0xff]  }
 0x7ad   :  { %7137 = vmatprep.subr.bf16.mxu1 %v9915_v49  ;;  %v9936_v49 = vld [vmem:[#allocation11 + $0x18c] ss:$16 sps:$4 sm:$0xff]  }
 0x7b0   :  { %7138 = vmatpush2.bf16.msra.mxu1 %v9913_v36  ;;  %v9928_v36 = vld [vmem:[#allocation11 + $0x1a8] ss:$16 sps:$4 sm:$0xff]  }
 0x7b1   :  { %7139 = vmatprep.subr.bf16.mxu1 %v9921_v54  ;;  %v9942_v54 = vld [vmem:[#allocation11 + $0x16c] ss:$16 sps:$4 sm:$0xff]  }
 0x7b4   :  { %7140 = vmatpush2.bf16.msra.mxu1 %v9919_v53  ;;  %v9934_v53 = vld [vmem:[#allocation11 + $0x188] ss:$16 sps:$4 sm:$0xff]  }
 0x7b5   :  { %7141 = vmatprep.subr.bf16.mxu1 %v9927_v56  ;;  %v9948_v56 = vld [vmem:[#allocation11 + $0x14c] ss:$16 sps:$4 sm:$0xff]  }
 0x7b8   :  { %7142 = vmatpush2.bf16.msra.mxu1 %v9925_v55  ;;  %v9940_v55 = vld [vmem:[#allocation11 + $0x168] ss:$16 sps:$4 sm:$0xff]  }
 0x7b9   :  { %7143 = vmatprep.subr.bf16.mxu1 %v9933_v58  ;;  %v9946_v58 = vld [vmem:[#allocation11 + $0x148] ss:$16 sps:$4 sm:$0xff]  }
 0x7bc   :  { %7144 = vmatpush2.bf16.msra.mxu1 %v9931_v57  ;;  %v5469_v57 = vrot.slane %v10687_v8, %v10497_v44 }
 0x7bd   :  { %7145 = vmatprep.subr.bf16.mxu1 %v9939_v60  ;;  %v5473_v60 = vrot.slane %v10687_v8, %v10502_v47 }
 0x7c0   :  { %7146 = vmatpush2.bf16.msra.mxu1 %v9937_v59  ;;  %v9954_v59 = vld [vmem:[#allocation11 + $0x12c] ss:$16 sps:$4 sm:$0xff]  }
 0x7c1   :  { %7147 = vmatprep.subr.bf16.mxu1 %v9945_v62  ;;  %v9952_v62 = vld [vmem:[#allocation11 + $0x128] ss:$16 sps:$4 sm:$0xff]  }
 0x7c4   :  { %7148 = vmatpush2.bf16.msra.mxu1 %v9943_v61 }
 0x7c5   :  { %7149 = vmatprep.subr.bf16.mxu1 %v9951_v63 }
 0x7c8   :  { %7150 = vmatpush2.bf16.msra.mxu1 %v9949_v2 }
 0x7c9   :  { %7151 = vmatprep.subr.bf16.mxu1 %v9957_v4 }
 0x7cc   :  { %7152 = vmatpush2.bf16.msra.mxu1 %v9955_v5  ;;  %v9958_v5 = vld [vmem:[#allocation11 + $0x108] ss:$16 sps:$4 sm:$0xff]  }
 0x7cd   :  { %7203 = vmatprep.subr.bf16.mxu1 %v9963_v7 }
 0x7cf   :  { %v6152_v1 = vpop.f32.mrf.mxu0 }
 0x7d0   :  { %v6153_v13 = vadd.f32 %v6152_v1, %v5461_v9  ;;  %v9960_v1 = vld [vmem:[#allocation11 + $0x10c] ss:$16 sps:$4 sm:$0xff]  }
 0x7d1   :  { %v6154_v3 = vpop.f32.mrf.mxu0 }
 0x7d2   :  { %v6155_v18 = vadd.f32 %v6154_v3, %v5465_v10 }
 0x7d3   :  { %v6156_v11 = vpop.f32.mrf.mxu0 }
 0x7d5   :  { %v6157_v6 = vpop.f32.mrf.mxu0 }
 0x80f   :  { %v6193_v14 = vpop.f32.mrf.mxu1  ;;  %v10693_v15 = vpop.f32.mrf.mxu0 }
 0x810   :  { %v6194_v19 = vadd.f32 %v6193_v14, %v6153_v13  ;;  %v6235_v61 = vadd.f32 %v10693_v15, %v5469_v57  ;;  %v9961_v13 = vld [vmem:[#allocation11 + $0x2e8] ss:$16 sps:$4 sm:$0xff]   ;;  %v9966_v15 = vld [vmem:[#allocation11 + $0x2cc] ss:$16 sps:$4 sm:$0xff]  }
 0x811   :  { %v6195_v20 = vpop.f32.mrf.mxu1  ;;  %v10695_v21 = vpop.f32.mrf.mxu0  ;;  %v10008_v57 = vld [vmem:[#allocation11 + $0x30c] ss:$16 sps:$4 sm:$0xff]  }
 0x812   :  { %v6196_v22 = vadd.f32 %v6195_v20, %v6155_v18  ;;  %v6282_v25 = vmax.f32 %v6194_v19, 0.0  ;;  %v6237_v2 = vadd.f32 %v10695_v21, %v5473_v60  ;;  %v9964_v18 = vld [vmem:[#allocation11 + $0x2c8] ss:$16 sps:$4 sm:$0xff]   ;;  %v9969_v19 = vld [vmem:[#allocation11 + $0x2ac] ss:$16 sps:$4 sm:$0xff]  }
 0x813   :  { %v6197_v26 = vpop.f32.mrf.mxu1  ;;  %v6238_v27 = vpop.f32.mrf.mxu0  ;;  %v9967_v20 = vld [vmem:[#allocation11 + $0x2a8] ss:$16 sps:$4 sm:$0xff]   ;;  %v9972_v21 = vld [vmem:[#allocation11 + $0x28c] ss:$16 sps:$4 sm:$0xff]  }
 0x814   :  { %v6283_v23 = vmax.f32 %v6196_v22, 0.0  ;;  %v10697_v31 = vpack.c.bf16 %v6282_v25, %v6282_v25  ;;  %v10009_v22 = vld [vmem:[%s10780_s4 + $0x78] sm:$0xff]   ;;  %v10011_v26 = vld [vmem:[%s10780_s4 + $0x70] sm:$0xff]   ;;  %v10022_v60 = vld [vmem:[%s10780_s4 + $0x8] sm:$0xff]  }
 0x815   :  { %v6198_v0 = vpop.f32.mrf.mxu1  ;;  %v6239_v24 = vpop.f32.mrf.mxu0  ;;  %v10010_v25 = vld [vmem:[%s10780_s4 + $0x38] sm:$0xff]  }
 0x816   :  { %v6287_v29 = vpack.c.bf16 %v6283_v23, %v6283_v23  ;;  %v9970_v27 = vld [vmem:[#allocation11 + $0x288] ss:$16 sps:$4 sm:$0xff]   ;;  %v10012_v23 = vld [vmem:[%s10780_s4 + $0x30] sm:$0xff]   ;;  %v9975_v0 = vld [vmem:[#allocation11 + $0x26c] ss:$16 sps:$4 sm:$0xff]  }
 0x817   :  { %v10013_v24 = vld [vmem:[%s10780_s4 + $0x68] sm:$0xff]  }
 0x818   :  { %7112 = vmatprep.mubr.bf16.mxu0 %v6287_v29 }
 0x819   :  { %7113 = vmatmul.mubr.bf16.vlgmr.msra.gmra.mxu0 %v10697_v31 }
 0x81a   :  { %7163 = vmatpush1.bf16.msra.mxu0 %v9868_v12  ;;  %7194 = vmatprep.mubr.bf16.mxu0 %v6287_v29  ;;  %v9973_v29 = vld [vmem:[#allocation11 + $0x268] ss:$16 sps:$4 sm:$0xff]  }
 0x81b   :  { %7164 = vmatprep.subr.bf16.mxu0 %v9876_v16  ;;  %v10014_v12 = vld [vmem:[%s10780_s4 + $0x28] sm:$0xff]   ;;  %v10015_v16 = vld [vmem:[%s10780_s4 + $0x60] sm:$0xff]  }
 0x81e   :  { %7165 = vmatpush1.bf16.msra.mxu0 %v9874_v32  ;;  %v9976_v32 = vld [vmem:[#allocation11 + $0x248] ss:$16 sps:$4 sm:$0xff]  }
 0x81f   :  { %7166 = vmatprep.subr.bf16.mxu0 %v9882_v17  ;;  %v10016_v17 = vld [vmem:[%s10780_s4 + $0x20] sm:$0xff]  }
 0x822   :  { %7167 = vmatpush1.bf16.msra.mxu0 %v9880_v33  ;;  %v9981_v33 = vld [vmem:[#allocation11 + $0x22c] ss:$16 sps:$4 sm:$0xff]  }
 0x823   :  { %7168 = vmatprep.subr.bf16.mxu0 %v9888_v28  ;;  %v10017_v28 = vld [vmem:[%s10780_s4 + $0x58] sm:$0xff]  }
 0x826   :  { %7169 = vmatpush1.bf16.msra.mxu0 %v9886_v34  ;;  %v9979_v34 = vld [vmem:[#allocation11 + $0x228] ss:$16 sps:$4 sm:$0xff]  }
 0x827   :  { %7170 = vmatprep.subr.bf16.mxu0 %v9894_v35  ;;  %v10018_v35 = vld [vmem:[%s10780_s4 + $0x18] sm:$0xff]  }
 0x82a   :  { %7171 = vmatpush1.bf16.msra.mxu0 %v9892_v37  ;;  %v9984_v37 = vld [vmem:[#allocation11 + $0x20c] ss:$16 sps:$4 sm:$0xff]  }
 0x82b   :  { %7172 = vmatprep.subr.bf16.mxu0 %v9900_v30  ;;  %v10019_v30 = vld [vmem:[%s10780_s4 + $0x50] sm:$0xff]  }
 0x82e   :  { %7173 = vmatpush1.bf16.msra.mxu0 %v9898_v38  ;;  %v9982_v38 = vld [vmem:[#allocation11 + $0x208] ss:$16 sps:$4 sm:$0xff]  }
 0x82f   :  { %7174 = vmatprep.subr.bf16.mxu0 %v9906_v40  ;;  %v10020_v40 = vld [vmem:[%s10780_s4 + $0x10] sm:$0xff]  }
 0x832   :  { %7175 = vmatpush1.bf16.msra.mxu0 %v9904_v39  ;;  %v9987_v39 = vld [vmem:[#allocation11 + $0x3ec] ss:$16 sps:$4 sm:$0xff]  }
 0x833   :  { %7176 = vmatprep.subr.bf16.mxu0 %v9912_v41  ;;  %v9985_v41 = vld [vmem:[#allocation11 + $0x3e8] ss:$16 sps:$4 sm:$0xff]  }
 0x836   :  { %7177 = vmatpush1.bf16.msra.mxu0 %v9910_v42  ;;  %v9990_v42 = vld [vmem:[#allocation11 + $0x3cc] ss:$16 sps:$4 sm:$0xff]  }
 0x837   :  { %7178 = vmatprep.subr.bf16.mxu0 %v9918_v45  ;;  %v9988_v45 = vld [vmem:[#allocation11 + $0x3c8] ss:$16 sps:$4 sm:$0xff]  }
 0x83a   :  { %7179 = vmatpush2.bf16.msra.mxu0 %v9916_v48  ;;  %v9993_v48 = vld [vmem:[#allocation11 + $0x3ac] ss:$16 sps:$4 sm:$0xff]  }
 0x83b   :  { %7180 = vmatprep.subr.bf16.mxu0 %v9924_v50  ;;  %v9991_v50 = vld [vmem:[#allocation11 + $0x3a8] ss:$16 sps:$4 sm:$0xff]  }
 0x83e   :  { %7181 = vmatpush2.bf16.msra.mxu0 %v9922_v51  ;;  %v9996_v51 = vld [vmem:[#allocation11 + $0x38c] ss:$16 sps:$4 sm:$0xff]  }
 0x83f   :  { %7182 = vmatprep.subr.bf16.mxu0 %v9930_v52  ;;  %v9994_v52 = vld [vmem:[#allocation11 + $0x388] ss:$16 sps:$4 sm:$0xff]  }
 0x842   :  { %7183 = vmatpush2.bf16.msra.mxu0 %v9928_v36  ;;  %v9999_v36 = vld [vmem:[#allocation11 + $0x36c] ss:$16 sps:$4 sm:$0xff]  }
 0x843   :  { %7184 = vmatprep.subr.bf16.mxu0 %v9936_v49  ;;  %v9997_v49 = vld [vmem:[#allocation11 + $0x368] ss:$16 sps:$4 sm:$0xff]  }
 0x846   :  { %7185 = vmatpush2.bf16.msra.mxu0 %v9934_v53  ;;  %v10002_v53 = vld [vmem:[#allocation11 + $0x34c] ss:$16 sps:$4 sm:$0xff]  }
 0x847   :  { %7186 = vmatprep.subr.bf16.mxu0 %v9942_v54  ;;  %v10000_v54 = vld [vmem:[#allocation11 + $0x348] ss:$16 sps:$4 sm:$0xff]  }
 0x84a   :  { %7187 = vmatpush2.bf16.msra.mxu0 %v9940_v55  ;;  %v10005_v55 = vld [vmem:[#allocation11 + $0x32c] ss:$16 sps:$4 sm:$0xff]  }
 0x84b   :  { %7188 = vmatprep.subr.bf16.mxu0 %v9948_v56  ;;  %v10003_v56 = vld [vmem:[#allocation11 + $0x328] ss:$16 sps:$4 sm:$0xff]  }
 0x84e   :  { %7189 = vmatpush2.bf16.msra.mxu0 %v9946_v58  ;;  %v10006_v58 = vld [vmem:[#allocation11 + $0x308] ss:$16 sps:$4 sm:$0xff]  }
 0x84f   :  { %v6275_v63 = vpop.f32.mrf.mxu1  ;;  %7190 = vmatprep.subr.bf16.mxu0 %v9954_v59  ;;  %v10021_v59 = vld [vmem:[%s10780_s4 + $0x48] sm:$0xff]  }
 0x850   :  { %v6276_v3 = vadd.f32 %v6275_v63, %v6235_v61  ;;  %v10023_v61 = vld [vmem:[%s10780_s4 + $0x40] sm:$0xff]   ;;  %v10025_v63 = vld [vmem:[%s10780_s4 + $0xf8] sm:$0xff]  }
 0x851   :  { %v6277_v4 = vpop.f32.mrf.mxu1 }
 0x852   :  { %v6278_v11 = vadd.f32 %v6277_v4, %v6237_v2  ;;  %7191 = vmatpush2.bf16.msra.mxu0 %v9952_v62  ;;  %v6284_v6 = vmax.f32 %v6276_v3, 0.0  ;;  %v10024_v62 = vld [vmem:[%s10780_s4] sm:$0xff]   ;;  %v10027_v2 = vld [vmem:[%s10780_s4 + $0xf0] sm:$0xff]   ;;  %v10029_v4 = vld [vmem:[%s10780_s4 + $0xe8] sm:$0xff]  }
 0x853   :  { %v6279_v7 = vpop.f32.mrf.mxu1  ;;  %7192 = vmatprep.subr.bf16.mxu0 %v9960_v1  ;;  %v10026_v1 = vld [vmem:[%s10780_s4 + $0xb8] sm:$0xff]   ;;  %v10028_v3 = vld [vmem:[%s10780_s4 + $0xb0] sm:$0xff]  }
 0x854   :  { %v6285_v9 = vmax.f32 %v6278_v11, 0.0  ;;  %v10706_v14 = vpack.c.bf16 %v6284_v6, %v6284_v6  ;;  %v10030_v11 = vld [vmem:[%s10780_s4 + $0xa8] sm:$0xff]   ;;  %v10032_v6 = vld [vmem:[%s10780_s4 + $0xa0] sm:$0xff]   ;;  %v10033_v7 = vld [vmem:[%s10780_s4 + $0xd8] sm:$0xff]  }
 0x855   :  { %v6280_v10 = vpop.f32.mrf.mxu1 }
 0x856   :  { %v6289_v8 = vpack.c.bf16 %v6285_v9, %v6285_v9  ;;  %7193 = vmatpush2.bf16.msra.mxu0 %v9958_v5  ;;  %v10031_v5 = vld [vmem:[%s10780_s4 + $0xe0] sm:$0xff]   ;;  %v10034_v9 = vld [vmem:[%s10780_s4 + $0x98] sm:$0xff]   ;;  %v10035_v10 = vld [vmem:[%s10780_s4 + $0xd0] sm:$0xff]  }
 0x857   :  { %8670 = vmatprep.subr.bf16.mxu0 %v10009_v22 }
 0x858   :  { %7153 = vmatprep.mubr.bf16.mxu1 %v6289_v8 }
 0x859   :  { %7154 = vmatmul.mubr.bf16.vlgmr.msra.gmra.mxu1 %v10706_v14  ;;  %7195 = vmatmul.mubr.bf16.vlgmr.msra.gmra.mxu0 %v10697_v31  ;;  %v9978_v31 = vld [vmem:[#allocation11 + $0x24c] ss:$16 sps:$4 sm:$0xff]  }
 0x85a   :  { %7204 = vmatpush1.bf16.msra.mxu1 %v9961_v13  ;;  %7235 = vmatprep.mubr.bf16.mxu1 %v6289_v8  ;;  %v10036_v8 = vld [vmem:[%s10780_s4 + $0x90] sm:$0xff]  }
 0x85b   :  { %7205 = vmatprep.subr.bf16.mxu1 %v9966_v15  ;;  %8671 = vmatpush3.bf16.msra.mxu0 %v10010_v25  ;;  %v10038_v15 = vld [vmem:[%s10780_s4 + $0x88] sm:$0xff]   ;;  %v6418_v25 = vld [vmem:[%s10781_s16] sm:$0xf] }
 0x85c   :  { %8672 = vmatprep.subr.bf16.mxu0 %v10011_v26  ;;  %v6423_v26 = vrot.slane %v6418_v25, %v10495_v43  ;;  %v6431_v43 = vrot.slane %v6418_v25, %v10497_v44 }
 0x85e   :  { %7206 = vmatpush1.bf16.msra.mxu1 %v9964_v18 }
 0x85f   :  { %7207 = vmatprep.subr.bf16.mxu1 %v9969_v19  ;;  %8673 = vmatpush3.bf16.msra.mxu0 %v10012_v23 }
 0x860   :  { %8674 = vmatprep.subr.bf16.mxu0 %v10013_v24 }
 0x862   :  { %7208 = vmatpush1.bf16.msra.mxu1 %v9967_v20  ;;  %v10039_v20 = vld [vmem:[%s10780_s4 + $0xc0] sm:$0xff]  }
 0x863   :  { %7209 = vmatprep.subr.bf16.mxu1 %v9972_v21  ;;  %8675 = vmatpush3.bf16.msra.mxu0 %v10014_v12  ;;  %v10040_v21 = vld [vmem:[%s10780_s4 + $0x80] sm:$0xff]  }
 0x864   :  { %8676 = vmatprep.subr.bf16.mxu0 %v10015_v16 }
 0x866   :  { %7210 = vmatpush1.bf16.msra.mxu1 %v9970_v27  ;;  %v6427_v27 = vrot.slane %v6418_v25, %v10500_v46  ;;  %v6435_v46 = vrot.slane %v6418_v25, %v10502_v47 }
 0x867   :  { %7211 = vmatprep.subr.bf16.mxu1 %v9975_v0  ;;  %8677 = vmatpush3.bf16.msra.mxu0 %v10016_v17 }
 0x868   :  { %8678 = vmatprep.subr.bf16.mxu0 %v10017_v28 }
 0x86a   :  { %7212 = vmatpush1.bf16.msra.mxu1 %v9973_v29 }
 0x86b   :  { %7213 = vmatprep.subr.bf16.mxu1 %v9978_v31  ;;  %8679 = vmatpush3.bf16.msra.mxu0 %v10018_v35 }
 0x86c   :  { %8680 = vmatprep.subr.bf16.mxu0 %v10019_v30 }
 0x86e   :  { %7214 = vmatpush1.bf16.msra.mxu1 %v9976_v32 }
 0x86f   :  { %7215 = vmatprep.subr.bf16.mxu1 %v9981_v33  ;;  %8681 = vmatpush3.bf16.msra.mxu0 %v10020_v40 }
 0x870   :  { %8682 = vmatprep.subr.bf16.mxu0 %v10021_v59 }
 0x872   :  { %7216 = vmatpush1.bf16.msra.mxu1 %v9979_v34 }
 0x873   :  { %7217 = vmatprep.subr.bf16.mxu1 %v9984_v37  ;;  %8683 = vmatpush3.bf16.msra.mxu0 %v10022_v60 }
 0x874   :  { %8684 = vmatprep.subr.bf16.mxu0 %v10023_v61 }
 0x876   :  { %7218 = vmatpush1.bf16.msra.mxu1 %v9982_v38 }
 0x877   :  { %7219 = vmatprep.subr.bf16.mxu1 %v9987_v39  ;;  %8685 = vmatpush3.bf16.msra.mxu0 %v10024_v62 }
 0x87a   :  { %7220 = vmatpush2.bf16.msra.mxu1 %v9985_v41 }
 0x87b   :  { %7221 = vmatprep.subr.bf16.mxu1 %v9990_v42 }
 0x87e   :  { %7222 = vmatpush2.bf16.msra.mxu1 %v9988_v45 }
 0x87f   :  { %7223 = vmatprep.subr.bf16.mxu1 %v9993_v48 }
 0x882   :  { %7224 = vmatpush2.bf16.msra.mxu1 %v9991_v50 }
 0x883   :  { %7225 = vmatprep.subr.bf16.mxu1 %v9996_v51 }
 0x886   :  { %7226 = vmatpush2.bf16.msra.mxu1 %v9994_v52 }
 0x887   :  { %7227 = vmatprep.subr.bf16.mxu1 %v9999_v36 }
 0x88a   :  { %7228 = vmatpush2.bf16.msra.mxu1 %v9997_v49 }
 0x88b   :  { %7229 = vmatprep.subr.bf16.mxu1 %v10002_v53 }
 0x88e   :  { %7230 = vmatpush2.bf16.msra.mxu1 %v10000_v54 }
 0x88f   :  { %7231 = vmatprep.subr.bf16.mxu1 %v10005_v55 }
 0x892   :  { %7232 = vmatpush2.bf16.msra.mxu1 %v10003_v56 }
 0x893   :  { %7233 = vmatprep.subr.bf16.mxu1 %v10008_v57 }
 0x896   :  { %7234 = vmatpush2.bf16.msra.mxu1 %v10006_v58 }
 0x897   :  { %8692 = vmatprep.subr.bf16.mxu1 %v10025_v63 }
 0x899   :  { %7236 = vmatmul.mubr.bf16.vlgmr.msra.gmra.mxu1 %v10706_v14  ;;  %v10037_v14 = vld [vmem:[%s10780_s4 + $0xc8] sm:$0xff]  }
 0x89a   :  { %8693 = vmatpush3.bf16.msra.mxu1 %v10026_v1 }
 0x89b   :  { %8694 = vmatprep.subr.bf16.mxu1 %v10027_v2 }
 0x89e   :  { %8695 = vmatpush3.bf16.msra.mxu1 %v10028_v3 }
 0x89f   :  { %8696 = vmatprep.subr.bf16.mxu1 %v10029_v4 }
 0x8a2   :  { %8697 = vmatpush3.bf16.msra.mxu1 %v10030_v11 }
 0x8a3   :  { %8698 = vmatprep.subr.bf16.mxu1 %v10031_v5 }
 0x8a6   :  { %8699 = vmatpush3.bf16.msra.mxu1 %v10032_v6 }
 0x8a7   :  { %8700 = vmatprep.subr.bf16.mxu1 %v10033_v7 }
 0x8aa   :  { %8701 = vmatpush3.bf16.msra.mxu1 %v10034_v9 }
 0x8ab   :  { %8702 = vmatprep.subr.bf16.mxu1 %v10035_v10 }
 0x8ae   :  { %8703 = vmatpush3.bf16.msra.mxu1 %v10036_v8 }
 0x8af   :  { %8704 = vmatprep.subr.bf16.mxu1 %v10037_v14 }
 0x8b2   :  { %8705 = vmatpush3.bf16.msra.mxu1 %v10038_v15 }
 0x8b3   :  { %8706 = vmatprep.subr.bf16.mxu1 %v10039_v20 }
 0x8b6   :  { %8707 = vmatpush3.bf16.msra.mxu1 %v10040_v21 }
 0x8d9   :  { %v7114_v13 = vpop.f32.mrf.mxu0 }
 0x8da   :  { %v7115_v23 = vadd.f32 %v7114_v13, %v6423_v26 }
 0x8db   :  { %v7116_v18 = vpop.f32.mrf.mxu0 }
 0x8dc   :  { %v7117_v29 = vadd.f32 %v7116_v18, %v6427_v27 }
 0x8dd   :  { %v7118_v19 = vpop.f32.mrf.mxu0 }
 0x8df   :  { %v7119_v22 = vpop.f32.mrf.mxu0 }
 0x919   :  { %v7155_v0 = vpop.f32.mrf.mxu1  ;;  %v7196_v24 = vpop.f32.mrf.mxu0 }
 0x91a   :  { %v7156_v12 = vadd.f32 %v7155_v0, %v7115_v23  ;;  %v7197_v40 = vadd.f32 %v7196_v24, %v6431_v43 }
 0x91b   :  { %v7157_v31 = vpop.f32.mrf.mxu1  ;;  %v7198_v16 = vpop.f32.mrf.mxu0 }
 0x91c   :  { %v7158_v32 = vadd.f32 %v7157_v31, %v7117_v29  ;;  %v7244_v17 = vmax.f32 %v7156_v12, 0.0  ;;  %v7199_v41 = vadd.f32 %v7198_v16, %v6435_v46 }
 0x91d   :  { %v7159_v33 = vpop.f32.mrf.mxu1  ;;  %v7200_v28 = vpop.f32.mrf.mxu0 }
 0x91e   :  { %v7245_v34 = vmax.f32 %v7158_v32, 0.0  ;;  %v7248_v38 = vpack.c.bf16 %v7244_v17, %v7244_v17 }
 0x91f   :  { %v7160_v35 = vpop.f32.mrf.mxu1  ;;  %v7201_v37 = vpop.f32.mrf.mxu0 }
 0x920   :  { %v7249_v30 = vpack.c.bf16 %v7245_v34, %v7245_v34 }
 0x922   :  { %7547 = vmatprep.mubr.bf16.mxu0 %v7249_v30 }
 0x923   :  { %7548 = vmatmul.mubr.bf16.vlgmr.msra.gmra.mxu0 %v7248_v38 }
 0x959   :  { %v7237_v39 = vpop.f32.mrf.mxu1 }
 0x95a   :  { %v7238_v42 = vadd.f32 %v7237_v39, %v7197_v40 }
 0x95b   :  { %v7239_v45 = vpop.f32.mrf.mxu1 }
 0x95c   :  { %v7240_v48 = vadd.f32 %v7239_v45, %v7199_v41  ;;  %v7246_v50 = vmax.f32 %v7238_v42, 0.0 }
 0x95d   :  { %v7241_v51 = vpop.f32.mrf.mxu1 }
 0x95e   :  { %v7247_v52 = vmax.f32 %v7240_v48, 0.0  ;;  %v7250_v53 = vpack.c.bf16 %v7246_v50, %v7246_v50 }
 0x95f   :  { %v7242_v36 = vpop.f32.mrf.mxu1 }
 0x960   :  { %v7251_v49 = vpack.c.bf16 %v7247_v52, %v7247_v52 }
 0x962   :  { %7587 = vmatprep.mubr.bf16.mxu1 %v7251_v49 }
 0x963   :  { %7588 = vmatmul.mubr.bf16.vlgmr.msra.gmra.mxu1 %v7250_v53 }
 0x964   :  { %10178 = shalt.err (!%p10175_p6)
}
 0x965   :  { %7620 = dma.vmem_to_hbm [thread:$0]  %s7618_s18, 128, %s10428_s6, [#allocation15]  }
 0x966   :  { %s10278_s23 = smov [#allocation16]  }
 0x967   :  { %s7627_s26 = sshll.u32 %s10278_s23, 4  ;;  %s7628_s26 = int_to_ptr.vmem [resolvable:$true] %s7627_s26 }
 0x968   :  { %s10187_s28 = scalar_lea.vmem %s7628_s26, 128  ;;  %p10192_p8 = scmp.lt.s32.totalorder %s7628_s26, %s7628_s26 }
 0x969   :  { %p10188_p7 = scmp.ne.s32.totalorder %s7628_s26, %s10187_s28  ;;  %p10193_p9 = scmp.lt.s32.totalorder %s10187_s28, %s10187_s28 }
 0x96b   :  { %p10194_p10 = por %p10193_p9, %p10192_p8 }
 0x96d   :  { %p10195_p11 = pnand %p10194_p10, %p10188_p7 }
 0x96f   :  { %10198 = shalt.err (!%p10195_p11)
}
 0x970   :  { %7630 = dma.vmem_to_hbm [thread:$0]  %s7628_s26, 128, %s10433_s24, [#allocation15]   ;;  %v8549_v57 = vld [vmem:[%s10418_s13] ss:$0 sm:$0xff] }
 0x971   :  { %s10279_s24 = smov [#allocation13]  }
 0x972   :  { %s7607_s6 = sshll.u32 %s10279_s24, 4  ;;  %s7608_s6 = int_to_ptr.vmem [resolvable:$true] %s7607_s6 }
 0x973   :  { %s10207_s13 = scalar_lea.vmem %s7608_s6, 128  ;;  %p10212_p13 = scmp.lt.s32.totalorder %s7608_s6, %s7608_s6 }
 0x974   :  { %p10208_p12 = scmp.ne.s32.totalorder %s7608_s6, %s10207_s13  ;;  %p10213_p0 = scmp.lt.s32.totalorder %s10207_s13, %s10207_s13 }
 0x976   :  { %p10214_p1 = por %p10213_p0, %p10212_p13 }
 0x978   :  { %p10215_p2 = pnand %p10214_p1, %p10208_p12 }
 0x9e3   :  { %v8686_v44 = vpop.f32.mrf.mxu0 }
 0x9e5   :  { %v8687_v47 = vpop.f32.mrf.mxu0 }
 0x9e6   :  { %v8688_v56 = vadd.f32 %v8687_v47, %v8686_v44 }
 0x9e7   :  { %v8689_v54 = vpop.f32.mrf.mxu0 }
 0x9e8   :  { %v7550_v60 = vadd.f32 %v8688_v56, %v8549_v57 }
 0x9e9   :  { %v8690_v55 = vpop.f32.mrf.mxu0 }
 0xa23   :  { %v8708_v58 = vpop.f32.mrf.mxu1 }
 0xa25   :  { %v8709_v59 = vpop.f32.mrf.mxu1 }
 0xa26   :  { %v8710_v61 = vadd.f32 %v8709_v59, %v8708_v58 }
 0xa27   :  { %v8711_v62 = vpop.f32.mrf.mxu1 }
 0xa28   :  { %v7590_v63 = vadd.f32 %v8710_v61, %v7550_v60 }
 0xa29   :  { %v8712_v1 = vpop.f32.mrf.mxu1 }
 0xa2a   :  { %v7595_v2 = vsub.f32 0.0, %v7590_v63 }
 0xa2c   :  { %v7596_v3 = vmul.f32 1.442695, %v7595_v2 }
 0xa2e   :  { %10043 = vpow2.f32 %v7596_v3 }
 0xa3b   :  { %v10044_v4 = vpop.eup %10043 }
 0xa3c   :  { %v7598_v11 = vadd.f32 1.0, %v10044_v4 }
 0xa3e   :  { %10045 = vrcp.f32 %v7598_v11 }
 0xa4b   :  { %v10046_v5 = vpop.eup %10045 }
 0xa4c   :  { %7600 = vst.msk [vmem:[#allocation13] sm:$0xff] %vm415_vm2, %v10046_v5 }
 0xa4d   :  { %10218 = shalt.err (!%p10215_p2)
}
 0xa4e   :  { %7610 = dma.vmem_to_hbm [thread:$0]  %s7608_s6, 128, %s10423_s12, [#allocation4]  }
 0xa4f   :  { %10235 = dma.done.wait [#allocation4], 128  }
 0xa50   :  { %10236 = vsyncadd [#allocation4], 4294967168 }
 0xa51   :  { %10237 = dma.done.wait [#allocation15], 256  }
 0xa52   :  { %10238 = vsyncadd [#allocation15], 4294967040 }
 0xa53   :  { %7640 = vsyncpa [#allocation3], 1 }
 0xa54   :  { %7641 = vsyncpa [#allocation6], 1 }
 0xa55   :  { %7642 = vsyncpa [#allocation9], 1 }
 0xa56   :  { %7643 = vsyncpa [#allocation12], 1 }
 0xa57   :  { %7644 = vsyncpa [#allocation4], 1 }
 0xa58   :  { %7645 = vsyncpa [#allocation15], 1 }

</bundles_post_ra>
